<compile_context>
chip_gen: v7x
topology: tpu7x:2x2x1
jax: 0.10.0
libtpu: 0.0.40
codegen_flags: <defaults>
</compile_context>

<pallas_src>
import jax
import jax.numpy as jnp
import numpy as np
from jax.experimental import pallas as pl
from jax.experimental.pallas import tpu as pltpu

# ----- problem sizes implied by the module (9x9 board, vocab 10, emb 10) -----
H = W = 9          # spatial
C = 10             # embedding / channel width
L = 10             # number of conv layers
P = H + 2          # zero-padded spatial extent (11)
PC = P * C         # live lanes per padded image row (110)
PCP = 128          # lane-padded row width (unmasked vld/vst, MXU K/N = 128)
HALO = 8           # zero rows above/below live rows (multiple of 8 -> aligned slices)
HC = H * C         # flattened per-row hypothesis width (90)
EPS = 1e-5


def _round_up(x, m):
    return (x + m - 1) // m * m


def init_params(key):
    ks = jax.random.split(key, 16)
    return dict(
        emb=0.5 * jax.random.normal(ks[0], (10, C), jnp.float32),
        conv_w=0.1 * jax.random.normal(ks[1], (L, C, C, 3, 3), jnp.float32),  # (l,cout,cin,kh,kw)
        conv_b=0.1 * jax.random.normal(ks[2], (L, C), jnp.float32),
        g2=1.0 + 0.1 * jax.random.normal(ks[3], (L, C), jnp.float32),
        b2=0.1 * jax.random.normal(ks[4], (L, C), jnp.float32),
        m2=0.05 * jax.random.normal(ks[5], (L, C), jnp.float32),
        v2=1.0 + 0.1 * jax.random.uniform(ks[6], (L, C), jnp.float32),
        lin_w=0.05 * jax.random.normal(ks[7], (C, H * W * C), jnp.float32),   # (out, in) torch layout
        lin_b=0.1 * jax.random.normal(ks[8], (C,), jnp.float32),
        g1=1.0 + 0.1 * jax.random.normal(ks[9], (C,), jnp.float32),
        b1=0.1 * jax.random.normal(ks[10], (C,), jnp.float32),
        m1=0.05 * jax.random.normal(ks[11], (C,), jnp.float32),
        v1=1.0 + 0.1 * jax.random.uniform(ks[12], (C,), jnp.float32),
        ow=0.2 * jax.random.normal(ks[13], (1, C), jnp.float32),
        ob=0.1 * jax.random.normal(ks[14], (1,), jnp.float32),
    )


def fold_params(p):
    """One-time (host/NumPy) folding of parameters into kernel-ready tensors."""
    conv_w = np.asarray(p["conv_w"], np.float32)          # (L, cout, cin, 3, 3)
    conv_b = np.asarray(p["conv_b"], np.float32)
    g2, b2 = np.asarray(p["g2"], np.float32), np.asarray(p["b2"], np.float32)
    m2, v2 = np.asarray(p["m2"], np.float32), np.asarray(p["v2"], np.float32)

    # eval-mode BN2d folded: y = conv_raw * cscale + cshift
    cscale = g2 / np.sqrt(v2 + EPS)                       # (L, C)
    cshift = (conv_b - m2) * cscale + b2                  # (L, C)

    # banded conv weights: fold the 3 dx taps into one (128,128) matrix per (layer, dy),
    # with cscale folded into the output (cout) columns.
    wt = conv_w.transpose(0, 3, 4, 2, 1)                  # (L, kh, kw, cin, cout)
    wts = wt * cscale[:, None, None, None, :]
    M = np.zeros((L, 3, PCP, PCP), np.float32)
    for dx in range(3):
        for px in range(1, W + 1):                        # interior output columns only
            src = px + dx - 1                             # input column 0..10
            M[:, :, src * C:(src + 1) * C, px * C:(px + 1) * C] = wts[:, :, dx]

    # per-layer shift, zero on pad-column blocks / pad lanes (so relu(0)=0 keeps them clean)
    csh = np.zeros((L, 1, PCP), np.float32)
    for px in range(1, W + 1):
        csh[:, 0, px * C:(px + 1) * C] = cshift

    # Flatten + Linear(810->C) expressed over the lane-dense row layout.
    # torch flatten order is (cin, h, w): lin_w[cout, cin*81 + h*9 + w]
    lw = np.asarray(p["lin_w"], np.float32).reshape(C, C, H, W)      # [cout, cin, h, w]
    wc = lw.transpose(3, 1, 2, 0).reshape(W * C, HC)                 # [(px-1)*C+cin, h*C+cout]
    wcat = np.zeros((PCP, HC), np.float32)
    wcat[C:C + W * C, :] = wc

    g1, b1 = np.asarray(p["g1"], np.float32), np.asarray(p["b1"], np.float32)
    m1, v1 = np.asarray(p["m1"], np.float32), np.asarray(p["v1"], np.float32)
    lin_b = np.asarray(p["lin_b"], np.float32)
    lscale = g1 / np.sqrt(v1 + EPS)
    lshift = (lin_b - m1) * lscale + b1
    # block-diagonal reducer with the BN1d scale folded into its columns
    rsum = np.tile(np.eye(C, dtype=np.float32), (H, 1)) * lscale[None, :]   # (HC, C)

    return dict(
        emb=jnp.asarray(p["emb"], jnp.float32),
        M=jnp.asarray(M, jnp.bfloat16),
        csh=jnp.asarray(csh, jnp.float32),
        wcat=jnp.asarray(wcat, jnp.bfloat16),
        rsum=jnp.asarray(rsum, jnp.bfloat16),
        lshift=jnp.asarray(lshift.reshape(1, C), jnp.float32),
        ow=jnp.asarray(np.asarray(p["ow"], np.float32).T, jnp.float32),     # (C, 1)
        ob=jnp.asarray(np.asarray(p["ob"], np.float32).reshape(1, 1), jnp.float32),
    )


def qmodel_forward(state, prep, *, boards_per_tile=64):
    B = state.shape[0]
    # Big batch tiles amortize per-step overhead / MXU fill; cap at ceil(B/2) so the
    # "parallel" grid axis has >= 2 steps (v7x has 2 TensorCores).
    BT = min(boards_per_tile, (B + 1) // 2) if B >= 2 else 1
    G = pl.cdiv(B, BT)                  # batch tiles
    Bp = G * BT
    NR = _round_up(BT * P, 8)           # live rows per tile (sublane aligned)
    RT = HALO + NR + HALO               # scratch rows per tile

    # ---- glue: embedding lookup + packing into the lane-dense padded layout ----
    state_p = jnp.zeros((Bp, H, W), state.dtype).at[:B].set(state)
    x_emb = prep["emb"][state_p]                                # (Bp, H, W, C)
    xl = jnp.zeros((G, BT, P, P, C), jnp.float32)
    xl = xl.at[:, :, 1:H + 1, 1:W + 1, :].set(x_emb.reshape(G, BT, H, W, C))
    xl = xl.reshape(G, BT * P, PC)
    x0 = jnp.zeros((G, RT, PCP), jnp.float32).at[:, HALO:HALO + BT * P, :PC].set(xl)

    # ---- geometry-only constants (NumPy, baked at trace time) ----
    rows = np.arange(NR)
    py = rows % P
    live = (rows < BT * P) & (py != 0) & (py != P - 1)
    row_mask = jnp.asarray(live.astype(np.float32).reshape(NR, 1))          # (NR, 1)

    dm = (py[:, None] == (np.arange(H) + 1)[None, :]) & (rows[:, None] < BT * P)
    dmask = jnp.asarray(np.repeat(dm.astype(np.float32), C, axis=1))        # (NR, HC)
    sel_np = ((np.arange(BT)[:, None] == (rows // P)[None, :])
              & (rows[None, :] < BT * P)).astype(np.float32)
    sel = jnp.asarray(sel_np, jnp.bfloat16)                                 # (BT, NR)
    eye = jnp.asarray(np.eye(BT, dtype=np.float32))                         # (BT, BT)

    args = (x0, row_mask, prep["M"], prep["csh"], prep["wcat"], dmask, sel,
            prep["rsum"], prep["lshift"], prep["ow"], prep["ob"], eye)

    def kernel(x0_ref, rmask_ref, m_ref, csh_ref, wcat_ref, dmask_ref,
               sel_ref, rsum_ref, lsh_ref, ow_ref, ob_ref, eye_ref, out_ref, xp):
        xp[...] = x0_ref[...]                               # (RT, 128) padded features, f32
        rmask = rmask_ref[...]                              # (NR, 1) row mask, reused all layers
        y = xp[pl.ds(HALO, NR), :]                          # current live rows (aligned)

        # ---- conv stack: each layer = 3 row-shifted (NR,128)@(128,128) bf16 MXU matmuls ----
        # (BN scale folded into M columns; pad columns/lanes have zero M cols + zero csh,
        #  so relu keeps them at exactly 0; rmask re-zeroes pad/tail rows for the dy shifts.)
        for l in range(L):
            up = xp[pl.ds(HALO - 1, NR), :].astype(jnp.bfloat16)
            dn = xp[pl.ds(HALO + 1, NR), :].astype(jnp.bfloat16)
            acc = jnp.dot(up, m_ref[l, 0], preferred_element_type=jnp.float32)
            acc = acc + jnp.dot(y.astype(jnp.bfloat16), m_ref[l, 1],
                                preferred_element_type=jnp.float32)
            acc = acc + jnp.dot(dn, m_ref[l, 2], preferred_element_type=jnp.float32)
            y = jnp.maximum(acc + csh_ref[l], 0.0) * rmask  # f32 elementwise
            if l + 1 < L:
                xp[pl.ds(HALO, NR), :] = y                  # aligned, unmasked write-back

        # ---- Flatten + Linear(810->C) + BN1d(eval) + ReLU + Linear(C->1) ----
        h = jnp.dot(y.astype(jnp.bfloat16), wcat_ref[...],
                    preferred_element_type=jnp.float32)                     # (NR, HC)
        h = (h * dmask_ref[...]).astype(jnp.bfloat16)       # keep matching-row hypotheses
        g = jnp.dot(sel_ref[...], h, preferred_element_type=jnp.float32)    # (BT, HC)
        lin = jnp.dot(g.astype(jnp.bfloat16), rsum_ref[...],
                      preferred_element_type=jnp.float32)                   # (BT, C) (scaled)
        lin = jnp.maximum(lin + lsh_ref[...], 0.0)
        score = jnp.dot(lin, ow_ref[...],
                        preferred_element_type=jnp.float32) + ob_ref[...]   # (BT, 1)
        # lane-dense output: move the board index into lanes via diag-select + sublane reduce
        out_ref[...] = jnp.sum(score * eye_ref[...], axis=0, keepdims=True)  # (1, BT)

    def rep0(a):
        nd = a.ndim
        return pl.BlockSpec(a.shape, lambda i, nd=nd: (0,) * nd)

    in_specs = ([pl.BlockSpec((None, RT, PCP), lambda i: (i, 0, 0))]
                + [rep0(a) for a in args[1:]])

    out = pl.pallas_call(
        kernel,
        out_shape=jax.ShapeDtypeStruct((G, 1, BT), jnp.float32),
        grid_spec=pltpu.PrefetchScalarGridSpec(
            num_scalar_prefetch=0,
            grid=(G,),
            in_specs=in_specs,
            out_specs=pl.BlockSpec((None, 1, BT), lambda i: (i, 0, 0)),
            scratch_shapes=[pltpu.VMEM((RT, PCP), jnp.float32)]),
        compiler_params=pltpu.CompilerParams(
            dimension_semantics=("parallel",)),
    )(*args)
    return out.reshape(Bp)[:B]                              # .squeeze() -> (B,)


def qmodel_reference(state, p):
    """Pure-JAX f32 reference matching the PyTorch forward (BN in eval mode)."""
    x = p["emb"][state]                                     # (B, 9, 9, C)
    x = jnp.transpose(x, (0, 3, 1, 2))                      # NCHW
    for l in range(L):
        x = jax.lax.conv_general_dilated(
            x, p["conv_w"][l], window_strides=(1, 1), padding=((1, 1), (1, 1)),
            dimension_numbers=("NCHW", "OIHW", "NCHW"))
        x = x + p["conv_b"][l][None, :, None, None]
        x = ((x - p["m2"][l][None, :, None, None])
             / jnp.sqrt(p["v2"][l][None, :, None, None] + EPS)
             * p["g2"][l][None, :, None, None] + p["b2"][l][None, :, None, None])
        x = jnp.maximum(x, 0.0)
    x = x.reshape(x.shape[0], -1)                           # (B, 810), NCHW flatten
    x = x @ p["lin_w"].T + p["lin_b"]
    x = (x - p["m1"]) / jnp.sqrt(p["v1"] + EPS) * p["g1"] + p["b1"]
    x = jnp.maximum(x, 0.0)
    return jnp.squeeze(x @ p["ow"].T + p["ob"])


if __name__ == "__main__":
    key = jax.random.PRNGKey(0)
    pkey, skey = jax.random.split(key)
    params = init_params(pkey)
    prep = fold_params(params)                              # one-time parameter folding

    fwd = jax.jit(qmodel_forward, static_argnames=("boards_per_tile",))

    # B=16 exercises BT=8 / G=2; B=3 exercises batch padding + tail-row masking.
    for B in (16, 3):
        state = jax.random.randint(jax.random.fold_in(skey, B), (B, H, W), 0, 10,
                                   dtype=jnp.int32)
        out = jax.block_until_ready(fwd(state, prep))
        ref = jax.block_until_ready(qmodel_reference(state, params))
        assert out.shape == (B,), f"bad output shape {out.shape}"
        # tolerance 5e-2: kernel uses bf16 MXU operands (f32 accumulation) across 10 conv
        # layers, reference is pure f32.
        assert np.allclose(np.asarray(out), np.asarray(ref), rtol=5e-2, atol=5e-2), (
            f"B={B} mismatch: kernel={np.asarray(out)} ref={np.asarray(ref)}")
    print("KERNEL_OK")
</pallas_src>

<mosaic_0001>
module attributes {stable_mosaic.version = 11 : i64} {
  func.func @kernel(%arg0: i32, %arg1: memref<1x104x128xf32, #tpu.memory_space<vmem>>, %arg2: memref<88x1xf32, #tpu.memory_space<vmem>>, %arg3: memref<10x3x128x128xbf16, #tpu.memory_space<vmem>>, %arg4: memref<10x1x128xf32, #tpu.memory_space<vmem>>, %arg5: memref<128x90xbf16, #tpu.memory_space<vmem>>, %arg6: memref<88x90xf32, #tpu.memory_space<vmem>>, %arg7: memref<8x88xbf16, #tpu.memory_space<vmem>>, %arg8: memref<90x10xbf16, #tpu.memory_space<vmem>>, %arg9: memref<1x10xf32, #tpu.memory_space<vmem>>, %arg10: memref<10x1xf32, #tpu.memory_space<vmem>>, %arg11: memref<1x1xf32, #tpu.memory_space<vmem>>, %arg12: memref<8x8xf32, #tpu.memory_space<vmem>>, %arg13: memref<1x1x8xf32, #tpu.memory_space<vmem>>, %arg14: memref<104x128xf32, #tpu.memory_space<vmem>>) attributes {dimension_semantics = [#tpu.dimension_semantics<parallel>], iteration_bounds = array<i64: 2>, scalar_prefetch = 0 : i64, scratch_operands = 1 : i64, tpu.core_type = #tpu.core_type<tc>, window_params = [{transform_indices = @transform_0, window_bounds = array<i64: 1, 104, 128>}, {pipeline_mode = #tpu.pipeline_mode<synchronous>, transform_indices = @transform_1, window_bounds = array<i64: 88, 1>}, {pipeline_mode = #tpu.pipeline_mode<synchronous>, transform_indices = @transform_2, window_bounds = array<i64: 10, 3, 128, 128>}, {pipeline_mode = #tpu.pipeline_mode<synchronous>, transform_indices = @transform_3, window_bounds = array<i64: 10, 1, 128>}, {pipeline_mode = #tpu.pipeline_mode<synchronous>, transform_indices = @transform_4, window_bounds = array<i64: 128, 90>}, {pipeline_mode = #tpu.pipeline_mode<synchronous>, transform_indices = @transform_5, window_bounds = array<i64: 88, 90>}, {pipeline_mode = #tpu.pipeline_mode<synchronous>, transform_indices = @transform_6, window_bounds = array<i64: 8, 88>}, {pipeline_mode = #tpu.pipeline_mode<synchronous>, transform_indices = @transform_7, window_bounds = array<i64: 90, 10>}, {pipeline_mode = #tpu.pipeline_mode<synchronous>, transform_indices = @transform_8, window_bounds = array<i64: 1, 10>}, {pipeline_mode = #tpu.pipeline_mode<synchronous>, transform_indices = @transform_9, window_bounds = array<i64: 10, 1>}, {pipeline_mode = #tpu.pipeline_mode<synchronous>, transform_indices = @transform_10, window_bounds = array<i64: 1, 1>}, {pipeline_mode = #tpu.pipeline_mode<synchronous>, transform_indices = @transform_11, window_bounds = array<i64: 8, 8>}, {transform_indices = @transform_12, window_bounds = array<i64: 1, 1, 8>}]} {
    %c0 = arith.constant 0 : index
    %c0_0 = arith.constant 0 : index
    %c0_1 = arith.constant 0 : index
    %0 = vector.load %arg1[%c0, %c0_0, %c0_1] : memref<1x104x128xf32, #tpu.memory_space<vmem>>, vector<1x104x128xf32>
    %1 = vector.shape_cast %0 : vector<1x104x128xf32> to vector<104x128xf32>
    %c0_2 = arith.constant 0 : index
    %c0_3 = arith.constant 0 : index
    %2 = vector.load %arg14[%c0_2, %c0_3] : memref<104x128xf32, #tpu.memory_space<vmem>>, vector<104x128xf32>
    tpu.vector_store %arg14[%c0_2, %c0_3], %1 {strides = array<i32>} : memref<104x128xf32, #tpu.memory_space<vmem>>, vector<104x128xf32>,
    %c0_4 = arith.constant 0 : index
    %c0_5 = arith.constant 0 : index
    %3 = vector.load %arg2[%c0_4, %c0_5] : memref<88x1xf32, #tpu.memory_space<vmem>>, vector<88x1xf32>
    %c8 = arith.constant 8 : index
    %c0_6 = arith.constant 0 : index
    %4 = vector.load %arg14[%c8, %c0_6] : memref<104x128xf32, #tpu.memory_space<vmem>>, vector<88x128xf32>
    %c7 = arith.constant 7 : index
    %c0_7 = arith.constant 0 : index
    %5 = vector.load %arg14[%c7, %c0_7] : memref<104x128xf32, #tpu.memory_space<vmem>>, vector<88x128xf32>
    %6 = arith.truncf %5 : vector<88x128xf32> to vector<88x128xbf16>
    %c9 = arith.constant 9 : index
    %c0_8 = arith.constant 0 : index
    %7 = vector.load %arg14[%c9, %c0_8] : memref<104x128xf32, #tpu.memory_space<vmem>>, vector<88x128xf32>
    %8 = arith.truncf %7 : vector<88x128xf32> to vector<88x128xbf16>
    %c0_9 = arith.constant 0 : index
    %c0_10 = arith.constant 0 : index
    %c0_11 = arith.constant 0 : index
    %c0_12 = arith.constant 0 : index
    %9 = vector.load %arg3[%c0_9, %c0_10, %c0_11, %c0_12] : memref<10x3x128x128xbf16, #tpu.memory_space<vmem>>, vector<1x1x128x128xbf16>
    %10 = vector.shape_cast %9 : vector<1x1x128x128xbf16> to vector<128x128xbf16>
    %cst = arith.constant dense<0.000000e+00> : vector<88x128xf32>
    %11 = tpu.matmul %6, %10, %cst {dimension_numbers = #tpu.dot_dimension_numbers<[1], [0], [0], [1], [0, 0, 1, 1], [], []>} : vector<88x128xbf16>, vector<128x128xbf16>, vector<88x128xf32> -> vector<88x128xf32>
    %12 = arith.truncf %4 : vector<88x128xf32> to vector<88x128xbf16>
    %c0_13 = arith.constant 0 : index
    %c1 = arith.constant 1 : index
    %c0_14 = arith.constant 0 : index
    %c0_15 = arith.constant 0 : index
    %13 = vector.load %arg3[%c0_13, %c1, %c0_14, %c0_15] : memref<10x3x128x128xbf16, #tpu.memory_space<vmem>>, vector<1x1x128x128xbf16>
    %14 = vector.shape_cast %13 : vector<1x1x128x128xbf16> to vector<128x128xbf16>
    %cst_16 = arith.constant dense<0.000000e+00> : vector<88x128xf32>
    %15 = tpu.matmul %12, %14, %cst_16 {dimension_numbers = #tpu.dot_dimension_numbers<[1], [0], [0], [1], [0, 0, 1, 1], [], []>} : vector<88x128xbf16>, vector<128x128xbf16>, vector<88x128xf32> -> vector<88x128xf32>
    %16 = arith.addf %11, %15 : vector<88x128xf32>
    %c0_17 = arith.constant 0 : index
    %c2 = arith.constant 2 : index
    %c0_18 = arith.constant 0 : index
    %c0_19 = arith.constant 0 : index
    %17 = vector.load %arg3[%c0_17, %c2, %c0_18, %c0_19] : memref<10x3x128x128xbf16, #tpu.memory_space<vmem>>, vector<1x1x128x128xbf16>
    %18 = vector.shape_cast %17 : vector<1x1x128x128xbf16> to vector<128x128xbf16>
    %cst_20 = arith.constant dense<0.000000e+00> : vector<88x128xf32>
    %19 = tpu.matmul %8, %18, %cst_20 {dimension_numbers = #tpu.dot_dimension_numbers<[1], [0], [0], [1], [0, 0, 1, 1], [], []>} : vector<88x128xbf16>, vector<128x128xbf16>, vector<88x128xf32> -> vector<88x128xf32>
    %20 = arith.addf %16, %19 : vector<88x128xf32>
    %c0_21 = arith.constant 0 : index
    %c0_22 = arith.constant 0 : index
    %c0_23 = arith.constant 0 : index
    %21 = vector.load %arg4[%c0_21, %c0_22, %c0_23] : memref<10x1x128xf32, #tpu.memory_space<vmem>>, vector<1x1x128xf32>
    %22 = vector.shape_cast %21 : vector<1x1x128xf32> to vector<1x128xf32>
    %23 = vector.broadcast %22 : vector<1x128xf32> to vector<88x128xf32>
    %24 = arith.addf %20, %23 : vector<88x128xf32>
    %cst_24 = arith.constant 0.000000e+00 : f32
    %25 = vector.broadcast %cst_24 : f32 to vector<88x128xf32>
    %26 = arith.maximumf %24, %25 : vector<88x128xf32>
    %27 = vector.broadcast %3 : vector<88x1xf32> to vector<88x128xf32>
    %28 = arith.mulf %26, %27 : vector<88x128xf32>
    %c8_25 = arith.constant 8 : index
    %c0_26 = arith.constant 0 : index
    %29 = vector.load %arg14[%c8_25, %c0_26] : memref<104x128xf32, #tpu.memory_space<vmem>>, vector<88x128xf32>
    tpu.vector_store %arg14[%c8_25, %c0_26], %28 {strides = array<i32>} : memref<104x128xf32, #tpu.memory_space<vmem>>, vector<88x128xf32>,
    %c7_27 = arith.constant 7 : index
    %c0_28 = arith.constant 0 : index
    %30 = vector.load %arg14[%c7_27, %c0_28] : memref<104x128xf32, #tpu.memory_space<vmem>>, vector<88x128xf32>
    %31 = arith.truncf %30 : vector<88x128xf32> to vector<88x128xbf16>
    %c9_29 = arith.constant 9 : index
    %c0_30 = arith.constant 0 : index
    %32 = vector.load %arg14[%c9_29, %c0_30] : memref<104x128xf32, #tpu.memory_space<vmem>>, vector<88x128xf32>
    %33 = arith.truncf %32 : vector<88x128xf32> to vector<88x128xbf16>
    %c1_31 = arith.constant 1 : index
    %c0_32 = arith.constant 0 : index
    %c0_33 = arith.constant 0 : index
    %c0_34 = arith.constant 0 : index
    %34 = vector.load %arg3[%c1_31, %c0_32, %c0_33, %c0_34] : memref<10x3x128x128xbf16, #tpu.memory_space<vmem>>, vector<1x1x128x128xbf16>
    %35 = vector.shape_cast %34 : vector<1x1x128x128xbf16> to vector<128x128xbf16>
    %cst_35 = arith.constant dense<0.000000e+00> : vector<88x128xf32>
    %36 = tpu.matmul %31, %35, %cst_35 {dimension_numbers = #tpu.dot_dimension_numbers<[1], [0], [0], [1], [0, 0, 1, 1], [], []>} : vector<88x128xbf16>, vector<128x128xbf16>, vector<88x128xf32> -> vector<88x128xf32>
    %37 = arith.truncf %28 : vector<88x128xf32> to vector<88x128xbf16>
    %c1_36 = arith.constant 1 : index
    %c1_37 = arith.constant 1 : index
    %c0_38 = arith.constant 0 : index
    %c0_39 = arith.constant 0 : index
    %38 = vector.load %arg3[%c1_36, %c1_37, %c0_38, %c0_39] : memref<10x3x128x128xbf16, #tpu.memory_space<vmem>>, vector<1x1x128x128xbf16>
    %39 = vector.shape_cast %38 : vector<1x1x128x128xbf16> to vector<128x128xbf16>
    %cst_40 = arith.constant dense<0.000000e+00> : vector<88x128xf32>
    %40 = tpu.matmul %37, %39, %cst_40 {dimension_numbers = #tpu.dot_dimension_numbers<[1], [0], [0], [1], [0, 0, 1, 1], [], []>} : vector<88x128xbf16>, vector<128x128xbf16>, vector<88x128xf32> -> vector<88x128xf32>
    %41 = arith.addf %36, %40 : vector<88x128xf32>
    %c1_41 = arith.constant 1 : index
    %c2_42 = arith.constant 2 : index
    %c0_43 = arith.constant 0 : index
    %c0_44 = arith.constant 0 : index
    %42 = vector.load %arg3[%c1_41, %c2_42, %c0_43, %c0_44] : memref<10x3x128x128xbf16, #tpu.memory_space<vmem>>, vector<1x1x128x128xbf16>
    %43 = vector.shape_cast %42 : vector<1x1x128x128xbf16> to vector<128x128xbf16>
    %cst_45 = arith.constant dense<0.000000e+00> : vector<88x128xf32>
    %44 = tpu.matmul %33, %43, %cst_45 {dimension_numbers = #tpu.dot_dimension_numbers<[1], [0], [0], [1], [0, 0, 1, 1], [], []>} : vector<88x128xbf16>, vector<128x128xbf16>, vector<88x128xf32> -> vector<88x128xf32>
    %45 = arith.addf %41, %44 : vector<88x128xf32>
    %c1_46 = arith.constant 1 : index
    %c0_47 = arith.constant 0 : index
    %c0_48 = arith.constant 0 : index
    %46 = vector.load %arg4[%c1_46, %c0_47, %c0_48] : memref<10x1x128xf32, #tpu.memory_space<vmem>>, vector<1x1x128xf32>
    %47 = vector.shape_cast %46 : vector<1x1x128xf32> to vector<1x128xf32>
    %48 = vector.broadcast %47 : vector<1x128xf32> to vector<88x128xf32>
    %49 = arith.addf %45, %48 : vector<88x128xf32>
    %cst_49 = arith.constant 0.000000e+00 : f32
    %50 = vector.broadcast %cst_49 : f32 to vector<88x128xf32>
    %51 = arith.maximumf %49, %50 : vector<88x128xf32>
    %52 = vector.broadcast %3 : vector<88x1xf32> to vector<88x128xf32>
    %53 = arith.mulf %51, %52 : vector<88x128xf32>
    %c8_50 = arith.constant 8 : index
    %c0_51 = arith.constant 0 : index
    %54 = vector.load %arg14[%c8_50, %c0_51] : memref<104x128xf32, #tpu.memory_space<vmem>>, vector<88x128xf32>
    tpu.vector_store %arg14[%c8_50, %c0_51], %53 {strides = array<i32>} : memref<104x128xf32, #tpu.memory_space<vmem>>, vector<88x128xf32>,
    %c7_52 = arith.constant 7 : index
    %c0_53 = arith.constant 0 : index
    %55 = vector.load %arg14[%c7_52, %c0_53] : memref<104x128xf32, #tpu.memory_space<vmem>>, vector<88x128xf32>
    %56 = arith.truncf %55 : vector<88x128xf32> to vector<88x128xbf16>
    %c9_54 = arith.constant 9 : index
    %c0_55 = arith.constant 0 : index
    %57 = vector.load %arg14[%c9_54, %c0_55] : memref<104x128xf32, #tpu.memory_space<vmem>>, vector<88x128xf32>
    %58 = arith.truncf %57 : vector<88x128xf32> to vector<88x128xbf16>
    %c2_56 = arith.constant 2 : index
    %c0_57 = arith.constant 0 : index
    %c0_58 = arith.constant 0 : index
    %c0_59 = arith.constant 0 : index
    %59 = vector.load %arg3[%c2_56, %c0_57, %c0_58, %c0_59] : memref<10x3x128x128xbf16, #tpu.memory_space<vmem>>, vector<1x1x128x128xbf16>
    %60 = vector.shape_cast %59 : vector<1x1x128x128xbf16> to vector<128x128xbf16>
    %cst_60 = arith.constant dense<0.000000e+00> : vector<88x128xf32>
    %61 = tpu.matmul %56, %60, %cst_60 {dimension_numbers = #tpu.dot_dimension_numbers<[1], [0], [0], [1], [0, 0, 1, 1], [], []>} : vector<88x128xbf16>, vector<128x128xbf16>, vector<88x128xf32> -> vector<88x128xf32>
    %62 = arith.truncf %53 : vector<88x128xf32> to vector<88x128xbf16>
    %c2_61 = arith.constant 2 : index
    %c1_62 = arith.constant 1 : index
    %c0_63 = arith.constant 0 : index
    %c0_64 = arith.constant 0 : index
    %63 = vector.load %arg3[%c2_61, %c1_62, %c0_63, %c0_64] : memref<10x3x128x128xbf16, #tpu.memory_space<vmem>>, vector<1x1x128x128xbf16>
    %64 = vector.shape_cast %63 : vector<1x1x128x128xbf16> to vector<128x128xbf16>
    %cst_65 = arith.constant dense<0.000000e+00> : vector<88x128xf32>
    %65 = tpu.matmul %62, %64, %cst_65 {dimension_numbers = #tpu.dot_dimension_numbers<[1], [0], [0], [1], [0, 0, 1, 1], [], []>} : vector<88x128xbf16>, vector<128x128xbf16>, vector<88x128xf32> -> vector<88x128xf32>
    %66 = arith.addf %61, %65 : vector<88x128xf32>
    %c2_66 = arith.constant 2 : index
    %c2_67 = arith.constant 2 : index
    %c0_68 = arith.constant 0 : index
    %c0_69 = arith.constant 0 : index
    %67 = vector.load %arg3[%c2_66, %c2_67, %c0_68, %c0_69] : memref<10x3x128x128xbf16, #tpu.memory_space<vmem>>, vector<1x1x128x128xbf16>
    %68 = vector.shape_cast %67 : vector<1x1x128x128xbf16> to vector<128x128xbf16>
    %cst_70 = arith.constant dense<0.000000e+00> : vector<88x128xf32>
    %69 = tpu.matmul %58, %68, %cst_70 {dimension_numbers = #tpu.dot_dimension_numbers<[1], [0], [0], [1], [0, 0, 1, 1], [], []>} : vector<88x128xbf16>, vector<128x128xbf16>, vector<88x128xf32> -> vector<88x128xf32>
    %70 = arith.addf %66, %69 : vector<88x128xf32>
    %c2_71 = arith.constant 2 : index
    %c0_72 = arith.constant 0 : index
    %c0_73 = arith.constant 0 : index
    %71 = vector.load %arg4[%c2_71, %c0_72, %c0_73] : memref<10x1x128xf32, #tpu.memory_space<vmem>>, vector<1x1x128xf32>
    %72 = vector.shape_cast %71 : vector<1x1x128xf32> to vector<1x128xf32>
    %73 = vector.broadcast %72 : vector<1x128xf32> to vector<88x128xf32>
    %74 = arith.addf %70, %73 : vector<88x128xf32>
    %cst_74 = arith.constant 0.000000e+00 : f32
    %75 = vector.broadcast %cst_74 : f32 to vector<88x128xf32>
    %76 = arith.maximumf %74, %75 : vector<88x128xf32>
    %77 = vector.broadcast %3 : vector<88x1xf32> to vector<88x128xf32>
    %78 = arith.mulf %76, %77 : vector<88x128xf32>
    %c8_75 = arith.constant 8 : index
    %c0_76 = arith.constant 0 : index
    %79 = vector.load %arg14[%c8_75, %c0_76] : memref<104x128xf32, #tpu.memory_space<vmem>>, vector<88x128xf32>
    tpu.vector_store %arg14[%c8_75, %c0_76], %78 {strides = array<i32>} : memref<104x128xf32, #tpu.memory_space<vmem>>, vector<88x128xf32>,
    %c7_77 = arith.constant 7 : index
    %c0_78 = arith.constant 0 : index
    %80 = vector.load %arg14[%c7_77, %c0_78] : memref<104x128xf32, #tpu.memory_space<vmem>>, vector<88x128xf32>
    %81 = arith.truncf %80 : vector<88x128xf32> to vector<88x128xbf16>
    %c9_79 = arith.constant 9 : index
    %c0_80 = arith.constant 0 : index
    %82 = vector.load %arg14[%c9_79, %c0_80] : memref<104x128xf32, #tpu.memory_space<vmem>>, vector<88x128xf32>
    %83 = arith.truncf %82 : vector<88x128xf32> to vector<88x128xbf16>
    %c3 = arith.constant 3 : index
    %c0_81 = arith.constant 0 : index
    %c0_82 = arith.constant 0 : index
    %c0_83 = arith.constant 0 : index
    %84 = vector.load %arg3[%c3, %c0_81, %c0_82, %c0_83] : memref<10x3x128x128xbf16, #tpu.memory_space<vmem>>, vector<1x1x128x128xbf16>
    %85 = vector.shape_cast %84 : vector<1x1x128x128xbf16> to vector<128x128xbf16>
    %cst_84 = arith.constant dense<0.000000e+00> : vector<88x128xf32>
    %86 = tpu.matmul %81, %85, %cst_84 {dimension_numbers = #tpu.dot_dimension_numbers<[1], [0], [0], [1], [0, 0, 1, 1], [], []>} : vector<88x128xbf16>, vector<128x128xbf16>, vector<88x128xf32> -> vector<88x128xf32>
    %87 = arith.truncf %78 : vector<88x128xf32> to vector<88x128xbf16>
    %c3_85 = arith.constant 3 : index
    %c1_86 = arith.constant 1 : index
    %c0_87 = arith.constant 0 : index
    %c0_88 = arith.constant 0 : index
    %88 = vector.load %arg3[%c3_85, %c1_86, %c0_87, %c0_88] : memref<10x3x128x128xbf16, #tpu.memory_space<vmem>>, vector<1x1x128x128xbf16>
    %89 = vector.shape_cast %88 : vector<1x1x128x128xbf16> to vector<128x128xbf16>
    %cst_89 = arith.constant dense<0.000000e+00> : vector<88x128xf32>
    %90 = tpu.matmul %87, %89, %cst_89 {dimension_numbers = #tpu.dot_dimension_numbers<[1], [0], [0], [1], [0, 0, 1, 1], [], []>} : vector<88x128xbf16>, vector<128x128xbf16>, vector<88x128xf32> -> vector<88x128xf32>
    %91 = arith.addf %86, %90 : vector<88x128xf32>
    %c3_90 = arith.constant 3 : index
    %c2_91 = arith.constant 2 : index
    %c0_92 = arith.constant 0 : index
    %c0_93 = arith.constant 0 : index
    %92 = vector.load %arg3[%c3_90, %c2_91, %c0_92, %c0_93] : memref<10x3x128x128xbf16, #tpu.memory_space<vmem>>, vector<1x1x128x128xbf16>
    %93 = vector.shape_cast %92 : vector<1x1x128x128xbf16> to vector<128x128xbf16>
    %cst_94 = arith.constant dense<0.000000e+00> : vector<88x128xf32>
    %94 = tpu.matmul %83, %93, %cst_94 {dimension_numbers = #tpu.dot_dimension_numbers<[1], [0], [0], [1], [0, 0, 1, 1], [], []>} : vector<88x128xbf16>, vector<128x128xbf16>, vector<88x128xf32> -> vector<88x128xf32>
    %95 = arith.addf %91, %94 : vector<88x128xf32>
    %c3_95 = arith.constant 3 : index
    %c0_96 = arith.constant 0 : index
    %c0_97 = arith.constant 0 : index
    %96 = vector.load %arg4[%c3_95, %c0_96, %c0_97] : memref<10x1x128xf32, #tpu.memory_space<vmem>>, vector<1x1x128xf32>
    %97 = vector.shape_cast %96 : vector<1x1x128xf32> to vector<1x128xf32>
    %98 = vector.broadcast %97 : vector<1x128xf32> to vector<88x128xf32>
    %99 = arith.addf %95, %98 : vector<88x128xf32>
    %cst_98 = arith.constant 0.000000e+00 : f32
    %100 = vector.broadcast %cst_98 : f32 to vector<88x128xf32>
    %101 = arith.maximumf %99, %100 : vector<88x128xf32>
    %102 = vector.broadcast %3 : vector<88x1xf32> to vector<88x128xf32>
    %103 = arith.mulf %101, %102 : vector<88x128xf32>
    %c8_99 = arith.constant 8 : index
    %c0_100 = arith.constant 0 : index
    %104 = vector.load %arg14[%c8_99, %c0_100] : memref<104x128xf32, #tpu.memory_space<vmem>>, vector<88x128xf32>
    tpu.vector_store %arg14[%c8_99, %c0_100], %103 {strides = array<i32>} : memref<104x128xf32, #tpu.memory_space<vmem>>, vector<88x128xf32>,
    %c7_101 = arith.constant 7 : index
    %c0_102 = arith.constant 0 : index
    %105 = vector.load %arg14[%c7_101, %c0_102] : memref<104x128xf32, #tpu.memory_space<vmem>>, vector<88x128xf32>
    %106 = arith.truncf %105 : vector<88x128xf32> to vector<88x128xbf16>
    %c9_103 = arith.constant 9 : index
    %c0_104 = arith.constant 0 : index
    %107 = vector.load %arg14[%c9_103, %c0_104] : memref<104x128xf32, #tpu.memory_space<vmem>>, vector<88x128xf32>
    %108 = arith.truncf %107 : vector<88x128xf32> to vector<88x128xbf16>
    %c4 = arith.constant 4 : index
    %c0_105 = arith.constant 0 : index
    %c0_106 = arith.constant 0 : index
    %c0_107 = arith.constant 0 : index
    %109 = vector.load %arg3[%c4, %c0_105, %c0_106, %c0_107] : memref<10x3x128x128xbf16, #tpu.memory_space<vmem>>, vector<1x1x128x128xbf16>
    %110 = vector.shape_cast %109 : vector<1x1x128x128xbf16> to vector<128x128xbf16>
    %cst_108 = arith.constant dense<0.000000e+00> : vector<88x128xf32>
    %111 = tpu.matmul %106, %110, %cst_108 {dimension_numbers = #tpu.dot_dimension_numbers<[1], [0], [0], [1], [0, 0, 1, 1], [], []>} : vector<88x128xbf16>, vector<128x128xbf16>, vector<88x128xf32> -> vector<88x128xf32>
    %112 = arith.truncf %103 : vector<88x128xf32> to vector<88x128xbf16>
    %c4_109 = arith.constant 4 : index
    %c1_110 = arith.constant 1 : index
    %c0_111 = arith.constant 0 : index
    %c0_112 = arith.constant 0 : index
    %113 = vector.load %arg3[%c4_109, %c1_110, %c0_111, %c0_112] : memref<10x3x128x128xbf16, #tpu.memory_space<vmem>>, vector<1x1x128x128xbf16>
    %114 = vector.shape_cast %113 : vector<1x1x128x128xbf16> to vector<128x128xbf16>
    %cst_113 = arith.constant dense<0.000000e+00> : vector<88x128xf32>
    %115 = tpu.matmul %112, %114, %cst_113 {dimension_numbers = #tpu.dot_dimension_numbers<[1], [0], [0], [1], [0, 0, 1, 1], [], []>} : vector<88x128xbf16>, vector<128x128xbf16>, vector<88x128xf32> -> vector<88x128xf32>
    %116 = arith.addf %111, %115 : vector<88x128xf32>
    %c4_114 = arith.constant 4 : index
    %c2_115 = arith.constant 2 : index
    %c0_116 = arith.constant 0 : index
    %c0_117 = arith.constant 0 : index
    %117 = vector.load %arg3[%c4_114, %c2_115, %c0_116, %c0_117] : memref<10x3x128x128xbf16, #tpu.memory_space<vmem>>, vector<1x1x128x128xbf16>
    %118 = vector.shape_cast %117 : vector<1x1x128x128xbf16> to vector<128x128xbf16>
    %cst_118 = arith.constant dense<0.000000e+00> : vector<88x128xf32>
    %119 = tpu.matmul %108, %118, %cst_118 {dimension_numbers = #tpu.dot_dimension_numbers<[1], [0], [0], [1], [0, 0, 1, 1], [], []>} : vector<88x128xbf16>, vector<128x128xbf16>, vector<88x128xf32> -> vector<88x128xf32>
    %120 = arith.addf %116, %119 : vector<88x128xf32>
    %c4_119 = arith.constant 4 : index
    %c0_120 = arith.constant 0 : index
    %c0_121 = arith.constant 0 : index
    %121 = vector.load %arg4[%c4_119, %c0_120, %c0_121] : memref<10x1x128xf32, #tpu.memory_space<vmem>>, vector<1x1x128xf32>
    %122 = vector.shape_cast %121 : vector<1x1x128xf32> to vector<1x128xf32>
    %123 = vector.broadcast %122 : vector<1x128xf32> to vector<88x128xf32>
    %124 = arith.addf %120, %123 : vector<88x128xf32>
    %cst_122 = arith.constant 0.000000e+00 : f32
    %125 = vector.broadcast %cst_122 : f32 to vector<88x128xf32>
    %126 = arith.maximumf %124, %125 : vector<88x128xf32>
    %127 = vector.broadcast %3 : vector<88x1xf32> to vector<88x128xf32>
    %128 = arith.mulf %126, %127 : vector<88x128xf32>
    %c8_123 = arith.constant 8 : index
    %c0_124 = arith.constant 0 : index
    %129 = vector.load %arg14[%c8_123, %c0_124] : memref<104x128xf32, #tpu.memory_space<vmem>>, vector<88x128xf32>
    tpu.vector_store %arg14[%c8_123, %c0_124], %128 {strides = array<i32>} : memref<104x128xf32, #tpu.memory_space<vmem>>, vector<88x128xf32>,
    %c7_125 = arith.constant 7 : index
    %c0_126 = arith.constant 0 : index
    %130 = vector.load %arg14[%c7_125, %c0_126] : memref<104x128xf32, #tpu.memory_space<vmem>>, vector<88x128xf32>
    %131 = arith.truncf %130 : vector<88x128xf32> to vector<88x128xbf16>
    %c9_127 = arith.constant 9 : index
    %c0_128 = arith.constant 0 : index
    %132 = vector.load %arg14[%c9_127, %c0_128] : memref<104x128xf32, #tpu.memory_space<vmem>>, vector<88x128xf32>
    %133 = arith.truncf %132 : vector<88x128xf32> to vector<88x128xbf16>
    %c5 = arith.constant 5 : index
    %c0_129 = arith.constant 0 : index
    %c0_130 = arith.constant 0 : index
    %c0_131 = arith.constant 0 : index
    %134 = vector.load %arg3[%c5, %c0_129, %c0_130, %c0_131] : memref<10x3x128x128xbf16, #tpu.memory_space<vmem>>, vector<1x1x128x128xbf16>
    %135 = vector.shape_cast %134 : vector<1x1x128x128xbf16> to vector<128x128xbf16>
    %cst_132 = arith.constant dense<0.000000e+00> : vector<88x128xf32>
    %136 = tpu.matmul %131, %135, %cst_132 {dimension_numbers = #tpu.dot_dimension_numbers<[1], [0], [0], [1], [0, 0, 1, 1], [], []>} : vector<88x128xbf16>, vector<128x128xbf16>, vector<88x128xf32> -> vector<88x128xf32>
    %137 = arith.truncf %128 : vector<88x128xf32> to vector<88x128xbf16>
    %c5_133 = arith.constant 5 : index
    %c1_134 = arith.constant 1 : index
    %c0_135 = arith.constant 0 : index
    %c0_136 = arith.constant 0 : index
    %138 = vector.load %arg3[%c5_133, %c1_134, %c0_135, %c0_136] : memref<10x3x128x128xbf16, #tpu.memory_space<vmem>>, vector<1x1x128x128xbf16>
    %139 = vector.shape_cast %138 : vector<1x1x128x128xbf16> to vector<128x128xbf16>
    %cst_137 = arith.constant dense<0.000000e+00> : vector<88x128xf32>
    %140 = tpu.matmul %137, %139, %cst_137 {dimension_numbers = #tpu.dot_dimension_numbers<[1], [0], [0], [1], [0, 0, 1, 1], [], []>} : vector<88x128xbf16>, vector<128x128xbf16>, vector<88x128xf32> -> vector<88x128xf32>
    %141 = arith.addf %136, %140 : vector<88x128xf32>
    %c5_138 = arith.constant 5 : index
    %c2_139 = arith.constant 2 : index
    %c0_140 = arith.constant 0 : index
    %c0_141 = arith.constant 0 : index
    %142 = vector.load %arg3[%c5_138, %c2_139, %c0_140, %c0_141] : memref<10x3x128x128xbf16, #tpu.memory_space<vmem>>, vector<1x1x128x128xbf16>
    %143 = vector.shape_cast %142 : vector<1x1x128x128xbf16> to vector<128x128xbf16>
    %cst_142 = arith.constant dense<0.000000e+00> : vector<88x128xf32>
    %144 = tpu.matmul %133, %143, %cst_142 {dimension_numbers = #tpu.dot_dimension_numbers<[1], [0], [0], [1], [0, 0, 1, 1], [], []>} : vector<88x128xbf16>, vector<128x128xbf16>, vector<88x128xf32> -> vector<88x128xf32>
    %145 = arith.addf %141, %144 : vector<88x128xf32>
    %c5_143 = arith.constant 5 : index
    %c0_144 = arith.constant 0 : index
    %c0_145 = arith.constant 0 : index
    %146 = vector.load %arg4[%c5_143, %c0_144, %c0_145] : memref<10x1x128xf32, #tpu.memory_space<vmem>>, vector<1x1x128xf32>
    %147 = vector.shape_cast %146 : vector<1x1x128xf32> to vector<1x128xf32>
    %148 = vector.broadcast %147 : vector<1x128xf32> to vector<88x128xf32>
    %149 = arith.addf %145, %148 : vector<88x128xf32>
    %cst_146 = arith.constant 0.000000e+00 : f32
    %150 = vector.broadcast %cst_146 : f32 to vector<88x128xf32>
    %151 = arith.maximumf %149, %150 : vector<88x128xf32>
    %152 = vector.broadcast %3 : vector<88x1xf32> to vector<88x128xf32>
    %153 = arith.mulf %151, %152 : vector<88x128xf32>
    %c8_147 = arith.constant 8 : index
    %c0_148 = arith.constant 0 : index
    %154 = vector.load %arg14[%c8_147, %c0_148] : memref<104x128xf32, #tpu.memory_space<vmem>>, vector<88x128xf32>
    tpu.vector_store %arg14[%c8_147, %c0_148], %153 {strides = array<i32>} : memref<104x128xf32, #tpu.memory_space<vmem>>, vector<88x128xf32>,
    %c7_149 = arith.constant 7 : index
    %c0_150 = arith.constant 0 : index
    %155 = vector.load %arg14[%c7_149, %c0_150] : memref<104x128xf32, #tpu.memory_space<vmem>>, vector<88x128xf32>
    %156 = arith.truncf %155 : vector<88x128xf32> to vector<88x128xbf16>
    %c9_151 = arith.constant 9 : index
    %c0_152 = arith.constant 0 : index
    %157 = vector.load %arg14[%c9_151, %c0_152] : memref<104x128xf32, #tpu.memory_space<vmem>>, vector<88x128xf32>
    %158 = arith.truncf %157 : vector<88x128xf32> to vector<88x128xbf16>
    %c6 = arith.constant 6 : index
    %c0_153 = arith.constant 0 : index
    %c0_154 = arith.constant 0 : index
    %c0_155 = arith.constant 0 : index
    %159 = vector.load %arg3[%c6, %c0_153, %c0_154, %c0_155] : memref<10x3x128x128xbf16, #tpu.memory_space<vmem>>, vector<1x1x128x128xbf16>
    %160 = vector.shape_cast %159 : vector<1x1x128x128xbf16> to vector<128x128xbf16>
    %cst_156 = arith.constant dense<0.000000e+00> : vector<88x128xf32>
    %161 = tpu.matmul %156, %160, %cst_156 {dimension_numbers = #tpu.dot_dimension_numbers<[1], [0], [0], [1], [0, 0, 1, 1], [], []>} : vector<88x128xbf16>, vector<128x128xbf16>, vector<88x128xf32> -> vector<88x128xf32>
    %162 = arith.truncf %153 : vector<88x128xf32> to vector<88x128xbf16>
    %c6_157 = arith.constant 6 : index
    %c1_158 = arith.constant 1 : index
    %c0_159 = arith.constant 0 : index
    %c0_160 = arith.constant 0 : index
    %163 = vector.load %arg3[%c6_157, %c1_158, %c0_159, %c0_160] : memref<10x3x128x128xbf16, #tpu.memory_space<vmem>>, vector<1x1x128x128xbf16>
    %164 = vector.shape_cast %163 : vector<1x1x128x128xbf16> to vector<128x128xbf16>
    %cst_161 = arith.constant dense<0.000000e+00> : vector<88x128xf32>
    %165 = tpu.matmul %162, %164, %cst_161 {dimension_numbers = #tpu.dot_dimension_numbers<[1], [0], [0], [1], [0, 0, 1, 1], [], []>} : vector<88x128xbf16>, vector<128x128xbf16>, vector<88x128xf32> -> vector<88x128xf32>
    %166 = arith.addf %161, %165 : vector<88x128xf32>
    %c6_162 = arith.constant 6 : index
    %c2_163 = arith.constant 2 : index
    %c0_164 = arith.constant 0 : index
    %c0_165 = arith.constant 0 : index
    %167 = vector.load %arg3[%c6_162, %c2_163, %c0_164, %c0_165] : memref<10x3x128x128xbf16, #tpu.memory_space<vmem>>, vector<1x1x128x128xbf16>
    %168 = vector.shape_cast %167 : vector<1x1x128x128xbf16> to vector<128x128xbf16>
    %cst_166 = arith.constant dense<0.000000e+00> : vector<88x128xf32>
    %169 = tpu.matmul %158, %168, %cst_166 {dimension_numbers = #tpu.dot_dimension_numbers<[1], [0], [0], [1], [0, 0, 1, 1], [], []>} : vector<88x128xbf16>, vector<128x128xbf16>, vector<88x128xf32> -> vector<88x128xf32>
    %170 = arith.addf %166, %169 : vector<88x128xf32>
    %c6_167 = arith.constant 6 : index
    %c0_168 = arith.constant 0 : index
    %c0_169 = arith.constant 0 : index
    %171 = vector.load %arg4[%c6_167, %c0_168, %c0_169] : memref<10x1x128xf32, #tpu.memory_space<vmem>>, vector<1x1x128xf32>
    %172 = vector.shape_cast %171 : vector<1x1x128xf32> to vector<1x128xf32>
    %173 = vector.broadcast %172 : vector<1x128xf32> to vector<88x128xf32>
    %174 = arith.addf %170, %173 : vector<88x128xf32>
    %cst_170 = arith.constant 0.000000e+00 : f32
    %175 = vector.broadcast %cst_170 : f32 to vector<88x128xf32>
    %176 = arith.maximumf %174, %175 : vector<88x128xf32>
    %177 = vector.broadcast %3 : vector<88x1xf32> to vector<88x128xf32>
    %178 = arith.mulf %176, %177 : vector<88x128xf32>
    %c8_171 = arith.constant 8 : index
    %c0_172 = arith.constant 0 : index
    %179 = vector.load %arg14[%c8_171, %c0_172] : memref<104x128xf32, #tpu.memory_space<vmem>>, vector<88x128xf32>
    tpu.vector_store %arg14[%c8_171, %c0_172], %178 {strides = array<i32>} : memref<104x128xf32, #tpu.memory_space<vmem>>, vector<88x128xf32>,
    %c7_173 = arith.constant 7 : index
    %c0_174 = arith.constant 0 : index
    %180 = vector.load %arg14[%c7_173, %c0_174] : memref<104x128xf32, #tpu.memory_space<vmem>>, vector<88x128xf32>
    %181 = arith.truncf %180 : vector<88x128xf32> to vector<88x128xbf16>
    %c9_175 = arith.constant 9 : index
    %c0_176 = arith.constant 0 : index
    %182 = vector.load %arg14[%c9_175, %c0_176] : memref<104x128xf32, #tpu.memory_space<vmem>>, vector<88x128xf32>
    %183 = arith.truncf %182 : vector<88x128xf32> to vector<88x128xbf16>
    %c7_177 = arith.constant 7 : index
    %c0_178 = arith.constant 0 : index
    %c0_179 = arith.constant 0 : index
    %c0_180 = arith.constant 0 : index
    %184 = vector.load %arg3[%c7_177, %c0_178, %c0_179, %c0_180] : memref<10x3x128x128xbf16, #tpu.memory_space<vmem>>, vector<1x1x128x128xbf16>
    %185 = vector.shape_cast %184 : vector<1x1x128x128xbf16> to vector<128x128xbf16>
    %cst_181 = arith.constant dense<0.000000e+00> : vector<88x128xf32>
    %186 = tpu.matmul %181, %185, %cst_181 {dimension_numbers = #tpu.dot_dimension_numbers<[1], [0], [0], [1], [0, 0, 1, 1], [], []>} : vector<88x128xbf16>, vector<128x128xbf16>, vector<88x128xf32> -> vector<88x128xf32>
    %187 = arith.truncf %178 : vector<88x128xf32> to vector<88x128xbf16>
    %c7_182 = arith.constant 7 : index
    %c1_183 = arith.constant 1 : index
    %c0_184 = arith.constant 0 : index
    %c0_185 = arith.constant 0 : index
    %188 = vector.load %arg3[%c7_182, %c1_183, %c0_184, %c0_185] : memref<10x3x128x128xbf16, #tpu.memory_space<vmem>>, vector<1x1x128x128xbf16>
    %189 = vector.shape_cast %188 : vector<1x1x128x128xbf16> to vector<128x128xbf16>
    %cst_186 = arith.constant dense<0.000000e+00> : vector<88x128xf32>
    %190 = tpu.matmul %187, %189, %cst_186 {dimension_numbers = #tpu.dot_dimension_numbers<[1], [0], [0], [1], [0, 0, 1, 1], [], []>} : vector<88x128xbf16>, vector<128x128xbf16>, vector<88x128xf32> -> vector<88x128xf32>
    %191 = arith.addf %186, %190 : vector<88x128xf32>
    %c7_187 = arith.constant 7 : index
    %c2_188 = arith.constant 2 : index
    %c0_189 = arith.constant 0 : index
    %c0_190 = arith.constant 0 : index
    %192 = vector.load %arg3[%c7_187, %c2_188, %c0_189, %c0_190] : memref<10x3x128x128xbf16, #tpu.memory_space<vmem>>, vector<1x1x128x128xbf16>
    %193 = vector.shape_cast %192 : vector<1x1x128x128xbf16> to vector<128x128xbf16>
    %cst_191 = arith.constant dense<0.000000e+00> : vector<88x128xf32>
    %194 = tpu.matmul %183, %193, %cst_191 {dimension_numbers = #tpu.dot_dimension_numbers<[1], [0], [0], [1], [0, 0, 1, 1], [], []>} : vector<88x128xbf16>, vector<128x128xbf16>, vector<88x128xf32> -> vector<88x128xf32>
    %195 = arith.addf %191, %194 : vector<88x128xf32>
    %c7_192 = arith.constant 7 : index
    %c0_193 = arith.constant 0 : index
    %c0_194 = arith.constant 0 : index
    %196 = vector.load %arg4[%c7_192, %c0_193, %c0_194] : memref<10x1x128xf32, #tpu.memory_space<vmem>>, vector<1x1x128xf32>
    %197 = vector.shape_cast %196 : vector<1x1x128xf32> to vector<1x128xf32>
    %198 = vector.broadcast %197 : vector<1x128xf32> to vector<88x128xf32>
    %199 = arith.addf %195, %198 : vector<88x128xf32>
    %cst_195 = arith.constant 0.000000e+00 : f32
    %200 = vector.broadcast %cst_195 : f32 to vector<88x128xf32>
    %201 = arith.maximumf %199, %200 : vector<88x128xf32>
    %202 = vector.broadcast %3 : vector<88x1xf32> to vector<88x128xf32>
    %203 = arith.mulf %201, %202 : vector<88x128xf32>
    %c8_196 = arith.constant 8 : index
    %c0_197 = arith.constant 0 : index
    %204 = vector.load %arg14[%c8_196, %c0_197] : memref<104x128xf32, #tpu.memory_space<vmem>>, vector<88x128xf32>
    tpu.vector_store %arg14[%c8_196, %c0_197], %203 {strides = array<i32>} : memref<104x128xf32, #tpu.memory_space<vmem>>, vector<88x128xf32>,
    %c7_198 = arith.constant 7 : index
    %c0_199 = arith.constant 0 : index
    %205 = vector.load %arg14[%c7_198, %c0_199] : memref<104x128xf32, #tpu.memory_space<vmem>>, vector<88x128xf32>
    %206 = arith.truncf %205 : vector<88x128xf32> to vector<88x128xbf16>
    %c9_200 = arith.constant 9 : index
    %c0_201 = arith.constant 0 : index
    %207 = vector.load %arg14[%c9_200, %c0_201] : memref<104x128xf32, #tpu.memory_space<vmem>>, vector<88x128xf32>
    %208 = arith.truncf %207 : vector<88x128xf32> to vector<88x128xbf16>
    %c8_202 = arith.constant 8 : index
    %c0_203 = arith.constant 0 : index
    %c0_204 = arith.constant 0 : index
    %c0_205 = arith.constant 0 : index
    %209 = vector.load %arg3[%c8_202, %c0_203, %c0_204, %c0_205] : memref<10x3x128x128xbf16, #tpu.memory_space<vmem>>, vector<1x1x128x128xbf16>
    %210 = vector.shape_cast %209 : vector<1x1x128x128xbf16> to vector<128x128xbf16>
    %cst_206 = arith.constant dense<0.000000e+00> : vector<88x128xf32>
    %211 = tpu.matmul %206, %210, %cst_206 {dimension_numbers = #tpu.dot_dimension_numbers<[1], [0], [0], [1], [0, 0, 1, 1], [], []>} : vector<88x128xbf16>, vector<128x128xbf16>, vector<88x128xf32> -> vector<88x128xf32>
    %212 = arith.truncf %203 : vector<88x128xf32> to vector<88x128xbf16>
    %c8_207 = arith.constant 8 : index
    %c1_208 = arith.constant 1 : index
    %c0_209 = arith.constant 0 : index
    %c0_210 = arith.constant 0 : index
    %213 = vector.load %arg3[%c8_207, %c1_208, %c0_209, %c0_210] : memref<10x3x128x128xbf16, #tpu.memory_space<vmem>>, vector<1x1x128x128xbf16>
    %214 = vector.shape_cast %213 : vector<1x1x128x128xbf16> to vector<128x128xbf16>
    %cst_211 = arith.constant dense<0.000000e+00> : vector<88x128xf32>
    %215 = tpu.matmul %212, %214, %cst_211 {dimension_numbers = #tpu.dot_dimension_numbers<[1], [0], [0], [1], [0, 0, 1, 1], [], []>} : vector<88x128xbf16>, vector<128x128xbf16>, vector<88x128xf32> -> vector<88x128xf32>
    %216 = arith.addf %211, %215 : vector<88x128xf32>
    %c8_212 = arith.constant 8 : index
    %c2_213 = arith.constant 2 : index
    %c0_214 = arith.constant 0 : index
    %c0_215 = arith.constant 0 : index
    %217 = vector.load %arg3[%c8_212, %c2_213, %c0_214, %c0_215] : memref<10x3x128x128xbf16, #tpu.memory_space<vmem>>, vector<1x1x128x128xbf16>
    %218 = vector.shape_cast %217 : vector<1x1x128x128xbf16> to vector<128x128xbf16>
    %cst_216 = arith.constant dense<0.000000e+00> : vector<88x128xf32>
    %219 = tpu.matmul %208, %218, %cst_216 {dimension_numbers = #tpu.dot_dimension_numbers<[1], [0], [0], [1], [0, 0, 1, 1], [], []>} : vector<88x128xbf16>, vector<128x128xbf16>, vector<88x128xf32> -> vector<88x128xf32>
    %220 = arith.addf %216, %219 : vector<88x128xf32>
    %c8_217 = arith.constant 8 : index
    %c0_218 = arith.constant 0 : index
    %c0_219 = arith.constant 0 : index
    %221 = vector.load %arg4[%c8_217, %c0_218, %c0_219] : memref<10x1x128xf32, #tpu.memory_space<vmem>>, vector<1x1x128xf32>
    %222 = vector.shape_cast %221 : vector<1x1x128xf32> to vector<1x128xf32>
    %223 = vector.broadcast %222 : vector<1x128xf32> to vector<88x128xf32>
    %224 = arith.addf %220, %223 : vector<88x128xf32>
    %cst_220 = arith.constant 0.000000e+00 : f32
    %225 = vector.broadcast %cst_220 : f32 to vector<88x128xf32>
    %226 = arith.maximumf %224, %225 : vector<88x128xf32>
    %227 = vector.broadcast %3 : vector<88x1xf32> to vector<88x128xf32>
    %228 = arith.mulf %226, %227 : vector<88x128xf32>
    %c8_221 = arith.constant 8 : index
    %c0_222 = arith.constant 0 : index
    %229 = vector.load %arg14[%c8_221, %c0_222] : memref<104x128xf32, #tpu.memory_space<vmem>>, vector<88x128xf32>
    tpu.vector_store %arg14[%c8_221, %c0_222], %228 {strides = array<i32>} : memref<104x128xf32, #tpu.memory_space<vmem>>, vector<88x128xf32>,
    %c7_223 = arith.constant 7 : index
    %c0_224 = arith.constant 0 : index
    %230 = vector.load %arg14[%c7_223, %c0_224] : memref<104x128xf32, #tpu.memory_space<vmem>>, vector<88x128xf32>
    %231 = arith.truncf %230 : vector<88x128xf32> to vector<88x128xbf16>
    %c9_225 = arith.constant 9 : index
    %c0_226 = arith.constant 0 : index
    %232 = vector.load %arg14[%c9_225, %c0_226] : memref<104x128xf32, #tpu.memory_space<vmem>>, vector<88x128xf32>
    %233 = arith.truncf %232 : vector<88x128xf32> to vector<88x128xbf16>
    %c9_227 = arith.constant 9 : index
    %c0_228 = arith.constant 0 : index
    %c0_229 = arith.constant 0 : index
    %c0_230 = arith.constant 0 : index
    %234 = vector.load %arg3[%c9_227, %c0_228, %c0_229, %c0_230] : memref<10x3x128x128xbf16, #tpu.memory_space<vmem>>, vector<1x1x128x128xbf16>
    %235 = vector.shape_cast %234 : vector<1x1x128x128xbf16> to vector<128x128xbf16>
    %cst_231 = arith.constant dense<0.000000e+00> : vector<88x128xf32>
    %236 = tpu.matmul %231, %235, %cst_231 {dimension_numbers = #tpu.dot_dimension_numbers<[1], [0], [0], [1], [0, 0, 1, 1], [], []>} : vector<88x128xbf16>, vector<128x128xbf16>, vector<88x128xf32> -> vector<88x128xf32>
    %237 = arith.truncf %228 : vector<88x128xf32> to vector<88x128xbf16>
    %c9_232 = arith.constant 9 : index
    %c1_233 = arith.constant 1 : index
    %c0_234 = arith.constant 0 : index
    %c0_235 = arith.constant 0 : index
    %238 = vector.load %arg3[%c9_232, %c1_233, %c0_234, %c0_235] : memref<10x3x128x128xbf16, #tpu.memory_space<vmem>>, vector<1x1x128x128xbf16>
    %239 = vector.shape_cast %238 : vector<1x1x128x128xbf16> to vector<128x128xbf16>
    %cst_236 = arith.constant dense<0.000000e+00> : vector<88x128xf32>
    %240 = tpu.matmul %237, %239, %cst_236 {dimension_numbers = #tpu.dot_dimension_numbers<[1], [0], [0], [1], [0, 0, 1, 1], [], []>} : vector<88x128xbf16>, vector<128x128xbf16>, vector<88x128xf32> -> vector<88x128xf32>
    %241 = arith.addf %236, %240 : vector<88x128xf32>
    %c9_237 = arith.constant 9 : index
    %c2_238 = arith.constant 2 : index
    %c0_239 = arith.constant 0 : index
    %c0_240 = arith.constant 0 : index
    %242 = vector.load %arg3[%c9_237, %c2_238, %c0_239, %c0_240] : memref<10x3x128x128xbf16, #tpu.memory_space<vmem>>, vector<1x1x128x128xbf16>
    %243 = vector.shape_cast %242 : vector<1x1x128x128xbf16> to vector<128x128xbf16>
    %cst_241 = arith.constant dense<0.000000e+00> : vector<88x128xf32>
    %244 = tpu.matmul %233, %243, %cst_241 {dimension_numbers = #tpu.dot_dimension_numbers<[1], [0], [0], [1], [0, 0, 1, 1], [], []>} : vector<88x128xbf16>, vector<128x128xbf16>, vector<88x128xf32> -> vector<88x128xf32>
    %245 = arith.addf %241, %244 : vector<88x128xf32>
    %c9_242 = arith.constant 9 : index
    %c0_243 = arith.constant 0 : index
    %c0_244 = arith.constant 0 : index
    %246 = vector.load %arg4[%c9_242, %c0_243, %c0_244] : memref<10x1x128xf32, #tpu.memory_space<vmem>>, vector<1x1x128xf32>
    %247 = vector.shape_cast %246 : vector<1x1x128xf32> to vector<1x128xf32>
    %248 = vector.broadcast %247 : vector<1x128xf32> to vector<88x128xf32>
    %249 = arith.addf %245, %248 : vector<88x128xf32>
    %cst_245 = arith.constant 0.000000e+00 : f32
    %250 = vector.broadcast %cst_245 : f32 to vector<88x128xf32>
    %251 = arith.maximumf %249, %250 : vector<88x128xf32>
    %252 = vector.broadcast %3 : vector<88x1xf32> to vector<88x128xf32>
    %253 = arith.mulf %251, %252 : vector<88x128xf32>
    %254 = arith.truncf %253 : vector<88x128xf32> to vector<88x128xbf16>
    %c0_246 = arith.constant 0 : index
    %c0_247 = arith.constant 0 : index
    %255 = vector.load %arg5[%c0_246, %c0_247] : memref<128x90xbf16, #tpu.memory_space<vmem>>, vector<128x90xbf16>
    %cst_248 = arith.constant dense<0.000000e+00> : vector<88x90xf32>
    %256 = tpu.matmul %254, %255, %cst_248 {dimension_numbers = #tpu.dot_dimension_numbers<[1], [0], [0], [1], [0, 0, 1, 1], [], []>} : vector<88x128xbf16>, vector<128x90xbf16>, vector<88x90xf32> -> vector<88x90xf32>
    %c0_249 = arith.constant 0 : index
    %c0_250 = arith.constant 0 : index
    %257 = vector.load %arg6[%c0_249, %c0_250] : memref<88x90xf32, #tpu.memory_space<vmem>>, vector<88x90xf32>
    %258 = arith.mulf %256, %257 : vector<88x90xf32>
    %259 = arith.truncf %258 : vector<88x90xf32> to vector<88x90xbf16>
    %c0_251 = arith.constant 0 : index
    %c0_252 = arith.constant 0 : index
    %260 = vector.load %arg7[%c0_251, %c0_252] : memref<8x88xbf16, #tpu.memory_space<vmem>>, vector<8x88xbf16>
    %cst_253 = arith.constant dense<0.000000e+00> : vector<8x90xf32>
    %261 = tpu.matmul %260, %259, %cst_253 {dimension_numbers = #tpu.dot_dimension_numbers<[1], [0], [0], [1], [0, 0, 1, 1], [], []>} : vector<8x88xbf16>, vector<88x90xbf16>, vector<8x90xf32> -> vector<8x90xf32>
    %262 = arith.truncf %261 : vector<8x90xf32> to vector<8x90xbf16>
    %c0_254 = arith.constant 0 : index
    %c0_255 = arith.constant 0 : index
    %263 = vector.load %arg8[%c0_254, %c0_255] : memref<90x10xbf16, #tpu.memory_space<vmem>>, vector<90x10xbf16>
    %cst_256 = arith.constant dense<0.000000e+00> : vector<8x10xf32>
    %264 = tpu.matmul %262, %263, %cst_256 {dimension_numbers = #tpu.dot_dimension_numbers<[1], [0], [0], [1], [0, 0, 1, 1], [], []>} : vector<8x90xbf16>, vector<90x10xbf16>, vector<8x10xf32> -> vector<8x10xf32>
    %c0_257 = arith.constant 0 : index
    %c0_258 = arith.constant 0 : index
    %265 = vector.load %arg9[%c0_257, %c0_258] : memref<1x10xf32, #tpu.memory_space<vmem>>, vector<1x10xf32>
    %266 = vector.broadcast %265 : vector<1x10xf32> to vector<8x10xf32>
    %267 = arith.addf %264, %266 : vector<8x10xf32>
    %cst_259 = arith.constant 0.000000e+00 : f32
    %268 = vector.broadcast %cst_259 : f32 to vector<8x10xf32>
    %269 = arith.maximumf %267, %268 : vector<8x10xf32>
    %c0_260 = arith.constant 0 : index
    %c0_261 = arith.constant 0 : index
    %270 = vector.load %arg10[%c0_260, %c0_261] : memref<10x1xf32, #tpu.memory_space<vmem>>, vector<10x1xf32>
    %cst_262 = arith.constant dense<0.000000e+00> : vector<8x1xf32>
    %271 = tpu.matmul %269, %270, %cst_262 {dimension_numbers = #tpu.dot_dimension_numbers<[1], [0], [0], [1], [0, 0, 1, 1], [], []>} : vector<8x10xf32>, vector<10x1xf32>, vector<8x1xf32> -> vector<8x1xf32>
    %c0_263 = arith.constant 0 : index
    %c0_264 = arith.constant 0 : index
    %272 = vector.load %arg11[%c0_263, %c0_264] : memref<1x1xf32, #tpu.memory_space<vmem>>, vector<1x1xf32>
    %273 = vector.broadcast %272 : vector<1x1xf32> to vector<8x1xf32>
    %274 = arith.addf %271, %273 : vector<8x1xf32>
    %c0_265 = arith.constant 0 : index
    %c0_266 = arith.constant 0 : index
    %275 = vector.load %arg12[%c0_265, %c0_266] : memref<8x8xf32, #tpu.memory_space<vmem>>, vector<8x8xf32>
    %276 = vector.broadcast %274 : vector<8x1xf32> to vector<8x8xf32>
    %277 = arith.mulf %276, %275 : vector<8x8xf32>
    %cst_267 = arith.constant dense<0.000000e+00> : vector<8xf32>
    %278 = vector.multi_reduction <add>, %277, %cst_267 [0] : vector<8x8xf32> to vector<8xf32>
    %279 = vector.shape_cast %278 : vector<8xf32> to vector<1x8xf32>
    %c0_268 = arith.constant 0 : index
    %c0_269 = arith.constant 0 : index
    %c0_270 = arith.constant 0 : index
    %280 = vector.load %arg13[%c0_268, %c0_269, %c0_270] : memref<1x1x8xf32, #tpu.memory_space<vmem>>, vector<1x1x8xf32>
    %281 = vector.shape_cast %280 : vector<1x1x8xf32> to vector<1x8xf32>
    %282 = vector.shape_cast %279 : vector<1x8xf32> to vector<1x1x8xf32>
    tpu.vector_store %arg13[%c0_268, %c0_269, %c0_270], %282 {strides = array<i32>} : memref<1x1x8xf32, #tpu.memory_space<vmem>>, vector<1x1x8xf32>,
    return
  }
  func.func @transform_0(%arg0: i32) -> (i32, i32, i32) {
    %c0_i32 = arith.constant 0 : i32
    %c0_i32_0 = arith.constant 0 : i32
    %c0_i32_1 = arith.constant 0 : i32
    return %arg0, %c0_i32, %c0_i32_0 : i32, i32, i32
  }
  func.func @transform_1(%arg0: i32) -> (i32, i32) {
    %c0_i32 = arith.constant 0 : i32
    %c0_i32_0 = arith.constant 0 : i32
    %c0_i32_1 = arith.constant 0 : i32
    return %c0_i32, %c0_i32_0 : i32, i32
  }
  func.func @transform_2(%arg0: i32) -> (i32, i32, i32, i32) {
    %c0_i32 = arith.constant 0 : i32
    %c0_i32_0 = arith.constant 0 : i32
    %c0_i32_1 = arith.constant 0 : i32
    %c0_i32_2 = arith.constant 0 : i32
    %c0_i32_3 = arith.constant 0 : i32
    return %c0_i32, %c0_i32_0, %c0_i32_1, %c0_i32_2 : i32, i32, i32, i32
  }
  func.func @transform_3(%arg0: i32) -> (i32, i32, i32) {
    %c0_i32 = arith.constant 0 : i32
    %c0_i32_0 = arith.constant 0 : i32
    %c0_i32_1 = arith.constant 0 : i32
    %c0_i32_2 = arith.constant 0 : i32
    return %c0_i32, %c0_i32_0, %c0_i32_1 : i32, i32, i32
  }
  func.func @transform_4(%arg0: i32) -> (i32, i32) {
    %c0_i32 = arith.constant 0 : i32
    %c0_i32_0 = arith.constant 0 : i32
    %c0_i32_1 = arith.constant 0 : i32
    return %c0_i32, %c0_i32_0 : i32, i32
  }
  func.func @transform_5(%arg0: i32) -> (i32, i32) {
    %c0_i32 = arith.constant 0 : i32
    %c0_i32_0 = arith.constant 0 : i32
    %c0_i32_1 = arith.constant 0 : i32
    return %c0_i32, %c0_i32_0 : i32, i32
  }
  func.func @transform_6(%arg0: i32) -> (i32, i32) {
    %c0_i32 = arith.constant 0 : i32
    %c0_i32_0 = arith.constant 0 : i32
    %c0_i32_1 = arith.constant 0 : i32
    return %c0_i32, %c0_i32_0 : i32, i32
  }
  func.func @transform_7(%arg0: i32) -> (i32, i32) {
    %c0_i32 = arith.constant 0 : i32
    %c0_i32_0 = arith.constant 0 : i32
    %c0_i32_1 = arith.constant 0 : i32
    return %c0_i32, %c0_i32_0 : i32, i32
  }
  func.func @transform_8(%arg0: i32) -> (i32, i32) {
    %c0_i32 = arith.constant 0 : i32
    %c0_i32_0 = arith.constant 0 : i32
    %c0_i32_1 = arith.constant 0 : i32
    return %c0_i32, %c0_i32_0 : i32, i32
  }
  func.func @transform_9(%arg0: i32) -> (i32, i32) {
    %c0_i32 = arith.constant 0 : i32
    %c0_i32_0 = arith.constant 0 : i32
    %c0_i32_1 = arith.constant 0 : i32
    return %c0_i32, %c0_i32_0 : i32, i32
  }
  func.func @transform_10(%arg0: i32) -> (i32, i32) {
    %c0_i32 = arith.constant 0 : i32
    %c0_i32_0 = arith.constant 0 : i32
    %c0_i32_1 = arith.constant 0 : i32
    return %c0_i32, %c0_i32_0 : i32, i32
  }
  func.func @transform_11(%arg0: i32) -> (i32, i32) {
    %c0_i32 = arith.constant 0 : i32
    %c0_i32_0 = arith.constant 0 : i32
    %c0_i32_1 = arith.constant 0 : i32
    return %c0_i32, %c0_i32_0 : i32, i32
  }
  func.func @transform_12(%arg0: i32) -> (i32, i32, i32) {
    %c0_i32 = arith.constant 0 : i32
    %c0_i32_0 = arith.constant 0 : i32
    %c0_i32_1 = arith.constant 0 : i32
    return %arg0, %c0_i32, %c0_i32_0 : i32, i32, i32
  }
}

</mosaic_0001>

<bundles_post_ra>
// kernel: qmodel_forward.1
= control target key start
LH: loop header
LB: loop body
LE: loop exit
PB: predicated region body
PF: predicated region fallthrough
CT: control target
= control target key end

     0   :  { %s8989_s23 = smov 0   ;;  %s10198_s0 = inlined_call_operand.vmem [shape: f32[2,104,128], index: 0, kind: input, shape index: {}]   ;;  %s10199_s1 = inlined_call_operand.vmem [shape: f32[88,1], index: 1, kind: input, shape index: {}]   ;;  %s10200_s2 = inlined_call_operand.vmem [shape: bf16[10,3,128,128], index: 2, kind: input, shape index: {}]   ;;  %s10201_s3 = inlined_call_operand.vmem [shape: f32[10,1,128], index: 3, kind: input, shape index: {}]   ;;  %s10202_s4 = inlined_call_operand.vmem [shape: bf16[128,90], index: 4, kind: input, shape index: {}]   ;;  %s10203_s5 = inlined_call_operand.vmem [shape: f32[88,90], index: 5, kind: input, shape index: {}]   ;;  %s10204_s6 = inlined_call_operand.vmem [shape: bf16[8,88], index: 6, kind: input, shape index: {}]   ;;  %s10205_s7 = inlined_call_operand.vmem [shape: bf16[90,10], index: 7, kind: input, shape index: {}]   ;;  %s10206_s8 = inlined_call_operand.vmem [shape: f32[1,10], index: 8, kind: input, shape index: {}]   ;;  %s10207_s9 = inlined_call_operand.vmem [shape: f32[10,1], index: 9, kind: input, shape index: {}]   ;;  %s10208_s10 = inlined_call_operand.<no memory space> [shape: f32[1,1], index: 10, kind: input, shape index: {}]   ;;  %s10209_s11 = inlined_call_operand.vmem [shape: f32[8,8], index: 11, kind: input, shape index: {}]   ;;  %s10210_s12 = inlined_call_operand.vmem [shape: f32[2,1,8], index: 12, kind: output, shape index: {}]  }
   0x1   :  { %v17_v0 = vstv %s10208_s10 }
   0x2   :  { %18 = vst [vmem:[#allocation3] sm:$0x1] %v17_v0 }
   0x3 LB: > { %s6365_s24 = sadd.s32 4294967295, %s8914_s23   ;;  %p6369_p0 = scmp.ge.s32.totalorder %s8914_s23, 1  ;;  %s8914_s23 = sphi %s8989_s23, %s24_s23  }
   0x4   : > { %p364_p1 = scmp.lt.s32.totalorder %s8914_s23, 3 }
   0x6   : > { %p365_p2 = pnand %p6369_p0, %p364_p1 }
   0x7   : > { %v8654_v1 = vld [vmem:[%s10200_s2 + $0x40] sm:$0xff] (!%p365_p2)   ;;  %p404_p3 = scmp.lt.s32.totalorder (!%p365_p2), %s6365_s24, 1  ;;  %v8655_v2 = vld [vmem:[%s10200_s2 + $0x48] sm:$0xff] (!%p365_p2)   ;;  %v8916_v3 = vmov (!%p365_p2), 0   ;;  %v8656_v4 = vld [vmem:[%s10200_s2 + $0x50] sm:$0xff] (!%p365_p2)   ;;  %vm8918_vm0 = vmmov (!%p365_p2), 0  }
   0x8   : > { %368 = sbr.rel (%p365_p2) target bundleno = 3952 (0xf70), region = 68  ;;  %7567 = vmatprep.subr.bf16.mxu0 (!%p365_p2), %v8654_v1  ;;  %8652 = vset.pattern.permute.xlu0 (!%p365_p2), %v8916_v3  ;;  %v8657_v5 = vld [vmem:[%s10200_s2 + $0x58] sm:$0xff] (!%p365_p2)   ;;  %v8658_v11 = vld [vmem:[%s10200_s2 + $0x60] sm:$0xff] (!%p365_p2)   ;;  %v8659_v16 = vld [vmem:[%s10200_s2 + $0x68] sm:$0xff] (!%p365_p2)   ;;  %vm6066_vm1 = vcmask (!%p365_p2), 1043456   ;;  %vm6062_vm2 = vcmask (!%p365_p2), 719872  }
   0x9   : > { %7568 = vmatpush3.bf16.msra.mxu0 (!%p365_p2), %v8654_v1  ;;  %8653 = vset.pattern.permute.xlu1 (!%p365_p2), %v8916_v3  ;;  %v8660_v20 = vld [vmem:[%s10200_s2 + $0x70] sm:$0xff] (!%p365_p2)   ;;  %v8661_v21 = vld [vmem:[%s10200_s2 + $0x78] sm:$0xff] (!%p365_p2)   ;;  %v8662_v23 = vld [vmem:[%s10200_s2] sm:$0xff] (!%p365_p2)   ;;  %vm6169_vm3 = vcmask (!%p365_p2), 1044480   ;;  %vm6227_vm4 = vcmask (!%p365_p2), 1041408   ;;  %vm8920_vm5 = vmmov (!%p365_p2), 1  }
   0xa   : > { %7569 = vmatprep.subr.bf16.mxu0 (!%p365_p2), %v8655_v2  ;;  %v8663_v26 = vld [vmem:[%s10200_s2 + $0x8] sm:$0xff] (!%p365_p2)   ;;  %v439_v28 = vld [vmem:[%s10199_s1] sm:$0xff] (!%p365_p2)  ;;  %v8664_v29 = vld [vmem:[%s10200_s2 + $0x10] sm:$0xff] (!%p365_p2)   ;;  %vm6165_vm7 = vcmask (!%p365_p2), 736256   ;;  %vm6223_vm8 = vcmask (!%p365_p2), 80896   ;;  %vm6308_vm9 = vcmask (!%p365_p2), 64512  }
   0xb   : > { %977 = vperm.xlu0 (!%p365_p2), %8652, %v439_v28   ;;  %v441_v30 = vld [vmem:[%s10199_s1 + $0x10] sm:$0xff] (!%p365_p2)  ;;  %v440_v31 = vld [vmem:[%s10199_s1 + $0x8] sm:$0xff] (!%p365_p2)  ;;  %v8665_v32 = vld [vmem:[%s10200_s2 + $0x18] sm:$0xff] (!%p365_p2)   ;;  %vm6316_vm10 = vcmask (!%p365_p2), 57344  }
   0xc   : > { %987 = vperm.xlu1 (!%p365_p2), %8653, %v441_v30   ;;  %v442_v34 = vld [vmem:[%s10199_s1 + $0x18] sm:$0xff] (!%p365_p2)  ;;  %v443_v36 = vld [vmem:[%s10199_s1 + $0x20] sm:$0xff] (!%p365_p2)  ;;  %v444_v37 = vld [vmem:[%s10199_s1 + $0x28] sm:$0xff] (!%p365_p2) }
   0xd   : > { %7570 = vmatpush3.bf16.msra.mxu0 (!%p365_p2), %v8655_v2  ;;  %v8666_v39 = vld [vmem:[%s10200_s2 + $0x20] sm:$0xff] (!%p365_p2)   ;;  %v445_v41 = vld [vmem:[%s10199_s1 + $0x30] sm:$0xff] (!%p365_p2)  ;;  %v446_v42 = vld [vmem:[%s10199_s1 + $0x38] sm:$0xff] (!%p365_p2) }
   0xe   : > { %7571 = vmatprep.subr.bf16.mxu0 (!%p365_p2), %v8656_v4  ;;  %v8667_v43 = vld [vmem:[%s10200_s2 + $0x28] sm:$0xff] (!%p365_p2)   ;;  %v447_v46 = vld [vmem:[%s10199_s1 + $0x40] sm:$0xff] (!%p365_p2)  ;;  %v8668_v48 = vld [vmem:[%s10200_s2 + $0x30] sm:$0xff] (!%p365_p2)  }
   0xf   : > { %s10212_s24 = smov (!%p404_p3, %s6365_s24), 1  ;;  %982 = vperm.xlu0 %8652, %v440_v31   ;;  %v448_v47 = vld [vmem:[%s10199_s1 + $0x48] sm:$0xff]  ;;  %v449_v49 = vld [vmem:[%s10199_s1 + $0x50] sm:$0xff]  ;;  %v8669_v50 = vld [vmem:[%s10200_s2 + $0x38] sm:$0xff]  }
  0x10   : > { %s8638_s30 = smul.u32 104, %s10212_s24  ;;  %992 = vperm.xlu1 %8653, %v442_v34   ;;  %v8670_v55 = vld [vmem:[%s10200_s2 + $0x80] sm:$0xff]   ;;  %v8671_v57 = vld [vmem:[%s10200_s2 + $0x88] sm:$0xff]   ;;  %v8672_v63 = vld [vmem:[%s10200_s2 + $0x90] sm:$0xff]   ;;  %s411_s17 = scalar_lea.vmem %s10210_s12, %s10212_s24 }
  0x11   : > { %7572 = vmatpush3.bf16.msra.mxu0 %v8656_v4  ;;  %v8673_v1 = vld [vmem:[%s10200_s2 + $0x98] sm:$0xff]   ;;  %v8680_v28 = vld [vmem:[%s10200_s2 + $0x110] sm:$0xff]   ;;  %v8682_v30 = vld [vmem:[%s10200_s2 + $0x120] sm:$0xff]  }
  0x12   : > { %s9012_s15 = scalar_lea.vmem %s10198_s0, %s8638_s30  ;;  %7573 = vmatprep.subr.bf16.mxu0 %v8657_v5  ;;  %v8683_v31 = vld [vmem:[%s10200_s2 + $0x128] sm:$0xff]   ;;  %v8686_v34 = vld [vmem:[%s10200_s2 + $0xc0] sm:$0xff]   ;;  %vm8476_vm6 = vmpackc.low %vm6227_vm4, %vm8920_vm5 }
  0x13   : > { %v414_v6 = vld [vmem:[%s9012_s15 + $0x8] sm:$0xff]  ;;  %v415_v7 = vld [vmem:[%s9012_s15 + $0x10] sm:$0xff]  ;;  %v416_v9 = vld [vmem:[%s9012_s15 + $0x18] sm:$0xff]  ;;  %997 = vperm.xlu0 %8652, %v443_v36  }
  0x14   : > { %427 = vst [vmem:[#allocation2 + $0x8] sm:$0xff] %v414_v6  ;;  %428 = vst [vmem:[#allocation2 + $0x10] sm:$0xff] %v415_v7  ;;  %v511_v8 = vpack.c.bf16 %v415_v7, %v414_v6  ;;  %v417_v10 = vld [vmem:[%s9012_s15 + $0x20] sm:$0xff]  ;;  %v418_v12 = vld [vmem:[%s9012_s15 + $0x28] sm:$0xff]  ;;  %1002 = vperm.xlu1 %8653, %v444_v37  }
  0x15   : > { %429 = vst [vmem:[#allocation2 + $0x18] sm:$0xff] %v416_v9  ;;  %430 = vst [vmem:[#allocation2 + $0x20] sm:$0xff] %v417_v10  ;;  %v419_v13 = vld [vmem:[%s9012_s15 + $0x30] sm:$0xff]  ;;  %v420_v14 = vld [vmem:[%s9012_s15 + $0x38] sm:$0xff]  ;;  %7574 = vmatpush3.bf16.msra.mxu0 %v8657_v5  ;;  %v512_v24 = vpack.c.bf16 %v417_v10, %v416_v9 }
  0x16   : > { %7583 = vmatprep.mubr.bf16.mxu0 %v511_v8  ;;  %431 = vst [vmem:[#allocation2 + $0x28] sm:$0xff] %v418_v12  ;;  %432 = vst [vmem:[#allocation2 + $0x30] sm:$0xff] %v419_v13  ;;  %v421_v15 = vld [vmem:[%s9012_s15 + $0x40] sm:$0xff]  ;;  %7575 = vmatprep.subr.bf16.mxu0 %v8658_v11  ;;  %v422_v17 = vld [vmem:[%s9012_s15 + $0x48] sm:$0xff]  ;;  %v513_v25 = vpack.c.bf16 %v419_v13, %v418_v12 }
  0x17   : > { %433 = vst [vmem:[#allocation2 + $0x38] sm:$0xff] %v420_v14  ;;  %434 = vst [vmem:[#allocation2 + $0x40] sm:$0xff] %v421_v15  ;;  %v423_v18 = vld [vmem:[%s9012_s15 + $0x50] sm:$0xff]  ;;  %v424_v19 = vld [vmem:[%s9012_s15 + $0x58] sm:$0xff]  ;;  %v514_v33 = vpack.c.bf16 %v421_v15, %v420_v14  ;;  %1007 = vperm.xlu0 %8652, %v445_v41  }
  0x18   : > { %435 = vst [vmem:[#allocation2 + $0x48] sm:$0xff] %v422_v17  ;;  %436 = vst [vmem:[#allocation2 + $0x50] sm:$0xff] %v423_v18  ;;  %v413_v22 = vld [vmem:[%s9012_s15] sm:$0xff]  ;;  %v515_v35 = vpack.c.bf16 %v423_v18, %v422_v17  ;;  %v516_v44 = vpack.c.bf16 %v424_v19, %v424_v19  ;;  %1012 = vperm.xlu1 %8653, %v446_v42   ;;  %v8675_v8 = vld [vmem:[%s10200_s2 + $0xa8] sm:$0xff]  }
  0x19   : > { %7576 = vmatpush3.bf16.msra.mxu0 %v8658_v11  ;;  %437 = vst [vmem:[#allocation2 + $0x58] sm:$0xff] %v424_v19  ;;  %426 = vst [vmem:[#allocation2] sm:$0xff] %v413_v22  ;;  %v425_v27 = vld [vmem:[%s9012_s15 + $0x60] sm:$0xff]  ;;  %v8676_v10 = vld [vmem:[%s10200_s2 + $0xb0] sm:$0xff]  }
  0x1a   : > { %7577 = vmatprep.subr.bf16.mxu0 %v8659_v16  ;;  %438 = vst [vmem:[#allocation2 + $0x60] sm:$0xff] %v425_v27  ;;  %v8674_v6 = vld [vmem:[%s10200_s2 + $0xa0] sm:$0xff]   ;;  %v8677_v11 = vld [vmem:[%s10200_s2 + $0xb8] sm:$0xff]   ;;  %v8679_v27 = vld [vmem:[%s10200_s2 + $0x108] sm:$0xff]  }
  0x1b   : > { %v462_v38 = vld [vmem:[#allocation2 + $0xf] sm:$0xff]  ;;  %1017 = vperm.xlu0 %8652, %v447_v46  }
  0x1c   : > { %1022 = vperm.xlu1 %8653, %v448_v47   ;;  %v463_v51 = vld [vmem:[#allocation2 + $0x17] sm:$0xff]  ;;  %v464_v52 = vld [vmem:[#allocation2 + $0x1f] sm:$0xff]  ;;  %v478_v4 = vld [vmem:[#allocation2 + $0x9] sm:$0xff] }
  0x1d   : > { %7578 = vmatpush3.bf16.msra.mxu0 %v8659_v16  ;;  %v465_v53 = vld [vmem:[#allocation2 + $0x27] sm:$0xff]  ;;  %v466_v54 = vld [vmem:[#allocation2 + $0x2f] sm:$0xff]  ;;  %v473_v56 = vpack.c.bf16 %v464_v52, %v463_v51  ;;  %v480_v12 = vld [vmem:[#allocation2 + $0x19] sm:$0xff] }
  0x1e   : > { %7579 = vmatprep.subr.bf16.mxu0 %v8660_v20  ;;  %v474_v58 = vpack.c.bf16 %v466_v54, %v465_v53  ;;  %v467_v59 = vld [vmem:[#allocation2 + $0x37] sm:$0xff]  ;;  %v468_v60 = vld [vmem:[#allocation2 + $0x3f] sm:$0xff]  ;;  %v482_v14 = vld [vmem:[#allocation2 + $0x29] sm:$0xff] }
  0x1f   : > { %1027 = vperm.xlu0 %8652, %v449_v49   ;;  %v469_v61 = vld [vmem:[#allocation2 + $0x47] sm:$0xff]  ;;  %v470_v62 = vld [vmem:[#allocation2 + $0x4f] sm:$0xff]  ;;  %v475_v0 = vpack.c.bf16 %v468_v60, %v467_v59  ;;  %v484_v18 = vld [vmem:[#allocation2 + $0x39] sm:$0xff] }
  0x20   : > { %v461_v40 = vld [vmem:[#allocation2 + $0x7] sm:$0xff]  ;;  %v476_v2 = vpack.c.bf16 %v470_v62, %v469_v61  ;;  %v471_v3 = vld [vmem:[#allocation2 + $0x57] sm:$0xff]  ;;  %v9165_v49 = vld [vmem:[%s10201_s3] ss:$0 sm:$0xff] }
  0x21   : > { %7580 = vmatpush3.bf16.msra.mxu0 %v8660_v20  ;;  %v472_v45 = vpack.c.bf16 %v462_v38, %v461_v40  ;;  %v479_v5 = vld [vmem:[#allocation2 + $0x11] sm:$0xff]  ;;  %v477_v7 = vpack.c.bf16 %v471_v3, %v471_v3  ;;  %v481_v13 = vld [vmem:[#allocation2 + $0x21] sm:$0xff]  ;;  %v486_v20 = vld [vmem:[#allocation2 + $0x49] sm:$0xff] }
  0x22   : > { %7581 = vmatprep.subr.bf16.mxu0 %v8661_v21  ;;  %v489_v9 = vpack.c.bf16 %v479_v5, %v478_v4  ;;  %v483_v15 = vld [vmem:[#allocation2 + $0x31] sm:$0xff]  ;;  %v490_v16 = vpack.c.bf16 %v481_v13, %v480_v12  ;;  %v485_v19 = vld [vmem:[#allocation2 + $0x41] sm:$0xff] }
  0x23   : > { %v491_v17 = vpack.c.bf16 %v483_v15, %v482_v14  ;;  %v492_v22 = vpack.c.bf16 %v485_v19, %v484_v18 }
  0x25   : > { %7582 = vmatpush3.bf16.msra.mxu0 %v8661_v21  ;;  %v487_v21 = vld [vmem:[#allocation2 + $0x51] sm:$0xff] }
  0x26   : > { %7595 = vmatprep.subr.bf16.mxu0 %v8662_v23 }
  0x28   : > { %7584 = vmatmul.mubr.bf16.vlgmr.msra.gmra.mrb[0].mxu0 %v512_v24  ;;  %v488_v24 = vld [vmem:[#allocation2 + $0x59] sm:$0xff] }
  0x29   : > { %7596 = vmatpush3.bf16.msra.mxu0 %v8662_v23  ;;  %7587 = vmatprep.mubr.bf16.mxu0 %v513_v25  ;;  %v493_v23 = vpack.c.bf16 %v487_v21, %v486_v20  ;;  %v494_v25 = vpack.c.bf16 %v488_v24, %v488_v24 }
  0x2a   : > { %7597 = vmatprep.subr.bf16.mxu0 %v8663_v26 }
  0x2d   : > { %7598 = vmatpush3.bf16.msra.mxu0 %v8663_v26  ;;  %v8678_v26 = vld [vmem:[%s10200_s2 + $0x100] sm:$0xff]  }
  0x2e   : > { %7599 = vmatprep.subr.bf16.mxu0 %v8664_v29  ;;  %7651 = vmatprep.subr.bf16.mxu1 %v8678_v26 }
  0x2f   : > { %7652 = vmatpush3.bf16.msra.mxu1 %v8678_v26 }
  0x30   : > { %7588 = vmatmul.mubr.bf16.gmra.mrb[4].mxu0 %v514_v33  ;;  %7653 = vmatprep.subr.bf16.mxu1 %v8679_v27  ;;  %v8685_v33 = vld [vmem:[%s10200_s2 + $0x138] sm:$0xff]  }
  0x31   : > { %7600 = vmatpush3.bf16.msra.mxu0 %v8664_v29  ;;  %7591 = vmatprep.mubr.bf16.mxu0 %v515_v35  ;;  %v8681_v29 = vld [vmem:[%s10200_s2 + $0x118] sm:$0xff]  }
  0x32   : > { %7601 = vmatprep.subr.bf16.mxu0 %v8665_v32 }
  0x33   : > { %7654 = vmatpush3.bf16.msra.mxu1 %v8679_v27 }
  0x34   : > { %7655 = vmatprep.subr.bf16.mxu1 %v8680_v28 }
  0x35   : > { %7602 = vmatpush3.bf16.msra.mxu0 %v8665_v32  ;;  %v8684_v32 = vld [vmem:[%s10200_s2 + $0x130] sm:$0xff]  }
  0x36   : > { %7603 = vmatprep.subr.bf16.mxu0 %v8666_v39 }
  0x37   : > { %7656 = vmatpush3.bf16.msra.mxu1 %v8680_v28 }
  0x38   : > { %7592 = vmatmul.mubr.bf16.gmra.mrb[8].mxu0 %v516_v44  ;;  %7657 = vmatprep.subr.bf16.mxu1 %v8681_v29 }
  0x39   : > { %7604 = vmatpush3.bf16.msra.mxu0 %v8666_v39  ;;  %7611 = vmatprep.mubr.bf16.mxu0 %v472_v45 }
  0x3a   : > { %7605 = vmatprep.subr.bf16.mxu0 %v8667_v43 }
  0x3b   : > { %7658 = vmatpush3.bf16.msra.mxu1 %v8681_v29 }
  0x3c   : > { %7659 = vmatprep.subr.bf16.mxu1 %v8682_v30 }
  0x3d   : > { %7606 = vmatpush3.bf16.msra.mxu0 %v8667_v43 }
  0x3e   : > { %7607 = vmatprep.subr.bf16.mxu0 %v8668_v48 }
  0x3f   : > { %7660 = vmatpush3.bf16.msra.mxu1 %v8682_v30 }
  0x40   : > { %7661 = vmatprep.subr.bf16.mxu1 %v8683_v31 }
  0x41   : > { %7608 = vmatpush3.bf16.msra.mxu0 %v8668_v48 }
  0x42   : > { %7609 = vmatprep.subr.bf16.mxu0 %v8669_v50 }
  0x43   : > { %7662 = vmatpush3.bf16.msra.mxu1 %v8683_v31 }
  0x44   : > { %7663 = vmatprep.subr.bf16.mxu1 %v8684_v32 }
  0x45   : > { %7610 = vmatpush3.bf16.msra.mxu0 %v8669_v50 }
  0x46   : > { %7623 = vmatprep.subr.bf16.mxu0 %v8670_v55 }
  0x47   : > { %7664 = vmatpush3.bf16.msra.mxu1 %v8684_v32 }
  0x48   : > { %7612 = vmatmul.mubr.bf16.vlgmr.msra.gmra.mrb[0].mxu0 %v473_v56  ;;  %7665 = vmatprep.subr.bf16.mxu1 %v8685_v33 }
  0x49   : > { %7624 = vmatpush3.bf16.msra.mxu0 %v8670_v55  ;;  %7615 = vmatprep.mubr.bf16.mxu0 %v474_v58 }
  0x4a   : > { %7625 = vmatprep.subr.bf16.mxu0 %v8671_v57 }
  0x4b   : > { %7666 = vmatpush3.bf16.msra.mxu1 %v8685_v33 }
  0x4c   : > { %7679 = vmatprep.subr.bf16.mxu1 %v8686_v34 }
  0x4d   : > { %7626 = vmatpush3.bf16.msra.mxu0 %v8671_v57 }
  0x4e   : > { %7627 = vmatprep.subr.bf16.mxu0 %v8672_v63 }
  0x50   : > { %7616 = vmatmul.mubr.bf16.gmra.mrb[4].mxu0 %v475_v0 }
  0x51   : > { %7628 = vmatpush3.bf16.msra.mxu0 %v8672_v63  ;;  %7619 = vmatprep.mubr.bf16.mxu0 %v476_v2 }
  0x52   : > { %7629 = vmatprep.subr.bf16.mxu0 %v8673_v1 }
  0x55   : > { %7630 = vmatpush3.bf16.msra.mxu0 %v8673_v1 }
  0x56   : > { %7631 = vmatprep.subr.bf16.mxu0 %v8674_v6 }
  0x58   : > { %7620 = vmatmul.mubr.bf16.gmra.mrb[12].mxu0 %v477_v7 }
  0x59   : > { %7632 = vmatpush3.bf16.msra.mxu0 %v8674_v6  ;;  %7639 = vmatprep.mubr.bf16.mxu0 %v489_v9 }
  0x5a   : > { %7633 = vmatprep.subr.bf16.mxu0 %v8675_v8 }
  0x5d   : > { %7634 = vmatpush3.bf16.msra.mxu0 %v8675_v8 }
  0x5e   : > { %7635 = vmatprep.subr.bf16.mxu0 %v8676_v10 }
  0x61   : > { %7636 = vmatpush3.bf16.msra.mxu0 %v8676_v10 }
  0x62   : > { %7637 = vmatprep.subr.bf16.mxu0 %v8677_v11 }
  0x65   : > { %7638 = vmatpush3.bf16.msra.mxu0 %v8677_v11 }
  0x68   : > { %7640 = vmatmul.mubr.bf16.vlgmr.msra.gmra.mrb[0].mxu0 %v490_v16  ;;  %v8687_v16 = vld [vmem:[%s10200_s2 + $0xc8] sm:$0xff]  }
  0x69   : > { %7643 = vmatprep.mubr.bf16.mxu0 %v491_v17 }
  0x70   : > { %7644 = vmatmul.mubr.bf16.gmra.mrb[4].mxu0 %v492_v22 }
  0x71   : > { %7647 = vmatprep.mubr.bf16.mxu0 %v493_v23 }
  0x78   : > { %7648 = vmatmul.mubr.bf16.gmra.mrb[16].mxu0 %v494_v25  ;;  %v8688_v25 = vld [vmem:[%s10200_s2 + $0xd0] sm:$0xff]  }
  0x8a   : > { %v9156_v46 = vpop.permute.xlu0 %977 }
  0x8b   : > { %v9158_v47 = vpop.permute.xlu1 %987 }
  0x8e   : > { %v9160_v48 = vpop.permute.xlu0 %982 }
  0x8f   : > { %v9168_v53 = vpop.permute.xlu1 %992 }
  0x92   : > { %v9172_v59 = vpop.permute.xlu0 %997 }
  0x93   : > { %v9178_v3 = vpop.permute.xlu1 %1002 }
  0x96   : > { %v9182_v9 = vpop.permute.xlu0 %1007 }
  0x97   : > { %v9191_v21 = vpop.permute.xlu1 %1012 }
  0x9a   : > { %v9198_v26 = vpop.permute.xlu0 %1017 }
 0x10b   : > { %v7593_v35 = vpop.f32.mrb[8].mxu0 }
 0x10c   : > { %v648_v36 = vpop.f32.mrb[9].mxu0 }
 0x10d   : > { %v7594_v37 = vpop.f32.mrb[10].mxu0 }
 0x10e   : > { %v651_v38 = vpop.f32.mrb[11].mxu0  ;;  %v8689_v37 = vld [vmem:[%s10200_s2 + $0xd8] sm:$0xff]  }
 0x12b   : > { %v7621_v39 = vpop.f32.mrb[12].mxu0 }
 0x12c   : > { %v9150_v40 = vadd.f32 %v7621_v39, %v7593_v35  ;;  %v776_v41 = vpop.f32.mrb[13].mxu0 }
 0x12d   : > { %v9152_v42 = vadd.f32 %v776_v41, %v648_v36  ;;  %v7622_v43 = vpop.f32.mrb[14].mxu0  ;;  %v9209_v41 = vpop.permute.xlu0 %1027 }
 0x12e   : > { %v779_v44 = vpop.f32.mrb[15].mxu0 }
 0x12f   : > { %v9154_v45 = vadd.f32 %v779_v44, %v651_v38 }
 0x13b   : > { %v7641_v50 = vpop.f32.mrb[0].mxu0 }
 0x13c   : > { %v955_v51 = vadd.f32 %v7641_v50, %v9165_v49  ;;  %v889_v52 = vpop.f32.mrb[1].mxu0  ;;  %v8690_v50 = vld [vmem:[%s10200_s2 + $0xe0] sm:$0xff]  }
 0x13d   : > { %v953_v54 = vadd.f32 %v9165_v49, %v889_v52  ;;  %v7642_v55 = vpop.f32.mrb[2].mxu0 }
 0x13e   : > { %v966_v56 = vmax.f32 %v955_v51, 0.0  ;;  %v956_v57 = vadd.f32 %v7642_v55, %v9165_v49  ;;  %v892_v58 = vpop.f32.mrb[3].mxu0 }
 0x13f   : > { %v964_v60 = vmax.f32 %v953_v54, 0.0  ;;  %v954_v61 = vadd.f32 %v9165_v49, %v892_v58 }
 0x140   : > { %v1032_v62 = vmul.f32 %v9158_v47, %v966_v56  ;;  %v967_v63 = vmax.f32 %v956_v57, 0.0 }
 0x141   : > { %v965_v0 = vmax.f32 %v954_v61, 0.0  ;;  %v1030_v1 = vmul.f32 %v9156_v46, %v964_v60  ;;  %v8692_v61 = vld [vmem:[%s10200_s2 + $0xf0] sm:$0xff]  }
 0x142   : > { %1043 = vst [vmem:[#allocation2 + $0x18] sm:$0xff] %v1032_v62  ;;  %v1033_v2 = vmul.f32 %v9168_v53, %v967_v63  ;;  %v8694_v63 = vld [vmem:[%s10200_s2 + $0x140] sm:$0xff]  }
 0x143   : > { %v7645_v4 = vpop.f32.mrb[4].mxu0  ;;  %v1031_v5 = vmul.f32 %v9160_v48, %v965_v0  ;;  %1041 = vst [vmem:[#allocation2 + $0x8] sm:$0xff] %v1030_v1 }
 0x144   : > { %1044 = vst [vmem:[#allocation2 + $0x20] sm:$0xff] %v1033_v2  ;;  %v959_v6 = vadd.f32 %v7645_v4, %v9165_v49  ;;  %v905_v7 = vpop.f32.mrb[5].mxu0  ;;  %v1104_v8 = vpack.c.bf16 %v1033_v2, %v1032_v62  ;;  %v8693_v62 = vld [vmem:[%s10200_s2 + $0xf8] sm:$0xff]  }
 0x145   : > { %v957_v10 = vadd.f32 %v9165_v49, %v905_v7  ;;  %v7646_v11 = vpop.f32.mrb[6].mxu0  ;;  %1042 = vst [vmem:[#allocation2 + $0x10] sm:$0xff] %v1031_v5  ;;  %v1103_v12 = vpack.c.bf16 %v1031_v5, %v1030_v1 }
 0x146   : > { %v970_v13 = vmax.f32 %v959_v6, 0.0  ;;  %v960_v14 = vadd.f32 %v7646_v11, %v9165_v49  ;;  %v908_v15 = vpop.f32.mrb[7].mxu0  ;;  %v8695_v6 = vld [vmem:[%s10200_s2 + $0x148] sm:$0xff]  }
 0x147   : > { %v968_v17 = vmax.f32 %v957_v10, 0.0  ;;  %v958_v18 = vadd.f32 %v9165_v49, %v908_v15  ;;  %7667 = vmatprep.mubr.bf16.mxu1 %v1103_v12  ;;  %v8697_v15 = vld [vmem:[%s10200_s2 + $0x158] sm:$0xff]  }
 0x148   : > { %v1036_v19 = vmul.f32 %v9182_v9, %v970_v13  ;;  %v971_v20 = vmax.f32 %v960_v14, 0.0  ;;  %7668 = vmatmul.mubr.bf16.vlgmr.msra.gmra.mrb[0].mxu1 %v1104_v8  ;;  %v8696_v8 = vld [vmem:[%s10200_s2 + $0x150] sm:$0xff]  }
 0x149   : > { %v1034_v22 = vmul.f32 %v9172_v59, %v968_v17  ;;  %v969_v23 = vmax.f32 %v958_v18, 0.0  ;;  %7680 = vmatpush3.bf16.msra.mxu1 %v8686_v34  ;;  %v8698_v17 = vld [vmem:[%s10200_s2 + $0x160] sm:$0xff]  }
 0x14a   : > { %1047 = vst [vmem:[#allocation2 + $0x38] sm:$0xff] %v1036_v19  ;;  %v1037_v24 = vmul.f32 %v9191_v21, %v971_v20  ;;  %7681 = vmatprep.subr.bf16.mxu1 %v8687_v16  ;;  %v1052_v58 = vld [vmem:[#allocation2 + $0x7] sm:$0xff] }
 0x14b   : > { %1045 = vst [vmem:[#allocation2 + $0x28] sm:$0xff] %v1034_v22  ;;  %v1035_v27 = vmul.f32 %v9178_v3, %v969_v23  ;;  %v7649_v28 = vpop.f32.mrb[16].mxu0  ;;  %v1055_v0 = vld [vmem:[#allocation2 + $0x1f] sm:$0xff]  ;;  %v8699_v23 = vld [vmem:[%s10200_s2 + $0x168] sm:$0xff]  }
 0x14c   : > { %1048 = vst [vmem:[#allocation2 + $0x40] sm:$0xff] %v1037_v24  ;;  %v945_v29 = vadd.f32 %v7649_v28, %v9150_v40  ;;  %v921_v30 = vpop.f32.mrb[17].mxu0  ;;  %v1106_v31 = vpack.c.bf16 %v1037_v24, %v1036_v19  ;;  %v1053_v55 = vld [vmem:[#allocation2 + $0xf] sm:$0xff]  ;;  %v1054_v1 = vld [vmem:[#allocation2 + $0x17] sm:$0xff] }
 0x14d   : > { %1046 = vst [vmem:[#allocation2 + $0x30] sm:$0xff] %v1035_v27  ;;  %v943_v32 = vadd.f32 %v921_v30, %v9152_v42  ;;  %7682 = vmatpush3.bf16.msra.mxu1 %v8687_v16  ;;  %v7650_v33 = vpop.f32.mrb[18].mxu0  ;;  %v1105_v34 = vpack.c.bf16 %v1035_v27, %v1034_v22  ;;  %v1063_v60 = vpack.c.bf16 %v1053_v55, %v1052_v58  ;;  %v1069_v19 = vld [vmem:[#allocation2 + $0x9] sm:$0xff]  ;;  %v1070_v20 = vld [vmem:[#allocation2 + $0x11] sm:$0xff] }
 0x14e   : > { %v963_v35 = vadd.f32 %v9165_v49, %v945_v29  ;;  %v924_v36 = vpop.f32.mrb[19].mxu0  ;;  %7683 = vmatprep.subr.bf16.mxu1 %v8688_v25  ;;  %v1064_v5 = vpack.c.bf16 %v1055_v0, %v1054_v1  ;;  %v1080_v24 = vpack.c.bf16 %v1070_v20, %v1069_v19  ;;  %v8701_v27 = vld [vmem:[%s10200_s2 + $0x178] sm:$0xff]   ;;  %v8708_v55 = vld [vmem:[%s10200_s2 + $0x1f0] sm:$0xff]  }
 0x14f   : > { %v961_v38 = vadd.f32 %v9165_v49, %v943_v32  ;;  %v944_v39 = vadd.f32 %v924_v36, %v9154_v45  ;;  %7671 = vmatprep.mubr.bf16.mxu1 %v1105_v34  ;;  %v9217_v45 = vpop.permute.xlu1 %1022 }
 0x150   : > { %v974_v40 = vmax.f32 %v963_v35, 0.0  ;;  %7672 = vmatmul.mubr.bf16.gmra.mrb[4].mxu1 %v1106_v31  ;;  %v1071_v31 = vld [vmem:[#allocation2 + $0x19] sm:$0xff] }
 0x151   : > { %v972_v42 = vmax.f32 %v961_v38, 0.0  ;;  %v962_v43 = vadd.f32 %v9165_v49, %v944_v39  ;;  %7684 = vmatpush3.bf16.msra.mxu1 %v8688_v25  ;;  %v8691_v49 = vld [vmem:[%s10200_s2 + $0xe8] sm:$0xff]   ;;  %v8700_v25 = vld [vmem:[%s10200_s2 + $0x170] sm:$0xff]  }
 0x152   : > { %v1040_v44 = vmul.f32 %v9209_v41, %v974_v40  ;;  %7685 = vmatprep.subr.bf16.mxu1 %v8689_v37  ;;  %v1056_v4 = vld [vmem:[#allocation2 + $0x27] sm:$0xff] }
 0x153   : > { %v1038_v51 = vmul.f32 %v9198_v26, %v972_v42  ;;  %v973_v52 = vmax.f32 %v962_v43, 0.0  ;;  %v1059_v10 = vld [vmem:[#allocation2 + $0x3f] sm:$0xff] }
 0x154   : > { %1051 = vst [vmem:[#allocation2 + $0x58] sm:$0xff] %v1040_v44  ;;  %v1108_v57 = vpack.c.bf16 %v1040_v44, %v1040_v44  ;;  %v1057_v2 = vld [vmem:[#allocation2 + $0x2f] sm:$0xff]  ;;  %v1058_v11 = vld [vmem:[#allocation2 + $0x37] sm:$0xff]  ;;  %v1072_v28 = vld [vmem:[#allocation2 + $0x21] sm:$0xff] }
 0x155   : > { %1049 = vst [vmem:[#allocation2 + $0x48] sm:$0xff] %v1038_v51  ;;  %v1039_v54 = vmul.f32 %v9217_v45, %v973_v52  ;;  %7686 = vmatpush3.bf16.msra.mxu1 %v8689_v37  ;;  %v1065_v7 = vpack.c.bf16 %v1057_v2, %v1056_v4  ;;  %v1066_v14 = vpack.c.bf16 %v1059_v10, %v1058_v11  ;;  %v1073_v29 = vld [vmem:[#allocation2 + $0x29] sm:$0xff]  ;;  %v1074_v30 = vld [vmem:[#allocation2 + $0x31] sm:$0xff]  ;;  %v1075_v37 = vld [vmem:[#allocation2 + $0x39] sm:$0xff] }
 0x156   : > { %7687 = vmatprep.subr.bf16.mxu1 %v8690_v50  ;;  %v1081_v32 = vpack.c.bf16 %v1072_v28, %v1071_v31  ;;  %v1082_v33 = vpack.c.bf16 %v1074_v30, %v1073_v29  ;;  %v8702_v43 = vld [vmem:[%s10200_s2 + $0x1c0] sm:$0xff]   ;;  %v8703_v44 = vld [vmem:[%s10200_s2 + $0x1c8] sm:$0xff]  }
 0x157   : > { %1050 = vst [vmem:[#allocation2 + $0x50] sm:$0xff] %v1039_v54  ;;  %v1107_v56 = vpack.c.bf16 %v1039_v54, %v1038_v51  ;;  %7735 = vmatprep.subr.bf16.mxu0 %v8702_v43  ;;  %v8705_v51 = vld [vmem:[%s10200_s2 + $0x1d8] sm:$0xff]   ;;  %v8706_v52 = vld [vmem:[%s10200_s2 + $0x1e0] sm:$0xff]   ;;  %v8707_v54 = vld [vmem:[%s10200_s2 + $0x1e8] sm:$0xff]  }
 0x158   : > { %7736 = vmatpush3.bf16.msra.mxu0 %v8702_v43 }
 0x159   : > { %7688 = vmatpush3.bf16.msra.mxu1 %v8690_v50  ;;  %7675 = vmatprep.mubr.bf16.mxu1 %v1107_v56  ;;  %v8704_v50 = vld [vmem:[%s10200_s2 + $0x1d0] sm:$0xff]   ;;  %v8710_v56 = vld [vmem:[%s10200_s2 + $0x180] sm:$0xff]  }
 0x15a   : > { %7676 = vmatmul.mubr.bf16.gmra.mrb[8].mxu1 %v1108_v57  ;;  %7689 = vmatprep.subr.bf16.mxu1 %v8691_v49 }
 0x15b   : > { %7695 = vmatprep.mubr.bf16.mxu1 %v1063_v60  ;;  %v1079_v40 = vld [vmem:[#allocation2 + $0x59] sm:$0xff]  ;;  %7737 = vmatprep.subr.bf16.mxu0 %v8703_v44 }
 0x15c   : > { %v1060_v13 = vld [vmem:[#allocation2 + $0x47] sm:$0xff]  ;;  %v1085_v42 = vpack.c.bf16 %v1079_v40, %v1079_v40  ;;  %7738 = vmatpush3.bf16.msra.mxu0 %v8703_v44 }
 0x15d   : > { %7690 = vmatpush3.bf16.msra.mxu1 %v8691_v49  ;;  %v1076_v34 = vld [vmem:[#allocation2 + $0x41] sm:$0xff]  ;;  %7739 = vmatprep.subr.bf16.mxu0 %v8704_v50  ;;  %v8709_v49 = vld [vmem:[%s10200_s2 + $0x1f8] sm:$0xff]  }
 0x15e   : > { %7691 = vmatprep.subr.bf16.mxu1 %v8692_v61  ;;  %v1061_v12 = vld [vmem:[#allocation2 + $0x4f] sm:$0xff]  ;;  %v1062_v18 = vld [vmem:[#allocation2 + $0x57] sm:$0xff]  ;;  %v1083_v38 = vpack.c.bf16 %v1076_v34, %v1075_v37 }
 0x15f   : > { %v1067_v16 = vpack.c.bf16 %v1061_v12, %v1060_v13  ;;  %v1068_v22 = vpack.c.bf16 %v1062_v18, %v1062_v18  ;;  %v1077_v35 = vld [vmem:[#allocation2 + $0x49] sm:$0xff]  ;;  %v1078_v36 = vld [vmem:[#allocation2 + $0x51] sm:$0xff] }
 0x160   : > { %v1084_v39 = vpack.c.bf16 %v1078_v36, %v1077_v35  ;;  %7740 = vmatpush3.bf16.msra.mxu0 %v8704_v50  ;;  %v8711_v36 = vld [vmem:[%s10200_s2 + $0x188] sm:$0xff]   ;;  %v8712_v50 = vld [vmem:[%s10200_s2 + $0x190] sm:$0xff]  }
 0x161   : > { %7692 = vmatpush3.bf16.msra.mxu1 %v8692_v61  ;;  %7741 = vmatprep.subr.bf16.mxu0 %v8705_v51 }
 0x162   : > { %7693 = vmatprep.subr.bf16.mxu1 %v8693_v62 }
 0x164   : > { %7742 = vmatpush3.bf16.msra.mxu0 %v8705_v51 }
 0x165   : > { %7694 = vmatpush3.bf16.msra.mxu1 %v8693_v62  ;;  %7743 = vmatprep.subr.bf16.mxu0 %v8706_v52 }
 0x166   : > { %7707 = vmatprep.subr.bf16.mxu1 %v8694_v63 }
 0x168   : > { %7696 = vmatmul.mubr.bf16.vlgmr.msra.gmra.mrb[0].mxu1 %v1064_v5  ;;  %7744 = vmatpush3.bf16.msra.mxu0 %v8706_v52 }
 0x169   : > { %7699 = vmatprep.mubr.bf16.mxu1 %v1065_v7  ;;  %7708 = vmatpush3.bf16.msra.mxu1 %v8694_v63 }
 0x16a   : > { %7709 = vmatprep.subr.bf16.mxu1 %v8695_v6  ;;  %7745 = vmatprep.subr.bf16.mxu0 %v8707_v54 }
 0x16c   : > { %7746 = vmatpush3.bf16.msra.mxu0 %v8707_v54 }
 0x16d   : > { %7710 = vmatpush3.bf16.msra.mxu1 %v8695_v6  ;;  %7747 = vmatprep.subr.bf16.mxu0 %v8708_v55  ;;  %v9285_v6 = vld [vmem:[%s10201_s3 + $0x1] ss:$0 sm:$0xff] }
 0x16e   : > { %7711 = vmatprep.subr.bf16.mxu1 %v8696_v8 }
 0x170   : > { %7700 = vmatmul.mubr.bf16.gmra.mrb[4].mxu1 %v1066_v14  ;;  %7748 = vmatpush3.bf16.msra.mxu0 %v8708_v55 }
 0x171   : > { %7703 = vmatprep.mubr.bf16.mxu1 %v1067_v16  ;;  %7712 = vmatpush3.bf16.msra.mxu1 %v8696_v8 }
 0x172   : > { %7713 = vmatprep.subr.bf16.mxu1 %v8697_v15  ;;  %7749 = vmatprep.subr.bf16.mxu0 %v8709_v49 }
 0x174   : > { %7750 = vmatpush3.bf16.msra.mxu0 %v8709_v49 }
 0x175   : > { %7714 = vmatpush3.bf16.msra.mxu1 %v8697_v15  ;;  %7763 = vmatprep.subr.bf16.mxu0 %v8710_v56 }
 0x176   : > { %7715 = vmatprep.subr.bf16.mxu1 %v8698_v17 }
 0x178   : > { %7704 = vmatmul.mubr.bf16.gmra.mrb[12].mxu1 %v1068_v22 }
 0x179   : > { %7716 = vmatpush3.bf16.msra.mxu1 %v8698_v17  ;;  %7723 = vmatprep.mubr.bf16.mxu1 %v1080_v24 }
 0x17a   : > { %7717 = vmatprep.subr.bf16.mxu1 %v8699_v23 }
 0x17d   : > { %7718 = vmatpush3.bf16.msra.mxu1 %v8699_v23 }
 0x17e   : > { %7719 = vmatprep.subr.bf16.mxu1 %v8700_v25 }
 0x181   : > { %7720 = vmatpush3.bf16.msra.mxu1 %v8700_v25 }
 0x182   : > { %7721 = vmatprep.subr.bf16.mxu1 %v8701_v27 }
 0x185   : > { %7722 = vmatpush3.bf16.msra.mxu1 %v8701_v27 }
 0x188   : > { %7724 = vmatmul.mubr.bf16.vlgmr.msra.gmra.mrb[0].mxu1 %v1081_v32 }
 0x189   : > { %7727 = vmatprep.mubr.bf16.mxu1 %v1082_v33 }
 0x190   : > { %7728 = vmatmul.mubr.bf16.gmra.mrb[4].mxu1 %v1083_v38 }
 0x191   : > { %7731 = vmatprep.mubr.bf16.mxu1 %v1084_v39 }
 0x198   : > { %7732 = vmatmul.mubr.bf16.gmra.mrb[16].mxu1 %v1085_v42 }
 0x22d   : > { %v7677_v57 = vpop.f32.mrb[8].mxu1 }
 0x22e   : > { %v1240_v58 = vpop.f32.mrb[9].mxu1 }
 0x22f   : > { %v7678_v60 = vpop.f32.mrb[10].mxu1 }
 0x230   : > { %v1243_v61 = vpop.f32.mrb[11].mxu1 }
 0x24b   : > { %v7705_v62 = vpop.f32.mrb[12].mxu1 }
 0x24c   : > { %v1377_v63 = vadd.f32 %v7705_v62, %v7677_v57  ;;  %v1368_v0 = vpop.f32.mrb[13].mxu1  ;;  %v8713_v62 = vld [vmem:[%s10200_s2 + $0x198] sm:$0xff]  }
 0x24d   : > { %v1369_v1 = vadd.f32 %v1368_v0, %v1240_v58  ;;  %v7706_v2 = vpop.f32.mrb[14].mxu1 }
 0x24e   : > { %v1371_v4 = vpop.f32.mrb[15].mxu1 }
 0x24f   : > { %v9280_v5 = vadd.f32 %v1371_v4, %v1243_v61 }
 0x25b   : > { %v7725_v7 = vpop.f32.mrb[0].mxu1 }
 0x25c   : > { %v1548_v8 = vadd.f32 %v7725_v7, %v9285_v6  ;;  %v1481_v10 = vpop.f32.mrb[1].mxu1 }
 0x25d   : > { %v1546_v11 = vadd.f32 %v9285_v6, %v1481_v10  ;;  %v7726_v12 = vpop.f32.mrb[2].mxu1 }
 0x25e   : > { %v1559_v13 = vmax.f32 %v1548_v8, 0.0  ;;  %v1549_v14 = vadd.f32 %v7726_v12, %v9285_v6  ;;  %v1484_v15 = vpop.f32.mrb[3].mxu1  ;;  %v8714_v8 = vld [vmem:[%s10200_s2 + $0x1a0] sm:$0xff]  }
 0x25f   : > { %v1557_v16 = vmax.f32 %v1546_v11, 0.0  ;;  %v1547_v17 = vadd.f32 %v9285_v6, %v1484_v15 }
 0x260   : > { %v1570_v18 = vmul.f32 %v1559_v13, %v9158_v47  ;;  %v1560_v19 = vmax.f32 %v1549_v14, 0.0 }
 0x261   : > { %v1568_v20 = vmul.f32 %v1557_v16, %v9156_v46  ;;  %v1558_v22 = vmax.f32 %v1547_v17, 0.0  ;;  %v8716_v17 = vld [vmem:[%s10200_s2 + $0x1b0] sm:$0xff]  }
 0x262   : > { %1581 = vst [vmem:[#allocation2 + $0x18] sm:$0xff] %v1570_v18  ;;  %v1571_v23 = vmul.f32 %v1560_v19, %v9168_v53  ;;  %v8718_v19 = vld [vmem:[%s10200_s2 + $0x200] sm:$0xff]  }
 0x263   : > { %1579 = vst [vmem:[#allocation2 + $0x8] sm:$0xff] %v1568_v20  ;;  %v1569_v24 = vmul.f32 %v1558_v22, %v9160_v48  ;;  %v7729_v25 = vpop.f32.mrb[4].mxu1 }
 0x264   : > { %1582 = vst [vmem:[#allocation2 + $0x20] sm:$0xff] %v1571_v23  ;;  %v1642_v27 = vpack.c.bf16 %v1571_v23, %v1570_v18  ;;  %v1552_v28 = vadd.f32 %v7729_v25, %v9285_v6  ;;  %v1497_v29 = vpop.f32.mrb[5].mxu1  ;;  %v8717_v18 = vld [vmem:[%s10200_s2 + $0x1b8] sm:$0xff]  }
 0x265   : > { %1580 = vst [vmem:[#allocation2 + $0x10] sm:$0xff] %v1569_v24  ;;  %v1550_v30 = vadd.f32 %v9285_v6, %v1497_v29  ;;  %v7730_v31 = vpop.f32.mrb[6].mxu1  ;;  %v1641_v32 = vpack.c.bf16 %v1569_v24, %v1568_v20  ;;  %v8720_v29 = vld [vmem:[%s10200_s2 + $0x210] sm:$0xff]  }
 0x266   : > { %v1563_v33 = vmax.f32 %v1552_v28, 0.0  ;;  %v1553_v34 = vadd.f32 %v7730_v31, %v9285_v6  ;;  %v1500_v35 = vpop.f32.mrb[7].mxu1 }
 0x267   : > { %v1561_v37 = vmax.f32 %v1550_v30, 0.0  ;;  %v1551_v38 = vadd.f32 %v9285_v6, %v1500_v35  ;;  %7751 = vmatprep.mubr.bf16.mxu0 %v1641_v32  ;;  %v8721_v35 = vld [vmem:[%s10200_s2 + $0x218] sm:$0xff]  }
 0x268   : > { %v1574_v39 = vmul.f32 %v1563_v33, %v9182_v9  ;;  %v1564_v40 = vmax.f32 %v1553_v34, 0.0  ;;  %7752 = vmatmul.mubr.bf16.vlgmr.msra.gmra.mrb[20].mxu0 %v1642_v27  ;;  %v8719_v27 = vld [vmem:[%s10200_s2 + $0x208] sm:$0xff]  }
 0x269   : > { %v1572_v42 = vmul.f32 %v1561_v37, %v9172_v59  ;;  %v1562_v43 = vmax.f32 %v1551_v38, 0.0  ;;  %7764 = vmatpush3.bf16.msra.mxu0 %v8710_v56  ;;  %v8722_v37 = vld [vmem:[%s10200_s2 + $0x220] sm:$0xff]  }
 0x26a   : > { %1585 = vst [vmem:[#allocation2 + $0x38] sm:$0xff] %v1574_v39  ;;  %v1575_v44 = vmul.f32 %v1564_v40, %v9191_v21  ;;  %7765 = vmatprep.subr.bf16.mxu0 %v8711_v36  ;;  %v1590_v15 = vld [vmem:[#allocation2 + $0x7] sm:$0xff] }
 0x26b   : > { %1583 = vst [vmem:[#allocation2 + $0x28] sm:$0xff] %v1572_v42  ;;  %v1573_v51 = vmul.f32 %v1562_v43, %v9178_v3  ;;  %v7733_v52 = vpop.f32.mrb[16].mxu1  ;;  %v1593_v22 = vld [vmem:[#allocation2 + $0x1f] sm:$0xff]  ;;  %v8723_v43 = vld [vmem:[%s10200_s2 + $0x228] sm:$0xff]  }
 0x26c   : > { %1586 = vst [vmem:[#allocation2 + $0x40] sm:$0xff] %v1575_v44  ;;  %v1537_v54 = vadd.f32 %v7733_v52, %v1377_v63  ;;  %v1513_v55 = vpop.f32.mrb[17].mxu1  ;;  %v1644_v49 = vpack.c.bf16 %v1575_v44, %v1574_v39  ;;  %v1591_v12 = vld [vmem:[#allocation2 + $0xf] sm:$0xff]  ;;  %v1592_v20 = vld [vmem:[#allocation2 + $0x17] sm:$0xff] }
 0x26d   : > { %1584 = vst [vmem:[#allocation2 + $0x30] sm:$0xff] %v1573_v51  ;;  %v1535_v57 = vadd.f32 %v1513_v55, %v1369_v1  ;;  %7766 = vmatpush3.bf16.msra.mxu0 %v8711_v36  ;;  %v7734_v56 = vpop.f32.mrb[18].mxu1  ;;  %v1643_v58 = vpack.c.bf16 %v1573_v51, %v1572_v42  ;;  %v1601_v16 = vpack.c.bf16 %v1591_v12, %v1590_v15  ;;  %v1607_v39 = vld [vmem:[#allocation2 + $0x9] sm:$0xff]  ;;  %v1608_v40 = vld [vmem:[#allocation2 + $0x11] sm:$0xff] }
 0x26e   : > { %v1556_v60 = vadd.f32 %v9285_v6, %v1537_v54  ;;  %v1516_v61 = vpop.f32.mrb[19].mxu1  ;;  %7767 = vmatprep.subr.bf16.mxu0 %v8712_v50  ;;  %v1602_v24 = vpack.c.bf16 %v1593_v22, %v1592_v20  ;;  %v1618_v44 = vpack.c.bf16 %v1608_v40, %v1607_v39  ;;  %v8725_v51 = vld [vmem:[%s10200_s2 + $0x238] sm:$0xff]  }
 0x26f   : > { %v1554_v0 = vadd.f32 %v9285_v6, %v1535_v57  ;;  %v1536_v2 = vadd.f32 %v1516_v61, %v9280_v5  ;;  %7755 = vmatprep.mubr.bf16.mxu0 %v1643_v58  ;;  %v8733_v12 = vld [vmem:[%s10200_s2 + $0x2b8] sm:$0xff]  }
 0x270   : > { %v1567_v63 = vmax.f32 %v1556_v60, 0.0  ;;  %7756 = vmatmul.mubr.bf16.gmra.mrb[24].mxu0 %v1644_v49  ;;  %v1609_v49 = vld [vmem:[#allocation2 + $0x19] sm:$0xff] }
 0x271   : > { %v1565_v4 = vmax.f32 %v1554_v0, 0.0  ;;  %v1555_v1 = vadd.f32 %v9285_v6, %v1536_v2  ;;  %7768 = vmatpush3.bf16.msra.mxu0 %v8712_v50  ;;  %v8715_v6 = vld [vmem:[%s10200_s2 + $0x1a8] sm:$0xff]   ;;  %v8724_v50 = vld [vmem:[%s10200_s2 + $0x230] sm:$0xff]  }
 0x272   : > { %v1578_v7 = vmul.f32 %v1567_v63, %v9209_v41  ;;  %7769 = vmatprep.subr.bf16.mxu0 %v8713_v62  ;;  %v1594_v25 = vld [vmem:[#allocation2 + $0x27] sm:$0xff] }
 0x273   : > { %v1576_v10 = vmul.f32 %v1565_v4, %v9198_v26  ;;  %v1566_v11 = vmax.f32 %v1555_v1, 0.0  ;;  %v1597_v31 = vld [vmem:[#allocation2 + $0x3f] sm:$0xff] }
 0x274   : > { %1589 = vst [vmem:[#allocation2 + $0x58] sm:$0xff] %v1578_v7  ;;  %v1646_v14 = vpack.c.bf16 %v1578_v7, %v1578_v7  ;;  %v1595_v23 = vld [vmem:[#allocation2 + $0x2f] sm:$0xff]  ;;  %v1596_v30 = vld [vmem:[#allocation2 + $0x37] sm:$0xff]  ;;  %v1610_v52 = vld [vmem:[#allocation2 + $0x21] sm:$0xff] }
 0x275   : > { %1587 = vst [vmem:[#allocation2 + $0x48] sm:$0xff] %v1576_v10  ;;  %v1577_v5 = vmul.f32 %v1566_v11, %v9217_v45  ;;  %7770 = vmatpush3.bf16.msra.mxu0 %v8713_v62  ;;  %v1603_v28 = vpack.c.bf16 %v1595_v23, %v1594_v25  ;;  %v1604_v33 = vpack.c.bf16 %v1597_v31, %v1596_v30  ;;  %v1611_v54 = vld [vmem:[#allocation2 + $0x29] sm:$0xff]  ;;  %v1612_v55 = vld [vmem:[#allocation2 + $0x31] sm:$0xff]  ;;  %v1613_v62 = vld [vmem:[#allocation2 + $0x39] sm:$0xff] }
 0x276   : > { %7771 = vmatprep.subr.bf16.mxu0 %v8714_v8  ;;  %v1619_v57 = vpack.c.bf16 %v1610_v52, %v1609_v49  ;;  %v1620_v56 = vpack.c.bf16 %v1612_v55, %v1611_v54  ;;  %v8726_v1 = vld [vmem:[%s10200_s2 + $0x280] sm:$0xff]   ;;  %v8727_v7 = vld [vmem:[%s10200_s2 + $0x288] sm:$0xff]  }
 0x277   : > { %1588 = vst [vmem:[#allocation2 + $0x50] sm:$0xff] %v1577_v5  ;;  %v1645_v13 = vpack.c.bf16 %v1577_v5, %v1576_v10  ;;  %7819 = vmatprep.subr.bf16.mxu1 %v8726_v1  ;;  %v8729_v10 = vld [vmem:[%s10200_s2 + $0x298] sm:$0xff]   ;;  %v8730_v11 = vld [vmem:[%s10200_s2 + $0x2a0] sm:$0xff]   ;;  %v8731_v5 = vld [vmem:[%s10200_s2 + $0x2a8] sm:$0xff]  }
 0x278   : > { %7820 = vmatpush3.bf16.msra.mxu1 %v8726_v1 }
 0x279   : > { %7772 = vmatpush3.bf16.msra.mxu0 %v8714_v8  ;;  %7759 = vmatprep.mubr.bf16.mxu0 %v1645_v13  ;;  %v8728_v8 = vld [vmem:[%s10200_s2 + $0x290] sm:$0xff]   ;;  %v8734_v13 = vld [vmem:[%s10200_s2 + $0x240] sm:$0xff]  }
 0x27a   : > { %7760 = vmatmul.mubr.bf16.gmra.mrb[28].mxu0 %v1646_v14  ;;  %7773 = vmatprep.subr.bf16.mxu0 %v8715_v6 }
 0x27b   : > { %7779 = vmatprep.mubr.bf16.mxu0 %v1601_v16  ;;  %v1617_v63 = vld [vmem:[#allocation2 + $0x59] sm:$0xff]  ;;  %7821 = vmatprep.subr.bf16.mxu1 %v8727_v7 }
 0x27c   : > { %v1598_v34 = vld [vmem:[#allocation2 + $0x47] sm:$0xff]  ;;  %v1623_v4 = vpack.c.bf16 %v1617_v63, %v1617_v63  ;;  %7822 = vmatpush3.bf16.msra.mxu1 %v8727_v7 }
 0x27d   : > { %7774 = vmatpush3.bf16.msra.mxu0 %v8715_v6  ;;  %v1614_v58 = vld [vmem:[#allocation2 + $0x41] sm:$0xff]  ;;  %7823 = vmatprep.subr.bf16.mxu1 %v8728_v8  ;;  %v8732_v6 = vld [vmem:[%s10200_s2 + $0x2b0] sm:$0xff]  }
 0x27e   : > { %7775 = vmatprep.subr.bf16.mxu0 %v8716_v17  ;;  %v1599_v32 = vld [vmem:[#allocation2 + $0x4f] sm:$0xff]  ;;  %v1600_v38 = vld [vmem:[#allocation2 + $0x57] sm:$0xff]  ;;  %v1621_v0 = vpack.c.bf16 %v1614_v58, %v1613_v62 }
 0x27f   : > { %v1605_v36 = vpack.c.bf16 %v1599_v32, %v1598_v34  ;;  %v1606_v42 = vpack.c.bf16 %v1600_v38, %v1600_v38  ;;  %v1615_v60 = vld [vmem:[#allocation2 + $0x49] sm:$0xff]  ;;  %v1616_v61 = vld [vmem:[#allocation2 + $0x51] sm:$0xff] }
 0x280   : > { %v1622_v2 = vpack.c.bf16 %v1616_v61, %v1615_v60  ;;  %7824 = vmatpush3.bf16.msra.mxu1 %v8728_v8  ;;  %v8735_v61 = vld [vmem:[%s10200_s2 + $0x248] sm:$0xff]   ;;  %v8736_v8 = vld [vmem:[%s10200_s2 + $0x250] sm:$0xff]  }
 0x281   : > { %7776 = vmatpush3.bf16.msra.mxu0 %v8716_v17  ;;  %7825 = vmatprep.subr.bf16.mxu1 %v8729_v10 }
 0x282   : > { %7777 = vmatprep.subr.bf16.mxu0 %v8717_v18 }
 0x284   : > { %7826 = vmatpush3.bf16.msra.mxu1 %v8729_v10 }
 0x285   : > { %7778 = vmatpush3.bf16.msra.mxu0 %v8717_v18  ;;  %7827 = vmatprep.subr.bf16.mxu1 %v8730_v11 }
 0x286   : > { %7791 = vmatprep.subr.bf16.mxu0 %v8718_v19 }
 0x288   : > { %7780 = vmatmul.mubr.bf16.vlgmr.msra.gmra.mrb[20].mxu0 %v1602_v24  ;;  %7828 = vmatpush3.bf16.msra.mxu1 %v8730_v11 }
 0x289   : > { %7783 = vmatprep.mubr.bf16.mxu0 %v1603_v28  ;;  %7792 = vmatpush3.bf16.msra.mxu0 %v8718_v19 }
 0x28a   : > { %7793 = vmatprep.subr.bf16.mxu0 %v8719_v27  ;;  %7829 = vmatprep.subr.bf16.mxu1 %v8731_v5 }
 0x28c   : > { %7830 = vmatpush3.bf16.msra.mxu1 %v8731_v5 }
 0x28d   : > { %7794 = vmatpush3.bf16.msra.mxu0 %v8719_v27  ;;  %7831 = vmatprep.subr.bf16.mxu1 %v8732_v6  ;;  %v9387_v27 = vld [vmem:[%s10201_s3 + $0x2] ss:$0 sm:$0xff] }
 0x28e   : > { %7795 = vmatprep.subr.bf16.mxu0 %v8720_v29 }
 0x290   : > { %7784 = vmatmul.mubr.bf16.gmra.mrb[24].mxu0 %v1604_v33  ;;  %7832 = vmatpush3.bf16.msra.mxu1 %v8732_v6 }
 0x291   : > { %7787 = vmatprep.mubr.bf16.mxu0 %v1605_v36  ;;  %7796 = vmatpush3.bf16.msra.mxu0 %v8720_v29 }
 0x292   : > { %7797 = vmatprep.subr.bf16.mxu0 %v8721_v35  ;;  %7833 = vmatprep.subr.bf16.mxu1 %v8733_v12 }
 0x294   : > { %7834 = vmatpush3.bf16.msra.mxu1 %v8733_v12 }
 0x295   : > { %7798 = vmatpush3.bf16.msra.mxu0 %v8721_v35  ;;  %7847 = vmatprep.subr.bf16.mxu1 %v8734_v13 }
 0x296   : > { %7799 = vmatprep.subr.bf16.mxu0 %v8722_v37 }
 0x298   : > { %7788 = vmatmul.mubr.bf16.gmra.mrb[32].mxu0 %v1606_v42 }
 0x299   : > { %7800 = vmatpush3.bf16.msra.mxu0 %v8722_v37  ;;  %7807 = vmatprep.mubr.bf16.mxu0 %v1618_v44 }
 0x29a   : > { %7801 = vmatprep.subr.bf16.mxu0 %v8723_v43 }
 0x29d   : > { %7802 = vmatpush3.bf16.msra.mxu0 %v8723_v43 }
 0x29e   : > { %7803 = vmatprep.subr.bf16.mxu0 %v8724_v50 }
 0x2a1   : > { %7804 = vmatpush3.bf16.msra.mxu0 %v8724_v50 }
 0x2a2   : > { %7805 = vmatprep.subr.bf16.mxu0 %v8725_v51 }
 0x2a5   : > { %7806 = vmatpush3.bf16.msra.mxu0 %v8725_v51 }
 0x2a8   : > { %7808 = vmatmul.mubr.bf16.vlgmr.msra.gmra.mrb[20].mxu0 %v1619_v57 }
 0x2a9   : > { %7811 = vmatprep.mubr.bf16.mxu0 %v1620_v56 }
 0x2b0   : > { %7812 = vmatmul.mubr.bf16.gmra.mrb[24].mxu0 %v1621_v0 }
 0x2b1   : > { %7815 = vmatprep.mubr.bf16.mxu0 %v1622_v2 }
 0x2b8   : > { %7816 = vmatmul.mubr.bf16.gmra.mrb[36].mxu0 %v1623_v4 }
 0x34d   : > { %v7761_v14 = vpop.f32.mrb[28].mxu0 }
 0x34e   : > { %v1778_v15 = vpop.f32.mrb[29].mxu0 }
 0x34f   : > { %v7762_v16 = vpop.f32.mrb[30].mxu0 }
 0x350   : > { %v1781_v17 = vpop.f32.mrb[31].mxu0 }
 0x36b   : > { %v7789_v18 = vpop.f32.mrb[32].mxu0 }
 0x36c   : > { %v1915_v19 = vadd.f32 %v7789_v18, %v7761_v14  ;;  %v1906_v20 = vpop.f32.mrb[33].mxu0  ;;  %v8737_v18 = vld [vmem:[%s10200_s2 + $0x258] sm:$0xff]  }
 0x36d   : > { %v1907_v22 = vadd.f32 %v1906_v20, %v1778_v15  ;;  %v7790_v23 = vpop.f32.mrb[34].mxu0 }
 0x36e   : > { %v1909_v24 = vpop.f32.mrb[35].mxu0 }
 0x36f   : > { %v9382_v25 = vadd.f32 %v1909_v24, %v1781_v17 }
 0x37b   : > { %v7809_v28 = vpop.f32.mrb[20].mxu0 }
 0x37c   : > { %v2086_v29 = vadd.f32 %v7809_v28, %v9387_v27  ;;  %v2019_v30 = vpop.f32.mrb[21].mxu0 }
 0x37d   : > { %v2084_v31 = vadd.f32 %v9387_v27, %v2019_v30  ;;  %v7810_v32 = vpop.f32.mrb[22].mxu0 }
 0x37e   : > { %v2097_v33 = vmax.f32 %v2086_v29, 0.0  ;;  %v2087_v34 = vadd.f32 %v7810_v32, %v9387_v27  ;;  %v2022_v35 = vpop.f32.mrb[23].mxu0  ;;  %v8738_v29 = vld [vmem:[%s10200_s2 + $0x260] sm:$0xff]  }
 0x37f   : > { %v2095_v36 = vmax.f32 %v2084_v31, 0.0  ;;  %v2085_v37 = vadd.f32 %v9387_v27, %v2022_v35 }
 0x380   : > { %v2108_v38 = vmul.f32 %v2097_v33, %v9158_v47  ;;  %v2098_v39 = vmax.f32 %v2087_v34, 0.0 }
 0x381   : > { %v2106_v40 = vmul.f32 %v2095_v36, %v9156_v46  ;;  %v2096_v42 = vmax.f32 %v2085_v37, 0.0  ;;  %v8740_v37 = vld [vmem:[%s10200_s2 + $0x270] sm:$0xff]  }
 0x382   : > { %2119 = vst [vmem:[#allocation2 + $0x18] sm:$0xff] %v2108_v38  ;;  %v2109_v43 = vmul.f32 %v2098_v39, %v9168_v53  ;;  %v8742_v39 = vld [vmem:[%s10200_s2 + $0x2c0] sm:$0xff]  }
 0x383   : > { %2117 = vst [vmem:[#allocation2 + $0x8] sm:$0xff] %v2106_v40  ;;  %v2107_v44 = vmul.f32 %v2096_v42, %v9160_v48  ;;  %v7813_v50 = vpop.f32.mrb[24].mxu0 }
 0x384   : > { %v2180_v51 = vpack.c.bf16 %v2109_v43, %v2108_v38  ;;  %2120 = vst [vmem:[#allocation2 + $0x20] sm:$0xff] %v2109_v43  ;;  %v2090_v52 = vadd.f32 %v7813_v50, %v9387_v27  ;;  %v2035_v54 = vpop.f32.mrb[25].mxu0  ;;  %v8741_v38 = vld [vmem:[%s10200_s2 + $0x278] sm:$0xff]  }
 0x385   : > { %2118 = vst [vmem:[#allocation2 + $0x10] sm:$0xff] %v2107_v44  ;;  %v2088_v55 = vadd.f32 %v9387_v27, %v2035_v54  ;;  %v7814_v49 = vpop.f32.mrb[26].mxu0  ;;  %v2179_v57 = vpack.c.bf16 %v2107_v44, %v2106_v40  ;;  %v8744_v54 = vld [vmem:[%s10200_s2 + $0x2d0] sm:$0xff]  }
 0x386   : > { %v2101_v56 = vmax.f32 %v2090_v52, 0.0  ;;  %v2091_v58 = vadd.f32 %v7814_v49, %v9387_v27  ;;  %v2038_v60 = vpop.f32.mrb[27].mxu0 }
 0x387   : > { %v2099_v62 = vmax.f32 %v2088_v55, 0.0  ;;  %v2089_v0 = vadd.f32 %v9387_v27, %v2038_v60  ;;  %7835 = vmatprep.mubr.bf16.mxu1 %v2179_v57  ;;  %v8745_v60 = vld [vmem:[%s10200_s2 + $0x2d8] sm:$0xff]  }
 0x388   : > { %v2112_v2 = vmul.f32 %v2101_v56, %v9182_v9  ;;  %v2102_v63 = vmax.f32 %v2091_v58, 0.0  ;;  %7836 = vmatmul.mubr.bf16.vlgmr.msra.gmra.mrb[20].mxu1 %v2180_v51  ;;  %v8743_v51 = vld [vmem:[%s10200_s2 + $0x2c8] sm:$0xff]  }
 0x389   : > { %v2110_v4 = vmul.f32 %v2099_v62, %v9172_v59  ;;  %v2100_v1 = vmax.f32 %v2089_v0, 0.0  ;;  %7848 = vmatpush3.bf16.msra.mxu1 %v8734_v13  ;;  %v8746_v62 = vld [vmem:[%s10200_s2 + $0x2e0] sm:$0xff]  }
 0x38a   : > { %2123 = vst [vmem:[#allocation2 + $0x38] sm:$0xff] %v2112_v2  ;;  %v2113_v7 = vmul.f32 %v2102_v63, %v9191_v21  ;;  %7849 = vmatprep.subr.bf16.mxu1 %v8735_v61  ;;  %v2128_v35 = vld [vmem:[#allocation2 + $0x7] sm:$0xff] }
 0x38b   : > { %2121 = vst [vmem:[#allocation2 + $0x28] sm:$0xff] %v2110_v4  ;;  %v2111_v10 = vmul.f32 %v2100_v1, %v9178_v3  ;;  %v7817_v11 = vpop.f32.mrb[36].mxu0  ;;  %v2131_v42 = vld [vmem:[#allocation2 + $0x1f] sm:$0xff]  ;;  %v8747_v1 = vld [vmem:[%s10200_s2 + $0x2e8] sm:$0xff]  }
 0x38c   : > { %2124 = vst [vmem:[#allocation2 + $0x40] sm:$0xff] %v2113_v7  ;;  %v2075_v5 = vadd.f32 %v7817_v11, %v1915_v19  ;;  %v2051_v6 = vpop.f32.mrb[37].mxu0  ;;  %v2182_v12 = vpack.c.bf16 %v2113_v7, %v2112_v2  ;;  %v2129_v32 = vld [vmem:[#allocation2 + $0xf] sm:$0xff]  ;;  %v2130_v40 = vld [vmem:[#allocation2 + $0x17] sm:$0xff] }
 0x38d   : > { %2122 = vst [vmem:[#allocation2 + $0x30] sm:$0xff] %v2111_v10  ;;  %v2073_v14 = vadd.f32 %v2051_v6, %v1907_v22  ;;  %7850 = vmatpush3.bf16.msra.mxu1 %v8735_v61  ;;  %v7818_v13 = vpop.f32.mrb[38].mxu0  ;;  %v2181_v15 = vpack.c.bf16 %v2111_v10, %v2110_v4  ;;  %v2139_v36 = vpack.c.bf16 %v2129_v32, %v2128_v35  ;;  %v2145_v2 = vld [vmem:[#allocation2 + $0x9] sm:$0xff]  ;;  %v2146_v63 = vld [vmem:[#allocation2 + $0x11] sm:$0xff] }
 0x38e   : > { %v2094_v16 = vadd.f32 %v9387_v27, %v2075_v5  ;;  %v2054_v17 = vpop.f32.mrb[39].mxu0  ;;  %7851 = vmatprep.subr.bf16.mxu1 %v8736_v8  ;;  %v2140_v44 = vpack.c.bf16 %v2131_v42, %v2130_v40  ;;  %v2156_v7 = vpack.c.bf16 %v2146_v63, %v2145_v2  ;;  %v8749_v10 = vld [vmem:[%s10200_s2 + $0x2f8] sm:$0xff]  }
 0x38f   : > { %v2092_v20 = vadd.f32 %v9387_v27, %v2073_v14  ;;  %v2074_v23 = vadd.f32 %v2054_v17, %v9382_v25  ;;  %7839 = vmatprep.mubr.bf16.mxu1 %v2181_v15  ;;  %v8757_v32 = vld [vmem:[%s10200_s2 + $0x378] sm:$0xff]  }
 0x390   : > { %v2105_v19 = vmax.f32 %v2094_v16, 0.0  ;;  %7840 = vmatmul.mubr.bf16.gmra.mrb[24].mxu1 %v2182_v12  ;;  %v2147_v12 = vld [vmem:[#allocation2 + $0x19] sm:$0xff] }
 0x391   : > { %v2103_v24 = vmax.f32 %v2092_v20, 0.0  ;;  %v2093_v22 = vadd.f32 %v9387_v27, %v2074_v23  ;;  %7852 = vmatpush3.bf16.msra.mxu1 %v8736_v8  ;;  %v8739_v27 = vld [vmem:[%s10200_s2 + $0x268] sm:$0xff]   ;;  %v8748_v8 = vld [vmem:[%s10200_s2 + $0x2f0] sm:$0xff]  }
 0x392   : > { %v2116_v28 = vmul.f32 %v2105_v19, %v9209_v41  ;;  %7853 = vmatprep.subr.bf16.mxu1 %v8737_v18  ;;  %v2132_v50 = vld [vmem:[#allocation2 + $0x27] sm:$0xff] }
 0x393   : > { %v2114_v30 = vmul.f32 %v2103_v24, %v9198_v26  ;;  %v2104_v31 = vmax.f32 %v2093_v22, 0.0  ;;  %v2135_v49 = vld [vmem:[#allocation2 + $0x3f] sm:$0xff] }
 0x394   : > { %2127 = vst [vmem:[#allocation2 + $0x58] sm:$0xff] %v2116_v28  ;;  %v2184_v34 = vpack.c.bf16 %v2116_v28, %v2116_v28  ;;  %v2133_v43 = vld [vmem:[#allocation2 + $0x2f] sm:$0xff]  ;;  %v2134_v55 = vld [vmem:[#allocation2 + $0x37] sm:$0xff]  ;;  %v2148_v11 = vld [vmem:[#allocation2 + $0x21] sm:$0xff] }
 0x395   : > { %2125 = vst [vmem:[#allocation2 + $0x48] sm:$0xff] %v2114_v30  ;;  %v2115_v25 = vmul.f32 %v2104_v31, %v9217_v45  ;;  %7854 = vmatpush3.bf16.msra.mxu1 %v8737_v18  ;;  %v2141_v52 = vpack.c.bf16 %v2133_v43, %v2132_v50  ;;  %v2142_v56 = vpack.c.bf16 %v2135_v49, %v2134_v55  ;;  %v2149_v5 = vld [vmem:[#allocation2 + $0x29] sm:$0xff]  ;;  %v2150_v6 = vld [vmem:[#allocation2 + $0x31] sm:$0xff]  ;;  %v2151_v18 = vld [vmem:[#allocation2 + $0x39] sm:$0xff] }
 0x396   : > { %7855 = vmatprep.subr.bf16.mxu1 %v8738_v29  ;;  %v2157_v14 = vpack.c.bf16 %v2148_v11, %v2147_v12  ;;  %v2158_v13 = vpack.c.bf16 %v2150_v6, %v2149_v5  ;;  %v8750_v22 = vld [vmem:[%s10200_s2 + $0x340] sm:$0xff]   ;;  %v8751_v28 = vld [vmem:[%s10200_s2 + $0x348] sm:$0xff]  }
 0x397   : > { %2126 = vst [vmem:[#allocation2 + $0x50] sm:$0xff] %v2115_v25  ;;  %v2183_v33 = vpack.c.bf16 %v2115_v25, %v2114_v30  ;;  %7903 = vmatprep.subr.bf16.mxu0 %v8750_v22  ;;  %v8753_v30 = vld [vmem:[%s10200_s2 + $0x358] sm:$0xff]   ;;  %v8754_v31 = vld [vmem:[%s10200_s2 + $0x360] sm:$0xff]   ;;  %v8755_v25 = vld [vmem:[%s10200_s2 + $0x368] sm:$0xff]  }
 0x398   : > { %7904 = vmatpush3.bf16.msra.mxu0 %v8750_v22 }
 0x399   : > { %7856 = vmatpush3.bf16.msra.mxu1 %v8738_v29  ;;  %7843 = vmatprep.mubr.bf16.mxu1 %v2183_v33  ;;  %v8752_v29 = vld [vmem:[%s10200_s2 + $0x350] sm:$0xff]   ;;  %v8758_v33 = vld [vmem:[%s10200_s2 + $0x300] sm:$0xff]  }
 0x39a   : > { %7844 = vmatmul.mubr.bf16.gmra.mrb[28].mxu1 %v2184_v34  ;;  %7857 = vmatprep.subr.bf16.mxu1 %v8739_v27 }
 0x39b   : > { %7863 = vmatprep.mubr.bf16.mxu1 %v2139_v36  ;;  %v2155_v19 = vld [vmem:[#allocation2 + $0x59] sm:$0xff]  ;;  %7905 = vmatprep.subr.bf16.mxu0 %v8751_v28 }
 0x39c   : > { %v2136_v58 = vld [vmem:[#allocation2 + $0x47] sm:$0xff]  ;;  %v2161_v24 = vpack.c.bf16 %v2155_v19, %v2155_v19  ;;  %7906 = vmatpush3.bf16.msra.mxu0 %v8751_v28 }
 0x39d   : > { %7858 = vmatpush3.bf16.msra.mxu1 %v8739_v27  ;;  %v2152_v15 = vld [vmem:[#allocation2 + $0x41] sm:$0xff]  ;;  %7907 = vmatprep.subr.bf16.mxu0 %v8752_v29  ;;  %v8756_v27 = vld [vmem:[%s10200_s2 + $0x370] sm:$0xff]  }
 0x39e   : > { %7859 = vmatprep.subr.bf16.mxu1 %v8740_v37  ;;  %v2137_v57 = vld [vmem:[#allocation2 + $0x4f] sm:$0xff]  ;;  %v2138_v0 = vld [vmem:[#allocation2 + $0x57] sm:$0xff]  ;;  %v2159_v20 = vpack.c.bf16 %v2152_v15, %v2151_v18 }
 0x39f   : > { %v2143_v61 = vpack.c.bf16 %v2137_v57, %v2136_v58  ;;  %v2144_v4 = vpack.c.bf16 %v2138_v0, %v2138_v0  ;;  %v2153_v16 = vld [vmem:[#allocation2 + $0x49] sm:$0xff]  ;;  %v2154_v17 = vld [vmem:[#allocation2 + $0x51] sm:$0xff] }
 0x3a0   : > { %v2160_v23 = vpack.c.bf16 %v2154_v17, %v2153_v16  ;;  %7908 = vmatpush3.bf16.msra.mxu0 %v8752_v29  ;;  %v8759_v17 = vld [vmem:[%s10200_s2 + $0x308] sm:$0xff]   ;;  %v8760_v29 = vld [vmem:[%s10200_s2 + $0x310] sm:$0xff]  }
 0x3a1   : > { %7860 = vmatpush3.bf16.msra.mxu1 %v8740_v37  ;;  %7909 = vmatprep.subr.bf16.mxu0 %v8753_v30 }
 0x3a2   : > { %7861 = vmatprep.subr.bf16.mxu1 %v8741_v38 }
 0x3a4   : > { %7910 = vmatpush3.bf16.msra.mxu0 %v8753_v30 }
 0x3a5   : > { %7862 = vmatpush3.bf16.msra.mxu1 %v8741_v38  ;;  %7911 = vmatprep.subr.bf16.mxu0 %v8754_v31 }
 0x3a6   : > { %7875 = vmatprep.subr.bf16.mxu1 %v8742_v39 }
 0x3a8   : > { %7864 = vmatmul.mubr.bf16.vlgmr.msra.gmra.mrb[20].mxu1 %v2140_v44  ;;  %7912 = vmatpush3.bf16.msra.mxu0 %v8754_v31 }
 0x3a9   : > { %7867 = vmatprep.mubr.bf16.mxu1 %v2141_v52  ;;  %7876 = vmatpush3.bf16.msra.mxu1 %v8742_v39 }
 0x3aa   : > { %7877 = vmatprep.subr.bf16.mxu1 %v8743_v51  ;;  %7913 = vmatprep.subr.bf16.mxu0 %v8755_v25 }
 0x3ac   : > { %7914 = vmatpush3.bf16.msra.mxu0 %v8755_v25 }
 0x3ad   : > { %7878 = vmatpush3.bf16.msra.mxu1 %v8743_v51  ;;  %7915 = vmatprep.subr.bf16.mxu0 %v8756_v27  ;;  %v9489_v51 = vld [vmem:[%s10201_s3 + $0x3] ss:$0 sm:$0xff] }
 0x3ae   : > { %7879 = vmatprep.subr.bf16.mxu1 %v8744_v54 }
 0x3b0   : > { %7868 = vmatmul.mubr.bf16.gmra.mrb[24].mxu1 %v2142_v56  ;;  %7916 = vmatpush3.bf16.msra.mxu0 %v8756_v27 }
 0x3b1   : > { %7871 = vmatprep.mubr.bf16.mxu1 %v2143_v61  ;;  %7880 = vmatpush3.bf16.msra.mxu1 %v8744_v54 }
 0x3b2   : > { %7881 = vmatprep.subr.bf16.mxu1 %v8745_v60  ;;  %7917 = vmatprep.subr.bf16.mxu0 %v8757_v32 }
 0x3b4   : > { %7918 = vmatpush3.bf16.msra.mxu0 %v8757_v32 }
 0x3b5   : > { %7882 = vmatpush3.bf16.msra.mxu1 %v8745_v60  ;;  %7931 = vmatprep.subr.bf16.mxu0 %v8758_v33 }
 0x3b6   : > { %7883 = vmatprep.subr.bf16.mxu1 %v8746_v62 }
 0x3b8   : > { %7872 = vmatmul.mubr.bf16.gmra.mrb[32].mxu1 %v2144_v4 }
 0x3b9   : > { %7884 = vmatpush3.bf16.msra.mxu1 %v8746_v62  ;;  %7891 = vmatprep.mubr.bf16.mxu1 %v2156_v7 }
 0x3ba   : > { %7885 = vmatprep.subr.bf16.mxu1 %v8747_v1 }
 0x3bd   : > { %7886 = vmatpush3.bf16.msra.mxu1 %v8747_v1 }
 0x3be   : > { %7887 = vmatprep.subr.bf16.mxu1 %v8748_v8 }
 0x3c1   : > { %7888 = vmatpush3.bf16.msra.mxu1 %v8748_v8 }
 0x3c2   : > { %7889 = vmatprep.subr.bf16.mxu1 %v8749_v10 }
 0x3c5   : > { %7890 = vmatpush3.bf16.msra.mxu1 %v8749_v10 }
 0x3c8   : > { %7892 = vmatmul.mubr.bf16.vlgmr.msra.gmra.mrb[20].mxu1 %v2157_v14 }
 0x3c9   : > { %7895 = vmatprep.mubr.bf16.mxu1 %v2158_v13 }
 0x3d0   : > { %7896 = vmatmul.mubr.bf16.gmra.mrb[24].mxu1 %v2159_v20 }
 0x3d1   : > { %7899 = vmatprep.mubr.bf16.mxu1 %v2160_v23 }
 0x3d8   : > { %7900 = vmatmul.mubr.bf16.gmra.mrb[36].mxu1 %v2161_v24 }
 0x46d   : > { %v7845_v34 = vpop.f32.mrb[28].mxu1 }
 0x46e   : > { %v2316_v35 = vpop.f32.mrb[29].mxu1 }
 0x46f   : > { %v7846_v36 = vpop.f32.mrb[30].mxu1 }
 0x470   : > { %v2319_v37 = vpop.f32.mrb[31].mxu1 }
 0x48b   : > { %v7873_v38 = vpop.f32.mrb[32].mxu1 }
 0x48c   : > { %v2453_v39 = vadd.f32 %v7873_v38, %v7845_v34  ;;  %v2444_v40 = vpop.f32.mrb[33].mxu1  ;;  %v8761_v38 = vld [vmem:[%s10200_s2 + $0x318] sm:$0xff]  }
 0x48d   : > { %v2445_v42 = vadd.f32 %v2444_v40, %v2316_v35  ;;  %v7874_v43 = vpop.f32.mrb[34].mxu1 }
 0x48e   : > { %v2447_v44 = vpop.f32.mrb[35].mxu1 }
 0x48f   : > { %v9484_v50 = vadd.f32 %v2447_v44, %v2319_v37 }
 0x49b   : > { %v7893_v52 = vpop.f32.mrb[20].mxu1 }
 0x49c   : > { %v2624_v54 = vadd.f32 %v7893_v52, %v9489_v51  ;;  %v2557_v55 = vpop.f32.mrb[21].mxu1 }
 0x49d   : > { %v2622_v49 = vadd.f32 %v9489_v51, %v2557_v55  ;;  %v7894_v57 = vpop.f32.mrb[22].mxu1 }
 0x49e   : > { %v2635_v56 = vmax.f32 %v2624_v54, 0.0  ;;  %v2625_v58 = vadd.f32 %v7894_v57, %v9489_v51  ;;  %v2560_v60 = vpop.f32.mrb[23].mxu1  ;;  %v8762_v54 = vld [vmem:[%s10200_s2 + $0x320] sm:$0xff]  }
 0x49f   : > { %v2633_v61 = vmax.f32 %v2622_v49, 0.0  ;;  %v2623_v62 = vadd.f32 %v9489_v51, %v2560_v60 }
 0x4a0   : > { %v2646_v0 = vmul.f32 %v2635_v56, %v9158_v47  ;;  %v2636_v2 = vmax.f32 %v2625_v58, 0.0 }
 0x4a1   : > { %v2644_v63 = vmul.f32 %v2633_v61, %v9156_v46  ;;  %v2634_v4 = vmax.f32 %v2623_v62, 0.0  ;;  %v8764_v62 = vld [vmem:[%s10200_s2 + $0x330] sm:$0xff]  }
 0x4a2   : > { %2657 = vst [vmem:[#allocation2 + $0x18] sm:$0xff] %v2646_v0  ;;  %v2647_v1 = vmul.f32 %v2636_v2, %v9168_v53  ;;  %v8766_v2 = vld [vmem:[%s10200_s2 + $0x380] sm:$0xff]  }
 0x4a3   : > { %2655 = vst [vmem:[#allocation2 + $0x8] sm:$0xff] %v2644_v63  ;;  %v2645_v7 = vmul.f32 %v2634_v4, %v9160_v48  ;;  %v7897_v8 = vpop.f32.mrb[24].mxu1 }
 0x4a4   : > { %v2718_v10 = vpack.c.bf16 %v2647_v1, %v2646_v0  ;;  %2658 = vst [vmem:[#allocation2 + $0x20] sm:$0xff] %v2647_v1  ;;  %v2628_v11 = vadd.f32 %v7897_v8, %v9489_v51  ;;  %v2573_v5 = vpop.f32.mrb[25].mxu1  ;;  %v8765_v0 = vld [vmem:[%s10200_s2 + $0x338] sm:$0xff]  }
 0x4a5   : > { %2656 = vst [vmem:[#allocation2 + $0x10] sm:$0xff] %v2645_v7  ;;  %v2626_v6 = vadd.f32 %v9489_v51, %v2573_v5  ;;  %v7898_v12 = vpop.f32.mrb[26].mxu1  ;;  %v2717_v14 = vpack.c.bf16 %v2645_v7, %v2644_v63  ;;  %v8768_v5 = vld [vmem:[%s10200_s2 + $0x390] sm:$0xff]  }
 0x4a6   : > { %v2639_v13 = vmax.f32 %v2628_v11, 0.0  ;;  %v2629_v15 = vadd.f32 %v7898_v12, %v9489_v51  ;;  %v2576_v16 = vpop.f32.mrb[27].mxu1 }
 0x4a7   : > { %v2637_v18 = vmax.f32 %v2626_v6, 0.0  ;;  %v2627_v20 = vadd.f32 %v9489_v51, %v2576_v16  ;;  %7919 = vmatprep.mubr.bf16.mxu0 %v2717_v14  ;;  %v8769_v16 = vld [vmem:[%s10200_s2 + $0x398] sm:$0xff]  }
 0x4a8   : > { %v2650_v23 = vmul.f32 %v2639_v13, %v9182_v9  ;;  %v2640_v19 = vmax.f32 %v2629_v15, 0.0  ;;  %7920 = vmatmul.mubr.bf16.vlgmr.msra.gmra.mrb[40].mxu0 %v2718_v10  ;;  %v8767_v10 = vld [vmem:[%s10200_s2 + $0x388] sm:$0xff]  }
 0x4a9   : > { %v2648_v24 = vmul.f32 %v2637_v18, %v9172_v59  ;;  %v2638_v22 = vmax.f32 %v2627_v20, 0.0  ;;  %7932 = vmatpush3.bf16.msra.mxu0 %v8758_v33  ;;  %v8770_v18 = vld [vmem:[%s10200_s2 + $0x3a0] sm:$0xff]  }
 0x4aa   : > { %2661 = vst [vmem:[#allocation2 + $0x38] sm:$0xff] %v2650_v23  ;;  %v2651_v28 = vmul.f32 %v2640_v19, %v9191_v21  ;;  %7933 = vmatprep.subr.bf16.mxu0 %v8759_v17  ;;  %v2666_v60 = vld [vmem:[#allocation2 + $0x7] sm:$0xff] }
 0x4ab   : > { %2659 = vst [vmem:[#allocation2 + $0x28] sm:$0xff] %v2648_v24  ;;  %v2649_v30 = vmul.f32 %v2638_v22, %v9178_v3  ;;  %v7901_v31 = vpop.f32.mrb[36].mxu1  ;;  %v2669_v4 = vld [vmem:[#allocation2 + $0x1f] sm:$0xff]  ;;  %v8771_v22 = vld [vmem:[%s10200_s2 + $0x3a8] sm:$0xff]  }
 0x4ac   : > { %2662 = vst [vmem:[#allocation2 + $0x40] sm:$0xff] %v2651_v28  ;;  %v2613_v25 = vadd.f32 %v7901_v31, %v2453_v39  ;;  %v2589_v27 = vpop.f32.mrb[37].mxu1  ;;  %v2720_v32 = vpack.c.bf16 %v2651_v28, %v2650_v23  ;;  %v2667_v57 = vld [vmem:[#allocation2 + $0xf] sm:$0xff]  ;;  %v2668_v63 = vld [vmem:[#allocation2 + $0x17] sm:$0xff] }
 0x4ad   : > { %2660 = vst [vmem:[#allocation2 + $0x30] sm:$0xff] %v2649_v30  ;;  %v2611_v34 = vadd.f32 %v2589_v27, %v2445_v42  ;;  %7934 = vmatpush3.bf16.msra.mxu0 %v8759_v17  ;;  %v7902_v33 = vpop.f32.mrb[38].mxu1  ;;  %v2719_v35 = vpack.c.bf16 %v2649_v30, %v2648_v24  ;;  %v2677_v61 = vpack.c.bf16 %v2667_v57, %v2666_v60  ;;  %v2683_v23 = vld [vmem:[#allocation2 + $0x9] sm:$0xff]  ;;  %v2684_v19 = vld [vmem:[#allocation2 + $0x11] sm:$0xff] }
 0x4ae   : > { %v2632_v36 = vadd.f32 %v9489_v51, %v2613_v25  ;;  %v2592_v37 = vpop.f32.mrb[39].mxu1  ;;  %7935 = vmatprep.subr.bf16.mxu0 %v8760_v29  ;;  %v2678_v7 = vpack.c.bf16 %v2669_v4, %v2668_v63  ;;  %v2694_v28 = vpack.c.bf16 %v2684_v19, %v2683_v23  ;;  %v8773_v30 = vld [vmem:[%s10200_s2 + $0x3b8] sm:$0xff]  }
 0x4af   : > { %v2630_v40 = vadd.f32 %v9489_v51, %v2611_v34  ;;  %v2612_v43 = vadd.f32 %v2592_v37, %v9484_v50  ;;  %7923 = vmatprep.mubr.bf16.mxu0 %v2719_v35  ;;  %v8781_v57 = vld [vmem:[%s10200_s2 + $0x438] sm:$0xff]  }
 0x4b0   : > { %v2643_v39 = vmax.f32 %v2632_v36, 0.0  ;;  %7924 = vmatmul.mubr.bf16.gmra.mrb[44].mxu0 %v2720_v32  ;;  %v2685_v32 = vld [vmem:[#allocation2 + $0x19] sm:$0xff] }
 0x4b1   : > { %v2641_v44 = vmax.f32 %v2630_v40, 0.0  ;;  %v2631_v42 = vadd.f32 %v9489_v51, %v2612_v43  ;;  %7936 = vmatpush3.bf16.msra.mxu0 %v8760_v29  ;;  %v8763_v51 = vld [vmem:[%s10200_s2 + $0x328] sm:$0xff]   ;;  %v8772_v29 = vld [vmem:[%s10200_s2 + $0x3b0] sm:$0xff]  }
 0x4b2   : > { %v2654_v52 = vmul.f32 %v2643_v39, %v9209_v41  ;;  %7937 = vmatprep.subr.bf16.mxu0 %v8761_v38  ;;  %v2670_v8 = vld [vmem:[#allocation2 + $0x27] sm:$0xff] }
 0x4b3   : > { %v2652_v55 = vmul.f32 %v2641_v44, %v9198_v26  ;;  %v2642_v49 = vmax.f32 %v2631_v42, 0.0  ;;  %v2673_v12 = vld [vmem:[#allocation2 + $0x3f] sm:$0xff] }
 0x4b4   : > { %2665 = vst [vmem:[#allocation2 + $0x58] sm:$0xff] %v2654_v52  ;;  %v2722_v58 = vpack.c.bf16 %v2654_v52, %v2654_v52  ;;  %v2671_v1 = vld [vmem:[#allocation2 + $0x2f] sm:$0xff]  ;;  %v2672_v6 = vld [vmem:[#allocation2 + $0x37] sm:$0xff]  ;;  %v2686_v31 = vld [vmem:[#allocation2 + $0x21] sm:$0xff] }
 0x4b5   : > { %2663 = vst [vmem:[#allocation2 + $0x48] sm:$0xff] %v2652_v55  ;;  %v2653_v50 = vmul.f32 %v2642_v49, %v9217_v45  ;;  %7938 = vmatpush3.bf16.msra.mxu0 %v8761_v38  ;;  %v2679_v11 = vpack.c.bf16 %v2671_v1, %v2670_v8  ;;  %v2680_v13 = vpack.c.bf16 %v2673_v12, %v2672_v6  ;;  %v2687_v25 = vld [vmem:[#allocation2 + $0x29] sm:$0xff]  ;;  %v2688_v27 = vld [vmem:[#allocation2 + $0x31] sm:$0xff]  ;;  %v2689_v38 = vld [vmem:[#allocation2 + $0x39] sm:$0xff] }
 0x4b6   : > { %7939 = vmatprep.subr.bf16.mxu0 %v8762_v54  ;;  %v2695_v34 = vpack.c.bf16 %v2686_v31, %v2685_v32  ;;  %v2696_v33 = vpack.c.bf16 %v2688_v27, %v2687_v25  ;;  %v8774_v42 = vld [vmem:[%s10200_s2 + $0x400] sm:$0xff]   ;;  %v8775_v52 = vld [vmem:[%s10200_s2 + $0x408] sm:$0xff]  }
 0x4b7   : > { %2664 = vst [vmem:[#allocation2 + $0x50] sm:$0xff] %v2653_v50  ;;  %v2721_v56 = vpack.c.bf16 %v2653_v50, %v2652_v55  ;;  %7987 = vmatprep.subr.bf16.mxu1 %v8774_v42  ;;  %v8777_v55 = vld [vmem:[%s10200_s2 + $0x418] sm:$0xff]   ;;  %v8778_v49 = vld [vmem:[%s10200_s2 + $0x420] sm:$0xff]   ;;  %v8779_v50 = vld [vmem:[%s10200_s2 + $0x428] sm:$0xff]  }
 0x4b8   : > { %7988 = vmatpush3.bf16.msra.mxu1 %v8774_v42 }
 0x4b9   : > { %7940 = vmatpush3.bf16.msra.mxu0 %v8762_v54  ;;  %7927 = vmatprep.mubr.bf16.mxu0 %v2721_v56  ;;  %v8776_v54 = vld [vmem:[%s10200_s2 + $0x410] sm:$0xff]   ;;  %v8782_v56 = vld [vmem:[%s10200_s2 + $0x3c0] sm:$0xff]  }
 0x4ba   : > { %7928 = vmatmul.mubr.bf16.gmra.mrb[48].mxu0 %v2722_v58  ;;  %7941 = vmatprep.subr.bf16.mxu0 %v8763_v51 }
 0x4bb   : > { %7947 = vmatprep.mubr.bf16.mxu0 %v2677_v61  ;;  %v2693_v39 = vld [vmem:[#allocation2 + $0x59] sm:$0xff]  ;;  %7989 = vmatprep.subr.bf16.mxu1 %v8775_v52 }
 0x4bc   : > { %v2674_v15 = vld [vmem:[#allocation2 + $0x47] sm:$0xff]  ;;  %v2699_v44 = vpack.c.bf16 %v2693_v39, %v2693_v39  ;;  %7990 = vmatpush3.bf16.msra.mxu1 %v8775_v52 }
 0x4bd   : > { %7942 = vmatpush3.bf16.msra.mxu0 %v8763_v51  ;;  %v2690_v35 = vld [vmem:[#allocation2 + $0x41] sm:$0xff]  ;;  %7991 = vmatprep.subr.bf16.mxu1 %v8776_v54  ;;  %v8780_v51 = vld [vmem:[%s10200_s2 + $0x430] sm:$0xff]  }
 0x4be   : > { %7943 = vmatprep.subr.bf16.mxu0 %v8764_v62  ;;  %v2675_v14 = vld [vmem:[#allocation2 + $0x4f] sm:$0xff]  ;;  %v2676_v20 = vld [vmem:[#allocation2 + $0x57] sm:$0xff]  ;;  %v2697_v40 = vpack.c.bf16 %v2690_v35, %v2689_v38 }
 0x4bf   : > { %v2681_v17 = vpack.c.bf16 %v2675_v14, %v2674_v15  ;;  %v2682_v24 = vpack.c.bf16 %v2676_v20, %v2676_v20  ;;  %v2691_v36 = vld [vmem:[#allocation2 + $0x49] sm:$0xff]  ;;  %v2692_v37 = vld [vmem:[#allocation2 + $0x51] sm:$0xff] }
 0x4c0   : > { %v2698_v43 = vpack.c.bf16 %v2692_v37, %v2691_v36  ;;  %7992 = vmatpush3.bf16.msra.mxu1 %v8776_v54  ;;  %v8783_v37 = vld [vmem:[%s10200_s2 + $0x3c8] sm:$0xff]   ;;  %v8784_v54 = vld [vmem:[%s10200_s2 + $0x3d0] sm:$0xff]  }
 0x4c1   : > { %7944 = vmatpush3.bf16.msra.mxu0 %v8764_v62  ;;  %7993 = vmatprep.subr.bf16.mxu1 %v8777_v55 }
 0x4c2   : > { %7945 = vmatprep.subr.bf16.mxu0 %v8765_v0 }
 0x4c4   : > { %7994 = vmatpush3.bf16.msra.mxu1 %v8777_v55 }
 0x4c5   : > { %7946 = vmatpush3.bf16.msra.mxu0 %v8765_v0  ;;  %7995 = vmatprep.subr.bf16.mxu1 %v8778_v49 }
 0x4c6   : > { %7959 = vmatprep.subr.bf16.mxu0 %v8766_v2 }
 0x4c8   : > { %7948 = vmatmul.mubr.bf16.vlgmr.msra.gmra.mrb[40].mxu0 %v2678_v7  ;;  %7996 = vmatpush3.bf16.msra.mxu1 %v8778_v49 }
 0x4c9   : > { %7951 = vmatprep.mubr.bf16.mxu0 %v2679_v11  ;;  %7960 = vmatpush3.bf16.msra.mxu0 %v8766_v2 }
 0x4ca   : > { %7961 = vmatprep.subr.bf16.mxu0 %v8767_v10  ;;  %7997 = vmatprep.subr.bf16.mxu1 %v8779_v50 }
 0x4cc   : > { %7998 = vmatpush3.bf16.msra.mxu1 %v8779_v50 }
 0x4cd   : > { %7962 = vmatpush3.bf16.msra.mxu0 %v8767_v10  ;;  %7999 = vmatprep.subr.bf16.mxu1 %v8780_v51  ;;  %v9591_v10 = vld [vmem:[%s10201_s3 + $0x4] ss:$0 sm:$0xff] }
 0x4ce   : > { %7963 = vmatprep.subr.bf16.mxu0 %v8768_v5 }
 0x4d0   : > { %7952 = vmatmul.mubr.bf16.gmra.mrb[44].mxu0 %v2680_v13  ;;  %8000 = vmatpush3.bf16.msra.mxu1 %v8780_v51 }
 0x4d1   : > { %7955 = vmatprep.mubr.bf16.mxu0 %v2681_v17  ;;  %7964 = vmatpush3.bf16.msra.mxu0 %v8768_v5 }
 0x4d2   : > { %7965 = vmatprep.subr.bf16.mxu0 %v8769_v16  ;;  %8001 = vmatprep.subr.bf16.mxu1 %v8781_v57 }
 0x4d4   : > { %8002 = vmatpush3.bf16.msra.mxu1 %v8781_v57 }
 0x4d5   : > { %7966 = vmatpush3.bf16.msra.mxu0 %v8769_v16  ;;  %8015 = vmatprep.subr.bf16.mxu1 %v8782_v56 }
 0x4d6   : > { %7967 = vmatprep.subr.bf16.mxu0 %v8770_v18 }
 0x4d8   : > { %7956 = vmatmul.mubr.bf16.gmra.mrb[52].mxu0 %v2682_v24 }
 0x4d9   : > { %7968 = vmatpush3.bf16.msra.mxu0 %v8770_v18  ;;  %7975 = vmatprep.mubr.bf16.mxu0 %v2694_v28 }
 0x4da   : > { %7969 = vmatprep.subr.bf16.mxu0 %v8771_v22 }
 0x4dd   : > { %7970 = vmatpush3.bf16.msra.mxu0 %v8771_v22 }
 0x4de   : > { %7971 = vmatprep.subr.bf16.mxu0 %v8772_v29 }
 0x4e1   : > { %7972 = vmatpush3.bf16.msra.mxu0 %v8772_v29 }
 0x4e2   : > { %7973 = vmatprep.subr.bf16.mxu0 %v8773_v30 }
 0x4e5   : > { %7974 = vmatpush3.bf16.msra.mxu0 %v8773_v30 }
 0x4e8   : > { %7976 = vmatmul.mubr.bf16.vlgmr.msra.gmra.mrb[40].mxu0 %v2695_v34 }
 0x4e9   : > { %7979 = vmatprep.mubr.bf16.mxu0 %v2696_v33 }
 0x4f0   : > { %7980 = vmatmul.mubr.bf16.gmra.mrb[44].mxu0 %v2697_v40 }
 0x4f1   : > { %7983 = vmatprep.mubr.bf16.mxu0 %v2698_v43 }
 0x4f8   : > { %7984 = vmatmul.mubr.bf16.gmra.mrb[56].mxu0 %v2699_v44 }
 0x58d   : > { %v7929_v58 = vpop.f32.mrb[48].mxu0 }
 0x58e   : > { %v2854_v60 = vpop.f32.mrb[49].mxu0 }
 0x58f   : > { %v7930_v61 = vpop.f32.mrb[50].mxu0 }
 0x590   : > { %v2857_v62 = vpop.f32.mrb[51].mxu0 }
 0x5ab   : > { %v7957_v0 = vpop.f32.mrb[52].mxu0 }
 0x5ac   : > { %v2991_v2 = vadd.f32 %v7957_v0, %v7929_v58  ;;  %v2982_v63 = vpop.f32.mrb[53].mxu0  ;;  %v8785_v0 = vld [vmem:[%s10200_s2 + $0x3d8] sm:$0xff]  }
 0x5ad   : > { %v2983_v4 = vadd.f32 %v2982_v63, %v2854_v60  ;;  %v7958_v1 = vpop.f32.mrb[54].mxu0 }
 0x5ae   : > { %v2985_v7 = vpop.f32.mrb[55].mxu0 }
 0x5af   : > { %v9586_v8 = vadd.f32 %v2985_v7, %v2857_v62 }
 0x5bb   : > { %v7977_v11 = vpop.f32.mrb[40].mxu0 }
 0x5bc   : > { %v3162_v5 = vadd.f32 %v7977_v11, %v9591_v10  ;;  %v3095_v6 = vpop.f32.mrb[41].mxu0 }
 0x5bd   : > { %v3160_v12 = vadd.f32 %v9591_v10, %v3095_v6  ;;  %v7978_v14 = vpop.f32.mrb[42].mxu0 }
 0x5be   : > { %v3173_v13 = vmax.f32 %v3162_v5, 0.0  ;;  %v3163_v15 = vadd.f32 %v7978_v14, %v9591_v10  ;;  %v3098_v16 = vpop.f32.mrb[43].mxu0  ;;  %v8786_v5 = vld [vmem:[%s10200_s2 + $0x3e0] sm:$0xff]  }
 0x5bf   : > { %v3171_v17 = vmax.f32 %v3160_v12, 0.0  ;;  %v3161_v18 = vadd.f32 %v9591_v10, %v3098_v16 }
 0x5c0   : > { %v3184_v20 = vmul.f32 %v3173_v13, %v9158_v47  ;;  %v3174_v23 = vmax.f32 %v3163_v15, 0.0 }
 0x5c1   : > { %v3182_v19 = vmul.f32 %v3171_v17, %v9156_v46  ;;  %v3172_v24 = vmax.f32 %v3161_v18, 0.0  ;;  %v8788_v18 = vld [vmem:[%s10200_s2 + $0x3f0] sm:$0xff]  }
 0x5c2   : > { %3195 = vst [vmem:[#allocation2 + $0x18] sm:$0xff] %v3184_v20  ;;  %v3185_v22 = vmul.f32 %v3174_v23, %v9168_v53  ;;  %v8790_v23 = vld [vmem:[%s10200_s2 + $0x440] sm:$0xff]  }
 0x5c3   : > { %3193 = vst [vmem:[#allocation2 + $0x8] sm:$0xff] %v3182_v19  ;;  %v3183_v28 = vmul.f32 %v3172_v24, %v9160_v48  ;;  %v7981_v29 = vpop.f32.mrb[44].mxu0 }
 0x5c4   : > { %v3256_v30 = vpack.c.bf16 %v3185_v22, %v3184_v20  ;;  %3196 = vst [vmem:[#allocation2 + $0x20] sm:$0xff] %v3185_v22  ;;  %v3166_v31 = vadd.f32 %v7981_v29, %v9591_v10  ;;  %v3111_v25 = vpop.f32.mrb[45].mxu0  ;;  %v8789_v20 = vld [vmem:[%s10200_s2 + $0x3f8] sm:$0xff]  }
 0x5c5   : > { %3194 = vst [vmem:[#allocation2 + $0x10] sm:$0xff] %v3183_v28  ;;  %v3164_v27 = vadd.f32 %v9591_v10, %v3111_v25  ;;  %v7982_v32 = vpop.f32.mrb[46].mxu0  ;;  %v3255_v34 = vpack.c.bf16 %v3183_v28, %v3182_v19  ;;  %v8792_v25 = vld [vmem:[%s10200_s2 + $0x450] sm:$0xff]  }
 0x5c6   : > { %v3177_v33 = vmax.f32 %v3166_v31, 0.0  ;;  %v3167_v35 = vadd.f32 %v7982_v32, %v9591_v10  ;;  %v3114_v36 = vpop.f32.mrb[47].mxu0 }
 0x5c7   : > { %v3175_v38 = vmax.f32 %v3164_v27, 0.0  ;;  %v3165_v40 = vadd.f32 %v9591_v10, %v3114_v36  ;;  %8003 = vmatprep.mubr.bf16.mxu1 %v3255_v34  ;;  %v8793_v36 = vld [vmem:[%s10200_s2 + $0x458] sm:$0xff]  }
 0x5c8   : > { %v3188_v43 = vmul.f32 %v3177_v33, %v9182_v9  ;;  %v3178_v39 = vmax.f32 %v3167_v35, 0.0  ;;  %8004 = vmatmul.mubr.bf16.vlgmr.msra.gmra.mrb[40].mxu1 %v3256_v30  ;;  %v8791_v30 = vld [vmem:[%s10200_s2 + $0x448] sm:$0xff]  }
 0x5c9   : > { %v3186_v44 = vmul.f32 %v3175_v38, %v9172_v59  ;;  %v3176_v42 = vmax.f32 %v3165_v40, 0.0  ;;  %8016 = vmatpush3.bf16.msra.mxu1 %v8782_v56  ;;  %v8794_v38 = vld [vmem:[%s10200_s2 + $0x460] sm:$0xff]  }
 0x5ca   : > { %3199 = vst [vmem:[#allocation2 + $0x38] sm:$0xff] %v3188_v43  ;;  %v3189_v52 = vmul.f32 %v3178_v39, %v9191_v21  ;;  %8017 = vmatprep.subr.bf16.mxu1 %v8783_v37  ;;  %v3204_v16 = vld [vmem:[#allocation2 + $0x7] sm:$0xff] }
 0x5cb   : > { %3197 = vst [vmem:[#allocation2 + $0x28] sm:$0xff] %v3186_v44  ;;  %v3187_v55 = vmul.f32 %v3176_v42, %v9178_v3  ;;  %v7985_v49 = vpop.f32.mrb[56].mxu0  ;;  %v3207_v24 = vld [vmem:[#allocation2 + $0x1f] sm:$0xff]  ;;  %v8795_v42 = vld [vmem:[%s10200_s2 + $0x468] sm:$0xff]  }
 0x5cc   : > { %3200 = vst [vmem:[#allocation2 + $0x40] sm:$0xff] %v3189_v52  ;;  %v3151_v50 = vadd.f32 %v7985_v49, %v2991_v2  ;;  %v3127_v51 = vpop.f32.mrb[57].mxu0  ;;  %v3258_v57 = vpack.c.bf16 %v3189_v52, %v3188_v43  ;;  %v3205_v14 = vld [vmem:[#allocation2 + $0xf] sm:$0xff]  ;;  %v3206_v19 = vld [vmem:[#allocation2 + $0x17] sm:$0xff] }
 0x5cd   : > { %3198 = vst [vmem:[#allocation2 + $0x30] sm:$0xff] %v3187_v55  ;;  %v3149_v58 = vadd.f32 %v3127_v51, %v2983_v4  ;;  %8018 = vmatpush3.bf16.msra.mxu1 %v8783_v37  ;;  %v7986_v56 = vpop.f32.mrb[58].mxu0  ;;  %v3257_v60 = vpack.c.bf16 %v3187_v55, %v3186_v44  ;;  %v3215_v17 = vpack.c.bf16 %v3205_v14, %v3204_v16  ;;  %v3221_v43 = vld [vmem:[#allocation2 + $0x9] sm:$0xff]  ;;  %v3222_v39 = vld [vmem:[#allocation2 + $0x11] sm:$0xff] }
 0x5ce   : > { %v3170_v61 = vadd.f32 %v9591_v10, %v3151_v50  ;;  %v3130_v62 = vpop.f32.mrb[59].mxu0  ;;  %8019 = vmatprep.subr.bf16.mxu1 %v8784_v54  ;;  %v3216_v28 = vpack.c.bf16 %v3207_v24, %v3206_v19  ;;  %v3232_v52 = vpack.c.bf16 %v3222_v39, %v3221_v43  ;;  %v8797_v55 = vld [vmem:[%s10200_s2 + $0x478] sm:$0xff]  }
 0x5cf   : > { %v3168_v63 = vadd.f32 %v9591_v10, %v3149_v58  ;;  %v3150_v1 = vadd.f32 %v3130_v62, %v9586_v8  ;;  %8007 = vmatprep.mubr.bf16.mxu1 %v3257_v60  ;;  %v8805_v14 = vld [vmem:[%s10200_s2 + $0x4f8] sm:$0xff]  }
 0x5d0   : > { %v3181_v2 = vmax.f32 %v3170_v61, 0.0  ;;  %8008 = vmatmul.mubr.bf16.gmra.mrb[44].mxu1 %v3258_v57  ;;  %v3223_v57 = vld [vmem:[#allocation2 + $0x19] sm:$0xff] }
 0x5d1   : > { %v3179_v7 = vmax.f32 %v3168_v63, 0.0  ;;  %v3169_v4 = vadd.f32 %v9591_v10, %v3150_v1  ;;  %8020 = vmatpush3.bf16.msra.mxu1 %v8784_v54  ;;  %v8787_v10 = vld [vmem:[%s10200_s2 + $0x3e8] sm:$0xff]   ;;  %v8796_v54 = vld [vmem:[%s10200_s2 + $0x470] sm:$0xff]  }
 0x5d2   : > { %v3192_v11 = vmul.f32 %v3181_v2, %v9209_v41  ;;  %8021 = vmatprep.subr.bf16.mxu1 %v8785_v0  ;;  %v3208_v29 = vld [vmem:[#allocation2 + $0x27] sm:$0xff] }
 0x5d3   : > { %v3190_v6 = vmul.f32 %v3179_v7, %v9198_v26  ;;  %v3180_v12 = vmax.f32 %v3169_v4, 0.0  ;;  %v3211_v32 = vld [vmem:[#allocation2 + $0x3f] sm:$0xff] }
 0x5d4   : > { %3203 = vst [vmem:[#allocation2 + $0x58] sm:$0xff] %v3192_v11  ;;  %v3260_v15 = vpack.c.bf16 %v3192_v11, %v3192_v11  ;;  %v3209_v22 = vld [vmem:[#allocation2 + $0x2f] sm:$0xff]  ;;  %v3210_v27 = vld [vmem:[#allocation2 + $0x37] sm:$0xff]  ;;  %v3224_v49 = vld [vmem:[#allocation2 + $0x21] sm:$0xff] }
 0x5d5   : > { %3201 = vst [vmem:[#allocation2 + $0x48] sm:$0xff] %v3190_v6  ;;  %v3191_v8 = vmul.f32 %v3180_v12, %v9217_v45  ;;  %8022 = vmatpush3.bf16.msra.mxu1 %v8785_v0  ;;  %v3217_v31 = vpack.c.bf16 %v3209_v22, %v3208_v29  ;;  %v3218_v33 = vpack.c.bf16 %v3211_v32, %v3210_v27  ;;  %v3225_v50 = vld [vmem:[#allocation2 + $0x29] sm:$0xff]  ;;  %v3226_v51 = vld [vmem:[#allocation2 + $0x31] sm:$0xff]  ;;  %v3227_v0 = vld [vmem:[#allocation2 + $0x39] sm:$0xff] }
 0x5d6   : > { %8023 = vmatprep.subr.bf16.mxu1 %v8786_v5  ;;  %v3233_v58 = vpack.c.bf16 %v3224_v49, %v3223_v57  ;;  %v3234_v56 = vpack.c.bf16 %v3226_v51, %v3225_v50  ;;  %v8798_v4 = vld [vmem:[%s10200_s2 + $0x4c0] sm:$0xff]   ;;  %v8799_v11 = vld [vmem:[%s10200_s2 + $0x4c8] sm:$0xff]  }
 0x5d7   : > { %3202 = vst [vmem:[#allocation2 + $0x50] sm:$0xff] %v3191_v8  ;;  %v3259_v13 = vpack.c.bf16 %v3191_v8, %v3190_v6  ;;  %8071 = vmatprep.subr.bf16.mxu0 %v8798_v4  ;;  %v8801_v6 = vld [vmem:[%s10200_s2 + $0x4d8] sm:$0xff]   ;;  %v8802_v12 = vld [vmem:[%s10200_s2 + $0x4e0] sm:$0xff]   ;;  %v8803_v8 = vld [vmem:[%s10200_s2 + $0x4e8] sm:$0xff]  }
 0x5d8   : > { %8072 = vmatpush3.bf16.msra.mxu0 %v8798_v4 }
 0x5d9   : > { %8024 = vmatpush3.bf16.msra.mxu1 %v8786_v5  ;;  %8011 = vmatprep.mubr.bf16.mxu1 %v3259_v13  ;;  %v8800_v5 = vld [vmem:[%s10200_s2 + $0x4d0] sm:$0xff]   ;;  %v8806_v13 = vld [vmem:[%s10200_s2 + $0x480] sm:$0xff]  }
 0x5da   : > { %8012 = vmatmul.mubr.bf16.gmra.mrb[48].mxu1 %v3260_v15  ;;  %8025 = vmatprep.subr.bf16.mxu1 %v8787_v10 }
 0x5db   : > { %8031 = vmatprep.mubr.bf16.mxu1 %v3215_v17  ;;  %v3231_v2 = vld [vmem:[#allocation2 + $0x59] sm:$0xff]  ;;  %8073 = vmatprep.subr.bf16.mxu0 %v8799_v11 }
 0x5dc   : > { %v3212_v35 = vld [vmem:[#allocation2 + $0x47] sm:$0xff]  ;;  %v3237_v7 = vpack.c.bf16 %v3231_v2, %v3231_v2  ;;  %8074 = vmatpush3.bf16.msra.mxu0 %v8799_v11 }
 0x5dd   : > { %8026 = vmatpush3.bf16.msra.mxu1 %v8787_v10  ;;  %v3228_v60 = vld [vmem:[#allocation2 + $0x41] sm:$0xff]  ;;  %8075 = vmatprep.subr.bf16.mxu0 %v8800_v5  ;;  %v8804_v10 = vld [vmem:[%s10200_s2 + $0x4f0] sm:$0xff]  }
 0x5de   : > { %8027 = vmatprep.subr.bf16.mxu1 %v8788_v18  ;;  %v3213_v34 = vld [vmem:[#allocation2 + $0x4f] sm:$0xff]  ;;  %v3214_v40 = vld [vmem:[#allocation2 + $0x57] sm:$0xff]  ;;  %v3235_v63 = vpack.c.bf16 %v3228_v60, %v3227_v0 }
 0x5df   : > { %v3219_v37 = vpack.c.bf16 %v3213_v34, %v3212_v35  ;;  %v3220_v44 = vpack.c.bf16 %v3214_v40, %v3214_v40  ;;  %v3229_v61 = vld [vmem:[#allocation2 + $0x49] sm:$0xff]  ;;  %v3230_v62 = vld [vmem:[#allocation2 + $0x51] sm:$0xff] }
 0x5e0   : > { %v3236_v1 = vpack.c.bf16 %v3230_v62, %v3229_v61  ;;  %8076 = vmatpush3.bf16.msra.mxu0 %v8800_v5  ;;  %v8807_v62 = vld [vmem:[%s10200_s2 + $0x488] sm:$0xff]   ;;  %v8808_v5 = vld [vmem:[%s10200_s2 + $0x490] sm:$0xff]  }
 0x5e1   : > { %8028 = vmatpush3.bf16.msra.mxu1 %v8788_v18  ;;  %8077 = vmatprep.subr.bf16.mxu0 %v8801_v6 }
 0x5e2   : > { %8029 = vmatprep.subr.bf16.mxu1 %v8789_v20 }
 0x5e4   : > { %8078 = vmatpush3.bf16.msra.mxu0 %v8801_v6 }
 0x5e5   : > { %8030 = vmatpush3.bf16.msra.mxu1 %v8789_v20  ;;  %8079 = vmatprep.subr.bf16.mxu0 %v8802_v12 }
 0x5e6   : > { %8043 = vmatprep.subr.bf16.mxu1 %v8790_v23 }
 0x5e8   : > { %8032 = vmatmul.mubr.bf16.vlgmr.msra.gmra.mrb[40].mxu1 %v3216_v28  ;;  %8080 = vmatpush3.bf16.msra.mxu0 %v8802_v12 }
 0x5e9   : > { %8035 = vmatprep.mubr.bf16.mxu1 %v3217_v31  ;;  %8044 = vmatpush3.bf16.msra.mxu1 %v8790_v23 }
 0x5ea   : > { %8045 = vmatprep.subr.bf16.mxu1 %v8791_v30  ;;  %8081 = vmatprep.subr.bf16.mxu0 %v8803_v8 }
 0x5ec   : > { %8082 = vmatpush3.bf16.msra.mxu0 %v8803_v8 }
 0x5ed   : > { %8046 = vmatpush3.bf16.msra.mxu1 %v8791_v30  ;;  %8083 = vmatprep.subr.bf16.mxu0 %v8804_v10  ;;  %v9693_v30 = vld [vmem:[%s10201_s3 + $0x5] ss:$0 sm:$0xff] }
 0x5ee   : > { %8047 = vmatprep.subr.bf16.mxu1 %v8792_v25 }
 0x5f0   : > { %8036 = vmatmul.mubr.bf16.gmra.mrb[44].mxu1 %v3218_v33  ;;  %8084 = vmatpush3.bf16.msra.mxu0 %v8804_v10 }
 0x5f1   : > { %8039 = vmatprep.mubr.bf16.mxu1 %v3219_v37  ;;  %8048 = vmatpush3.bf16.msra.mxu1 %v8792_v25 }
 0x5f2   : > { %8049 = vmatprep.subr.bf16.mxu1 %v8793_v36  ;;  %8085 = vmatprep.subr.bf16.mxu0 %v8805_v14 }
 0x5f4   : > { %8086 = vmatpush3.bf16.msra.mxu0 %v8805_v14 }
 0x5f5   : > { %8050 = vmatpush3.bf16.msra.mxu1 %v8793_v36  ;;  %8099 = vmatprep.subr.bf16.mxu0 %v8806_v13 }
 0x5f6   : > { %8051 = vmatprep.subr.bf16.mxu1 %v8794_v38 }
 0x5f8   : > { %8040 = vmatmul.mubr.bf16.gmra.mrb[52].mxu1 %v3220_v44 }
 0x5f9   : > { %8052 = vmatpush3.bf16.msra.mxu1 %v8794_v38  ;;  %8059 = vmatprep.mubr.bf16.mxu1 %v3232_v52 }
 0x5fa   : > { %8053 = vmatprep.subr.bf16.mxu1 %v8795_v42 }
 0x5fd   : > { %8054 = vmatpush3.bf16.msra.mxu1 %v8795_v42 }
 0x5fe   : > { %8055 = vmatprep.subr.bf16.mxu1 %v8796_v54 }
 0x601   : > { %8056 = vmatpush3.bf16.msra.mxu1 %v8796_v54 }
 0x602   : > { %8057 = vmatprep.subr.bf16.mxu1 %v8797_v55 }
 0x605   : > { %8058 = vmatpush3.bf16.msra.mxu1 %v8797_v55 }
 0x608   : > { %8060 = vmatmul.mubr.bf16.vlgmr.msra.gmra.mrb[40].mxu1 %v3233_v58 }
 0x609   : > { %8063 = vmatprep.mubr.bf16.mxu1 %v3234_v56 }
 0x610   : > { %8064 = vmatmul.mubr.bf16.gmra.mrb[44].mxu1 %v3235_v63 }
 0x611   : > { %8067 = vmatprep.mubr.bf16.mxu1 %v3236_v1 }
 0x618   : > { %8068 = vmatmul.mubr.bf16.gmra.mrb[56].mxu1 %v3237_v7 }
 0x6ad   : > { %v8013_v15 = vpop.f32.mrb[48].mxu1 }
 0x6ae   : > { %v3392_v16 = vpop.f32.mrb[49].mxu1 }
 0x6af   : > { %v8014_v17 = vpop.f32.mrb[50].mxu1 }
 0x6b0   : > { %v3395_v18 = vpop.f32.mrb[51].mxu1 }
 0x6cb   : > { %v8041_v20 = vpop.f32.mrb[52].mxu1 }
 0x6cc   : > { %v3529_v23 = vadd.f32 %v8041_v20, %v8013_v15  ;;  %v3520_v19 = vpop.f32.mrb[53].mxu1  ;;  %v8809_v20 = vld [vmem:[%s10200_s2 + $0x498] sm:$0xff]  }
 0x6cd   : > { %v3521_v24 = vadd.f32 %v3520_v19, %v3392_v16  ;;  %v8042_v22 = vpop.f32.mrb[54].mxu1 }
 0x6ce   : > { %v3523_v28 = vpop.f32.mrb[55].mxu1 }
 0x6cf   : > { %v9688_v29 = vadd.f32 %v3523_v28, %v3395_v18 }
 0x6db   : > { %v8061_v31 = vpop.f32.mrb[40].mxu1 }
 0x6dc   : > { %v3700_v25 = vadd.f32 %v8061_v31, %v9693_v30  ;;  %v3633_v27 = vpop.f32.mrb[41].mxu1 }
 0x6dd   : > { %v3698_v32 = vadd.f32 %v9693_v30, %v3633_v27  ;;  %v8062_v34 = vpop.f32.mrb[42].mxu1 }
 0x6de   : > { %v3711_v33 = vmax.f32 %v3700_v25, 0.0  ;;  %v3701_v35 = vadd.f32 %v8062_v34, %v9693_v30  ;;  %v3636_v36 = vpop.f32.mrb[43].mxu1  ;;  %v8810_v25 = vld [vmem:[%s10200_s2 + $0x4a0] sm:$0xff]  }
 0x6df   : > { %v3709_v37 = vmax.f32 %v3698_v32, 0.0  ;;  %v3699_v38 = vadd.f32 %v9693_v30, %v3636_v36 }
 0x6e0   : > { %v3722_v40 = vmul.f32 %v3711_v33, %v9158_v47  ;;  %v3712_v43 = vmax.f32 %v3701_v35, 0.0 }
 0x6e1   : > { %v3720_v39 = vmul.f32 %v3709_v37, %v9156_v46  ;;  %v3710_v44 = vmax.f32 %v3699_v38, 0.0  ;;  %v8812_v38 = vld [vmem:[%s10200_s2 + $0x4b0] sm:$0xff]  }
 0x6e2   : > { %3733 = vst [vmem:[#allocation2 + $0x18] sm:$0xff] %v3722_v40  ;;  %v3723_v42 = vmul.f32 %v3712_v43, %v9168_v53  ;;  %v8814_v43 = vld [vmem:[%s10200_s2 + $0x500] sm:$0xff]  }
 0x6e3   : > { %3731 = vst [vmem:[#allocation2 + $0x8] sm:$0xff] %v3720_v39  ;;  %v3721_v52 = vmul.f32 %v3710_v44, %v9160_v48  ;;  %v8065_v54 = vpop.f32.mrb[44].mxu1 }
 0x6e4   : > { %v3794_v55 = vpack.c.bf16 %v3723_v42, %v3722_v40  ;;  %3734 = vst [vmem:[#allocation2 + $0x20] sm:$0xff] %v3723_v42  ;;  %v3704_v49 = vadd.f32 %v8065_v54, %v9693_v30  ;;  %v3649_v50 = vpop.f32.mrb[45].mxu1  ;;  %v8813_v40 = vld [vmem:[%s10200_s2 + $0x4b8] sm:$0xff]  }
 0x6e5   : > { %3732 = vst [vmem:[#allocation2 + $0x10] sm:$0xff] %v3721_v52  ;;  %v3702_v51 = vadd.f32 %v9693_v30, %v3649_v50  ;;  %v8066_v57 = vpop.f32.mrb[46].mxu1  ;;  %v3793_v58 = vpack.c.bf16 %v3721_v52, %v3720_v39  ;;  %v8816_v50 = vld [vmem:[%s10200_s2 + $0x510] sm:$0xff]  }
 0x6e6   : > { %v3715_v56 = vmax.f32 %v3704_v49, 0.0  ;;  %v3705_v60 = vadd.f32 %v8066_v57, %v9693_v30  ;;  %v3652_v61 = vpop.f32.mrb[47].mxu1 }
 0x6e7   : > { %v3713_v0 = vmax.f32 %v3702_v51, 0.0  ;;  %v3703_v63 = vadd.f32 %v9693_v30, %v3652_v61  ;;  %8087 = vmatprep.mubr.bf16.mxu0 %v3793_v58  ;;  %v8817_v61 = vld [vmem:[%s10200_s2 + $0x518] sm:$0xff]  }
 0x6e8   : > { %v3726_v1 = vmul.f32 %v3715_v56, %v9182_v9  ;;  %v3716_v2 = vmax.f32 %v3705_v60, 0.0  ;;  %8088 = vmatmul.mubr.bf16.vlgmr.msra.gmra.mrb[60].mxu0 %v3794_v55  ;;  %v8815_v55 = vld [vmem:[%s10200_s2 + $0x508] sm:$0xff]  }
 0x6e9   : > { %v3724_v7 = vmul.f32 %v3713_v0, %v9172_v59  ;;  %v3714_v4 = vmax.f32 %v3703_v63, 0.0  ;;  %8100 = vmatpush3.bf16.msra.mxu0 %v8806_v13  ;;  %v8818_v0 = vld [vmem:[%s10200_s2 + $0x520] sm:$0xff]  }
 0x6ea   : > { %3737 = vst [vmem:[#allocation2 + $0x38] sm:$0xff] %v3726_v1  ;;  %v3727_v11 = vmul.f32 %v3716_v2, %v9191_v21  ;;  %8101 = vmatprep.subr.bf16.mxu0 %v8807_v62  ;;  %v3742_v36 = vld [vmem:[#allocation2 + $0x7] sm:$0xff] }
 0x6eb   : > { %3735 = vst [vmem:[#allocation2 + $0x28] sm:$0xff] %v3724_v7  ;;  %v3725_v6 = vmul.f32 %v3714_v4, %v9178_v3  ;;  %v8069_v12 = vpop.f32.mrb[56].mxu1  ;;  %v3745_v44 = vld [vmem:[#allocation2 + $0x1f] sm:$0xff]  ;;  %v8819_v4 = vld [vmem:[%s10200_s2 + $0x528] sm:$0xff]  }
 0x6ec   : > { %3738 = vst [vmem:[#allocation2 + $0x40] sm:$0xff] %v3727_v11  ;;  %v3689_v8 = vadd.f32 %v8069_v12, %v3529_v23  ;;  %v3665_v10 = vpop.f32.mrb[57].mxu1  ;;  %v3796_v14 = vpack.c.bf16 %v3727_v11, %v3726_v1  ;;  %v3743_v34 = vld [vmem:[#allocation2 + $0xf] sm:$0xff]  ;;  %v3744_v39 = vld [vmem:[#allocation2 + $0x17] sm:$0xff] }
 0x6ed   : > { %3736 = vst [vmem:[#allocation2 + $0x30] sm:$0xff] %v3725_v6  ;;  %v3687_v15 = vadd.f32 %v3665_v10, %v3521_v24  ;;  %8102 = vmatpush3.bf16.msra.mxu0 %v8807_v62  ;;  %v8070_v13 = vpop.f32.mrb[58].mxu1  ;;  %v3795_v16 = vpack.c.bf16 %v3725_v6, %v3724_v7  ;;  %v3753_v37 = vpack.c.bf16 %v3743_v34, %v3742_v36  ;;  %v3759_v1 = vld [vmem:[#allocation2 + $0x9] sm:$0xff]  ;;  %v3760_v2 = vld [vmem:[#allocation2 + $0x11] sm:$0xff] }
 0x6ee   : > { %v3708_v17 = vadd.f32 %v9693_v30, %v3689_v8  ;;  %v3668_v18 = vpop.f32.mrb[59].mxu1  ;;  %8103 = vmatprep.subr.bf16.mxu0 %v8808_v5  ;;  %v3754_v52 = vpack.c.bf16 %v3745_v44, %v3744_v39  ;;  %v3770_v11 = vpack.c.bf16 %v3760_v2, %v3759_v1  ;;  %v8821_v6 = vld [vmem:[%s10200_s2 + $0x538] sm:$0xff]  }
 0x6ef   : > { %v3706_v19 = vadd.f32 %v9693_v30, %v3687_v15  ;;  %v3688_v22 = vadd.f32 %v3668_v18, %v9688_v29  ;;  %8091 = vmatprep.mubr.bf16.mxu0 %v3795_v16  ;;  %v8829_v34 = vld [vmem:[%s10200_s2 + $0x5b8] sm:$0xff]  }
 0x6f0   : > { %v3719_v23 = vmax.f32 %v3708_v17, 0.0  ;;  %8092 = vmatmul.mubr.bf16.gmra.mrb[64].mxu0 %v3796_v14  ;;  %v3761_v14 = vld [vmem:[#allocation2 + $0x19] sm:$0xff] }
 0x6f1   : > { %v3717_v28 = vmax.f32 %v3706_v19, 0.0  ;;  %v3707_v24 = vadd.f32 %v9693_v30, %v3688_v22  ;;  %8104 = vmatpush3.bf16.msra.mxu0 %v8808_v5  ;;  %v8811_v30 = vld [vmem:[%s10200_s2 + $0x4a8] sm:$0xff]   ;;  %v8820_v5 = vld [vmem:[%s10200_s2 + $0x530] sm:$0xff]  }
 0x6f2   : > { %v3730_v31 = vmul.f32 %v3719_v23, %v9209_v41  ;;  %8105 = vmatprep.subr.bf16.mxu0 %v8809_v20  ;;  %v3746_v54 = vld [vmem:[#allocation2 + $0x27] sm:$0xff] }
 0x6f3   : > { %v3728_v27 = vmul.f32 %v3717_v28, %v9198_v26  ;;  %v3718_v32 = vmax.f32 %v3707_v24, 0.0  ;;  %v3749_v57 = vld [vmem:[#allocation2 + $0x3f] sm:$0xff] }
 0x6f4   : > { %3741 = vst [vmem:[#allocation2 + $0x58] sm:$0xff] %v3730_v31  ;;  %v3798_v35 = vpack.c.bf16 %v3730_v31, %v3730_v31  ;;  %v3747_v42 = vld [vmem:[#allocation2 + $0x2f] sm:$0xff]  ;;  %v3748_v51 = vld [vmem:[#allocation2 + $0x37] sm:$0xff]  ;;  %v3762_v12 = vld [vmem:[#allocation2 + $0x21] sm:$0xff] }
 0x6f5   : > { %3739 = vst [vmem:[#allocation2 + $0x48] sm:$0xff] %v3728_v27  ;;  %v3729_v29 = vmul.f32 %v3718_v32, %v9217_v45  ;;  %8106 = vmatpush3.bf16.msra.mxu0 %v8809_v20  ;;  %v3755_v49 = vpack.c.bf16 %v3747_v42, %v3746_v54  ;;  %v3756_v56 = vpack.c.bf16 %v3749_v57, %v3748_v51  ;;  %v3763_v8 = vld [vmem:[#allocation2 + $0x29] sm:$0xff]  ;;  %v3764_v10 = vld [vmem:[#allocation2 + $0x31] sm:$0xff]  ;;  %v3765_v20 = vld [vmem:[#allocation2 + $0x39] sm:$0xff] }
 0x6f6   : > { %8107 = vmatprep.subr.bf16.mxu0 %v8810_v25  ;;  %v3771_v15 = vpack.c.bf16 %v3762_v12, %v3761_v14  ;;  %v3772_v13 = vpack.c.bf16 %v3764_v10, %v3763_v8  ;;  %v8822_v24 = vld [vmem:[%s10200_s2 + $0x580] sm:$0xff]   ;;  %v8823_v31 = vld [vmem:[%s10200_s2 + $0x588] sm:$0xff]  }
 0x6f7   : > { %3740 = vst [vmem:[#allocation2 + $0x50] sm:$0xff] %v3729_v29  ;;  %v3797_v33 = vpack.c.bf16 %v3729_v29, %v3728_v27  ;;  %8155 = vmatprep.subr.bf16.mxu1 %v8822_v24  ;;  %v8825_v27 = vld [vmem:[%s10200_s2 + $0x598] sm:$0xff]   ;;  %v8826_v32 = vld [vmem:[%s10200_s2 + $0x5a0] sm:$0xff]   ;;  %v8827_v29 = vld [vmem:[%s10200_s2 + $0x5a8] sm:$0xff]  }
 0x6f8   : > { %8156 = vmatpush3.bf16.msra.mxu1 %v8822_v24 }
 0x6f9   : > { %8108 = vmatpush3.bf16.msra.mxu0 %v8810_v25  ;;  %8095 = vmatprep.mubr.bf16.mxu0 %v3797_v33  ;;  %v8824_v25 = vld [vmem:[%s10200_s2 + $0x590] sm:$0xff]   ;;  %v8830_v33 = vld [vmem:[%s10200_s2 + $0x540] sm:$0xff]  }
 0x6fa   : > { %8096 = vmatmul.mubr.bf16.gmra.mrb[68].mxu0 %v3798_v35  ;;  %8109 = vmatprep.subr.bf16.mxu0 %v8811_v30 }
 0x6fb   : > { %8115 = vmatprep.mubr.bf16.mxu0 %v3753_v37  ;;  %v3769_v23 = vld [vmem:[#allocation2 + $0x59] sm:$0xff]  ;;  %8157 = vmatprep.subr.bf16.mxu1 %v8823_v31 }
 0x6fc   : > { %v3750_v60 = vld [vmem:[#allocation2 + $0x47] sm:$0xff]  ;;  %v3775_v28 = vpack.c.bf16 %v3769_v23, %v3769_v23  ;;  %8158 = vmatpush3.bf16.msra.mxu1 %v8823_v31 }
 0x6fd   : > { %8110 = vmatpush3.bf16.msra.mxu0 %v8811_v30  ;;  %v3766_v16 = vld [vmem:[#allocation2 + $0x41] sm:$0xff]  ;;  %8159 = vmatprep.subr.bf16.mxu1 %v8824_v25  ;;  %v8828_v30 = vld [vmem:[%s10200_s2 + $0x5b0] sm:$0xff]  }
 0x6fe   : > { %8111 = vmatprep.subr.bf16.mxu0 %v8812_v38  ;;  %v3751_v58 = vld [vmem:[#allocation2 + $0x4f] sm:$0xff]  ;;  %v3752_v63 = vld [vmem:[#allocation2 + $0x57] sm:$0xff]  ;;  %v3773_v19 = vpack.c.bf16 %v3766_v16, %v3765_v20 }
 0x6ff   : > { %v3757_v62 = vpack.c.bf16 %v3751_v58, %v3750_v60  ;;  %v3758_v7 = vpack.c.bf16 %v3752_v63, %v3752_v63  ;;  %v3767_v17 = vld [vmem:[#allocation2 + $0x49] sm:$0xff]  ;;  %v3768_v18 = vld [vmem:[#allocation2 + $0x51] sm:$0xff] }
 0x700   : > { %v3774_v22 = vpack.c.bf16 %v3768_v18, %v3767_v17  ;;  %8160 = vmatpush3.bf16.msra.mxu1 %v8824_v25  ;;  %v8831_v18 = vld [vmem:[%s10200_s2 + $0x548] sm:$0xff]   ;;  %v8832_v25 = vld [vmem:[%s10200_s2 + $0x550] sm:$0xff]  }
 0x701   : > { %8112 = vmatpush3.bf16.msra.mxu0 %v8812_v38  ;;  %8161 = vmatprep.subr.bf16.mxu1 %v8825_v27 }
 0x702   : > { %8113 = vmatprep.subr.bf16.mxu0 %v8813_v40 }
 0x704   : > { %8162 = vmatpush3.bf16.msra.mxu1 %v8825_v27 }
 0x705   : > { %8114 = vmatpush3.bf16.msra.mxu0 %v8813_v40  ;;  %8163 = vmatprep.subr.bf16.mxu1 %v8826_v32 }
 0x706   : > { %8127 = vmatprep.subr.bf16.mxu0 %v8814_v43 }
 0x708   : > { %8116 = vmatmul.mubr.bf16.vlgmr.msra.gmra.mrb[60].mxu0 %v3754_v52  ;;  %8164 = vmatpush3.bf16.msra.mxu1 %v8826_v32 }
 0x709   : > { %8119 = vmatprep.mubr.bf16.mxu0 %v3755_v49  ;;  %8128 = vmatpush3.bf16.msra.mxu0 %v8814_v43 }
 0x70a   : > { %8129 = vmatprep.subr.bf16.mxu0 %v8815_v55  ;;  %8165 = vmatprep.subr.bf16.mxu1 %v8827_v29 }
 0x70c   : > { %8166 = vmatpush3.bf16.msra.mxu1 %v8827_v29 }
 0x70d   : > { %8130 = vmatpush3.bf16.msra.mxu0 %v8815_v55  ;;  %8167 = vmatprep.subr.bf16.mxu1 %v8828_v30  ;;  %v9795_v55 = vld [vmem:[%s10201_s3 + $0x6] ss:$0 sm:$0xff] }
 0x70e   : > { %8131 = vmatprep.subr.bf16.mxu0 %v8816_v50 }
 0x710   : > { %8120 = vmatmul.mubr.bf16.gmra.mrb[64].mxu0 %v3756_v56  ;;  %8168 = vmatpush3.bf16.msra.mxu1 %v8828_v30 }
 0x711   : > { %8123 = vmatprep.mubr.bf16.mxu0 %v3757_v62  ;;  %8132 = vmatpush3.bf16.msra.mxu0 %v8816_v50 }
 0x712   : > { %8133 = vmatprep.subr.bf16.mxu0 %v8817_v61  ;;  %8169 = vmatprep.subr.bf16.mxu1 %v8829_v34 }
 0x714   : > { %8170 = vmatpush3.bf16.msra.mxu1 %v8829_v34 }
 0x715   : > { %8134 = vmatpush3.bf16.msra.mxu0 %v8817_v61  ;;  %8183 = vmatprep.subr.bf16.mxu1 %v8830_v33 }
 0x716   : > { %8135 = vmatprep.subr.bf16.mxu0 %v8818_v0 }
 0x718   : > { %8124 = vmatmul.mubr.bf16.gmra.mrb[72].mxu0 %v3758_v7 }
 0x719   : > { %8136 = vmatpush3.bf16.msra.mxu0 %v8818_v0  ;;  %8143 = vmatprep.mubr.bf16.mxu0 %v3770_v11 }
 0x71a   : > { %8137 = vmatprep.subr.bf16.mxu0 %v8819_v4 }
 0x71d   : > { %8138 = vmatpush3.bf16.msra.mxu0 %v8819_v4 }
 0x71e   : > { %8139 = vmatprep.subr.bf16.mxu0 %v8820_v5 }
 0x721   : > { %8140 = vmatpush3.bf16.msra.mxu0 %v8820_v5 }
 0x722   : > { %8141 = vmatprep.subr.bf16.mxu0 %v8821_v6 }
 0x725   : > { %8142 = vmatpush3.bf16.msra.mxu0 %v8821_v6 }
 0x728   : > { %8144 = vmatmul.mubr.bf16.vlgmr.msra.gmra.mrb[60].mxu0 %v3771_v15 }
 0x729   : > { %8147 = vmatprep.mubr.bf16.mxu0 %v3772_v13 }
 0x730   : > { %8148 = vmatmul.mubr.bf16.gmra.mrb[64].mxu0 %v3773_v19 }
 0x731   : > { %8151 = vmatprep.mubr.bf16.mxu0 %v3774_v22 }
 0x738   : > { %8152 = vmatmul.mubr.bf16.gmra.mrb[76].mxu0 %v3775_v28 }
 0x7cd   : > { %v8097_v35 = vpop.f32.mrb[68].mxu0 }
 0x7ce   : > { %v3930_v36 = vpop.f32.mrb[69].mxu0 }
 0x7cf   : > { %v8098_v37 = vpop.f32.mrb[70].mxu0 }
 0x7d0   : > { %v3933_v38 = vpop.f32.mrb[71].mxu0 }
 0x7eb   : > { %v8125_v40 = vpop.f32.mrb[72].mxu0 }
 0x7ec   : > { %v4067_v43 = vadd.f32 %v8125_v40, %v8097_v35  ;;  %v4058_v39 = vpop.f32.mrb[73].mxu0  ;;  %v8833_v40 = vld [vmem:[%s10200_s2 + $0x558] sm:$0xff]  }
 0x7ed   : > { %v4059_v44 = vadd.f32 %v4058_v39, %v3930_v36  ;;  %v8126_v42 = vpop.f32.mrb[74].mxu0 }
 0x7ee   : > { %v4061_v52 = vpop.f32.mrb[75].mxu0 }
 0x7ef   : > { %v9790_v54 = vadd.f32 %v4061_v52, %v3933_v38 }
 0x7fb   : > { %v8145_v49 = vpop.f32.mrb[60].mxu0 }
 0x7fc   : > { %v4238_v50 = vadd.f32 %v8145_v49, %v9795_v55  ;;  %v4171_v51 = vpop.f32.mrb[61].mxu0 }
 0x7fd   : > { %v4236_v57 = vadd.f32 %v9795_v55, %v4171_v51  ;;  %v8146_v58 = vpop.f32.mrb[62].mxu0 }
 0x7fe   : > { %v4249_v56 = vmax.f32 %v4238_v50, 0.0  ;;  %v4239_v60 = vadd.f32 %v8146_v58, %v9795_v55  ;;  %v4174_v61 = vpop.f32.mrb[63].mxu0  ;;  %v8834_v50 = vld [vmem:[%s10200_s2 + $0x560] sm:$0xff]  }
 0x7ff   : > { %v4247_v62 = vmax.f32 %v4236_v57, 0.0  ;;  %v4237_v0 = vadd.f32 %v9795_v55, %v4174_v61 }
 0x800   : > { %v4260_v63 = vmul.f32 %v4249_v56, %v9158_v47  ;;  %v4250_v1 = vmax.f32 %v4239_v60, 0.0 }
 0x801   : > { %v4258_v2 = vmul.f32 %v4247_v62, %v9156_v46  ;;  %v4248_v7 = vmax.f32 %v4237_v0, 0.0  ;;  %v8836_v0 = vld [vmem:[%s10200_s2 + $0x570] sm:$0xff]  }
 0x802   : > { %4271 = vst [vmem:[#allocation2 + $0x18] sm:$0xff] %v4260_v63  ;;  %v4261_v4 = vmul.f32 %v4250_v1, %v9168_v53  ;;  %v8838_v1 = vld [vmem:[%s10200_s2 + $0x5c0] sm:$0xff]  }
 0x803   : > { %4269 = vst [vmem:[#allocation2 + $0x8] sm:$0xff] %v4258_v2  ;;  %v4259_v11 = vmul.f32 %v4248_v7, %v9160_v48  ;;  %v8149_v5 = vpop.f32.mrb[64].mxu0 }
 0x804   : > { %v4332_v6 = vpack.c.bf16 %v4261_v4, %v4260_v63  ;;  %4272 = vst [vmem:[#allocation2 + $0x20] sm:$0xff] %v4261_v4  ;;  %v4242_v12 = vadd.f32 %v8149_v5, %v9795_v55  ;;  %v4187_v8 = vpop.f32.mrb[65].mxu0  ;;  %v8837_v63 = vld [vmem:[%s10200_s2 + $0x578] sm:$0xff]  }
 0x805   : > { %4270 = vst [vmem:[#allocation2 + $0x10] sm:$0xff] %v4259_v11  ;;  %v4240_v10 = vadd.f32 %v9795_v55, %v4187_v8  ;;  %v8150_v14 = vpop.f32.mrb[66].mxu0  ;;  %v4331_v15 = vpack.c.bf16 %v4259_v11, %v4258_v2  ;;  %v8840_v8 = vld [vmem:[%s10200_s2 + $0x5d0] sm:$0xff]  }
 0x806   : > { %v4253_v13 = vmax.f32 %v4242_v12, 0.0  ;;  %v4243_v16 = vadd.f32 %v8150_v14, %v9795_v55  ;;  %v4190_v17 = vpop.f32.mrb[67].mxu0 }
 0x807   : > { %v4251_v20 = vmax.f32 %v4240_v10, 0.0  ;;  %v4241_v19 = vadd.f32 %v9795_v55, %v4190_v17  ;;  %8171 = vmatprep.mubr.bf16.mxu1 %v4331_v15  ;;  %v8841_v17 = vld [vmem:[%s10200_s2 + $0x5d8] sm:$0xff]  }
 0x808   : > { %v4264_v22 = vmul.f32 %v4253_v13, %v9182_v9  ;;  %v4254_v23 = vmax.f32 %v4243_v16, 0.0  ;;  %8172 = vmatmul.mubr.bf16.vlgmr.msra.gmra.mrb[60].mxu1 %v4332_v6  ;;  %v8839_v6 = vld [vmem:[%s10200_s2 + $0x5c8] sm:$0xff]  }
 0x809   : > { %v4262_v28 = vmul.f32 %v4251_v20, %v9172_v59  ;;  %v4252_v24 = vmax.f32 %v4241_v19, 0.0  ;;  %8184 = vmatpush3.bf16.msra.mxu1 %v8830_v33  ;;  %v8842_v20 = vld [vmem:[%s10200_s2 + $0x5e0] sm:$0xff]  }
 0x80a   : > { %4275 = vst [vmem:[#allocation2 + $0x38] sm:$0xff] %v4264_v22  ;;  %v4265_v31 = vmul.f32 %v4254_v23, %v9191_v21  ;;  %8185 = vmatprep.subr.bf16.mxu1 %v8831_v18  ;;  %v4280_v61 = vld [vmem:[#allocation2 + $0x7] sm:$0xff] }
 0x80b   : > { %4273 = vst [vmem:[#allocation2 + $0x28] sm:$0xff] %v4262_v28  ;;  %v4263_v27 = vmul.f32 %v4252_v24, %v9178_v3  ;;  %v8153_v32 = vpop.f32.mrb[76].mxu0  ;;  %v4283_v7 = vld [vmem:[#allocation2 + $0x1f] sm:$0xff]  ;;  %v8843_v24 = vld [vmem:[%s10200_s2 + $0x5e8] sm:$0xff]  }
 0x80c   : > { %4276 = vst [vmem:[#allocation2 + $0x40] sm:$0xff] %v4265_v31  ;;  %v4227_v29 = vadd.f32 %v8153_v32, %v4067_v43  ;;  %v4203_v30 = vpop.f32.mrb[77].mxu0  ;;  %v4334_v34 = vpack.c.bf16 %v4265_v31, %v4264_v22  ;;  %v4281_v58 = vld [vmem:[#allocation2 + $0xf] sm:$0xff]  ;;  %v4282_v2 = vld [vmem:[#allocation2 + $0x17] sm:$0xff] }
 0x80d   : > { %4274 = vst [vmem:[#allocation2 + $0x30] sm:$0xff] %v4263_v27  ;;  %v4225_v35 = vadd.f32 %v4203_v30, %v4059_v44  ;;  %8186 = vmatpush3.bf16.msra.mxu1 %v8831_v18  ;;  %v8154_v33 = vpop.f32.mrb[78].mxu0  ;;  %v4333_v36 = vpack.c.bf16 %v4263_v27, %v4262_v28  ;;  %v4291_v62 = vpack.c.bf16 %v4281_v58, %v4280_v61  ;;  %v4297_v22 = vld [vmem:[#allocation2 + $0x9] sm:$0xff]  ;;  %v4298_v23 = vld [vmem:[#allocation2 + $0x11] sm:$0xff] }
 0x80e   : > { %v4246_v37 = vadd.f32 %v9795_v55, %v4227_v29  ;;  %v4206_v38 = vpop.f32.mrb[79].mxu0  ;;  %8187 = vmatprep.subr.bf16.mxu1 %v8832_v25  ;;  %v4292_v11 = vpack.c.bf16 %v4283_v7, %v4282_v2  ;;  %v4308_v31 = vpack.c.bf16 %v4298_v23, %v4297_v22  ;;  %v8845_v27 = vld [vmem:[%s10200_s2 + $0x5f8] sm:$0xff]  }
 0x80f   : > { %v4244_v39 = vadd.f32 %v9795_v55, %v4225_v35  ;;  %v4226_v42 = vadd.f32 %v4206_v38, %v9790_v54  ;;  %8175 = vmatprep.mubr.bf16.mxu1 %v4333_v36  ;;  %v8853_v58 = vld [vmem:[%s10200_s2 + $0x678] sm:$0xff]  }
 0x810   : > { %v4257_v43 = vmax.f32 %v4246_v37, 0.0  ;;  %8176 = vmatmul.mubr.bf16.gmra.mrb[64].mxu1 %v4334_v34  ;;  %v4299_v34 = vld [vmem:[#allocation2 + $0x19] sm:$0xff] }
 0x811   : > { %v4255_v52 = vmax.f32 %v4244_v39, 0.0  ;;  %v4245_v44 = vadd.f32 %v9795_v55, %v4226_v42  ;;  %8188 = vmatpush3.bf16.msra.mxu1 %v8832_v25  ;;  %v8835_v55 = vld [vmem:[%s10200_s2 + $0x568] sm:$0xff]   ;;  %v8844_v25 = vld [vmem:[%s10200_s2 + $0x5f0] sm:$0xff]  }
 0x812   : > { %v4268_v49 = vmul.f32 %v4257_v43, %v9209_v41  ;;  %8189 = vmatprep.subr.bf16.mxu1 %v8833_v40  ;;  %v4284_v5 = vld [vmem:[#allocation2 + $0x27] sm:$0xff] }
 0x813   : > { %v4266_v51 = vmul.f32 %v4255_v52, %v9198_v26  ;;  %v4256_v57 = vmax.f32 %v4245_v44, 0.0  ;;  %v4287_v14 = vld [vmem:[#allocation2 + $0x3f] sm:$0xff] }
 0x814   : > { %4279 = vst [vmem:[#allocation2 + $0x58] sm:$0xff] %v4268_v49  ;;  %v4336_v60 = vpack.c.bf16 %v4268_v49, %v4268_v49  ;;  %v4285_v4 = vld [vmem:[#allocation2 + $0x2f] sm:$0xff]  ;;  %v4286_v10 = vld [vmem:[#allocation2 + $0x37] sm:$0xff]  ;;  %v4300_v32 = vld [vmem:[#allocation2 + $0x21] sm:$0xff] }
 0x815   : > { %4277 = vst [vmem:[#allocation2 + $0x48] sm:$0xff] %v4266_v51  ;;  %v4267_v54 = vmul.f32 %v4256_v57, %v9217_v45  ;;  %8190 = vmatpush3.bf16.msra.mxu1 %v8833_v40  ;;  %v4293_v12 = vpack.c.bf16 %v4285_v4, %v4284_v5  ;;  %v4294_v13 = vpack.c.bf16 %v4287_v14, %v4286_v10  ;;  %v4301_v29 = vld [vmem:[#allocation2 + $0x29] sm:$0xff]  ;;  %v4302_v30 = vld [vmem:[#allocation2 + $0x31] sm:$0xff]  ;;  %v4303_v40 = vld [vmem:[#allocation2 + $0x39] sm:$0xff] }
 0x816   : > { %8191 = vmatprep.subr.bf16.mxu1 %v8834_v50  ;;  %v4309_v35 = vpack.c.bf16 %v4300_v32, %v4299_v34  ;;  %v4310_v33 = vpack.c.bf16 %v4302_v30, %v4301_v29  ;;  %v8846_v44 = vld [vmem:[%s10200_s2 + $0x640] sm:$0xff]   ;;  %v8847_v49 = vld [vmem:[%s10200_s2 + $0x648] sm:$0xff]  }
 0x817   : > { %4278 = vst [vmem:[#allocation2 + $0x50] sm:$0xff] %v4267_v54  ;;  %v4335_v56 = vpack.c.bf16 %v4267_v54, %v4266_v51  ;;  %8239 = vmatprep.subr.bf16.mxu0 %v8846_v44  ;;  %v8849_v51 = vld [vmem:[%s10200_s2 + $0x658] sm:$0xff]   ;;  %v8850_v57 = vld [vmem:[%s10200_s2 + $0x660] sm:$0xff]   ;;  %v8851_v54 = vld [vmem:[%s10200_s2 + $0x668] sm:$0xff]  }
 0x818   : > { %8240 = vmatpush3.bf16.msra.mxu0 %v8846_v44 }
 0x819   : > { %8192 = vmatpush3.bf16.msra.mxu1 %v8834_v50  ;;  %8179 = vmatprep.mubr.bf16.mxu1 %v4335_v56  ;;  %v8848_v50 = vld [vmem:[%s10200_s2 + $0x650] sm:$0xff]   ;;  %v8854_v56 = vld [vmem:[%s10200_s2 + $0x600] sm:$0xff]  }
 0x81a   : > { %8180 = vmatmul.mubr.bf16.gmra.mrb[68].mxu1 %v4336_v60  ;;  %8193 = vmatprep.subr.bf16.mxu1 %v8835_v55 }
 0x81b   : > { %8199 = vmatprep.mubr.bf16.mxu1 %v4291_v62  ;;  %v4307_v43 = vld [vmem:[#allocation2 + $0x59] sm:$0xff]  ;;  %8241 = vmatprep.subr.bf16.mxu0 %v8847_v49 }
 0x81c   : > { %v4288_v16 = vld [vmem:[#allocation2 + $0x47] sm:$0xff]  ;;  %v4313_v52 = vpack.c.bf16 %v4307_v43, %v4307_v43  ;;  %8242 = vmatpush3.bf16.msra.mxu0 %v8847_v49 }
 0x81d   : > { %8194 = vmatpush3.bf16.msra.mxu1 %v8835_v55  ;;  %v4304_v36 = vld [vmem:[#allocation2 + $0x41] sm:$0xff]  ;;  %8243 = vmatprep.subr.bf16.mxu0 %v8848_v50  ;;  %v8852_v55 = vld [vmem:[%s10200_s2 + $0x670] sm:$0xff]  }
 0x81e   : > { %8195 = vmatprep.subr.bf16.mxu1 %v8836_v0  ;;  %v4289_v15 = vld [vmem:[#allocation2 + $0x4f] sm:$0xff]  ;;  %v4290_v19 = vld [vmem:[#allocation2 + $0x57] sm:$0xff]  ;;  %v4311_v39 = vpack.c.bf16 %v4304_v36, %v4303_v40 }
 0x81f   : > { %v4295_v18 = vpack.c.bf16 %v4289_v15, %v4288_v16  ;;  %v4296_v28 = vpack.c.bf16 %v4290_v19, %v4290_v19  ;;  %v4305_v37 = vld [vmem:[#allocation2 + $0x49] sm:$0xff]  ;;  %v4306_v38 = vld [vmem:[#allocation2 + $0x51] sm:$0xff] }
 0x820   : > { %v4312_v42 = vpack.c.bf16 %v4306_v38, %v4305_v37  ;;  %8244 = vmatpush3.bf16.msra.mxu0 %v8848_v50  ;;  %v8855_v38 = vld [vmem:[%s10200_s2 + $0x608] sm:$0xff]   ;;  %v8856_v50 = vld [vmem:[%s10200_s2 + $0x610] sm:$0xff]  }
 0x821   : > { %8196 = vmatpush3.bf16.msra.mxu1 %v8836_v0  ;;  %8245 = vmatprep.subr.bf16.mxu0 %v8849_v51 }
 0x822   : > { %8197 = vmatprep.subr.bf16.mxu1 %v8837_v63 }
 0x824   : > { %8246 = vmatpush3.bf16.msra.mxu0 %v8849_v51 }
 0x825   : > { %8198 = vmatpush3.bf16.msra.mxu1 %v8837_v63  ;;  %8247 = vmatprep.subr.bf16.mxu0 %v8850_v57 }
 0x826   : > { %8211 = vmatprep.subr.bf16.mxu1 %v8838_v1 }
 0x828   : > { %8200 = vmatmul.mubr.bf16.vlgmr.msra.gmra.mrb[60].mxu1 %v4292_v11  ;;  %8248 = vmatpush3.bf16.msra.mxu0 %v8850_v57 }
 0x829   : > { %8203 = vmatprep.mubr.bf16.mxu1 %v4293_v12  ;;  %8212 = vmatpush3.bf16.msra.mxu1 %v8838_v1 }
 0x82a   : > { %8213 = vmatprep.subr.bf16.mxu1 %v8839_v6  ;;  %8249 = vmatprep.subr.bf16.mxu0 %v8851_v54 }
 0x82c   : > { %8250 = vmatpush3.bf16.msra.mxu0 %v8851_v54 }
 0x82d   : > { %8214 = vmatpush3.bf16.msra.mxu1 %v8839_v6  ;;  %8251 = vmatprep.subr.bf16.mxu0 %v8852_v55  ;;  %v9897_v6 = vld [vmem:[%s10201_s3 + $0x7] ss:$0 sm:$0xff] }
 0x82e   : > { %8215 = vmatprep.subr.bf16.mxu1 %v8840_v8 }
 0x830   : > { %8204 = vmatmul.mubr.bf16.gmra.mrb[64].mxu1 %v4294_v13  ;;  %8252 = vmatpush3.bf16.msra.mxu0 %v8852_v55 }
 0x831   : > { %8207 = vmatprep.mubr.bf16.mxu1 %v4295_v18  ;;  %8216 = vmatpush3.bf16.msra.mxu1 %v8840_v8 }
 0x832   : > { %8217 = vmatprep.subr.bf16.mxu1 %v8841_v17  ;;  %8253 = vmatprep.subr.bf16.mxu0 %v8853_v58 }
 0x834   : > { %8254 = vmatpush3.bf16.msra.mxu0 %v8853_v58 }
 0x835   : > { %8218 = vmatpush3.bf16.msra.mxu1 %v8841_v17  ;;  %8267 = vmatprep.subr.bf16.mxu0 %v8854_v56 }
 0x836   : > { %8219 = vmatprep.subr.bf16.mxu1 %v8842_v20 }
 0x838   : > { %8208 = vmatmul.mubr.bf16.gmra.mrb[72].mxu1 %v4296_v28 }
 0x839   : > { %8220 = vmatpush3.bf16.msra.mxu1 %v8842_v20  ;;  %8227 = vmatprep.mubr.bf16.mxu1 %v4308_v31 }
 0x83a   : > { %8221 = vmatprep.subr.bf16.mxu1 %v8843_v24 }
 0x83d   : > { %8222 = vmatpush3.bf16.msra.mxu1 %v8843_v24 }
 0x83e   : > { %8223 = vmatprep.subr.bf16.mxu1 %v8844_v25 }
 0x841   : > { %8224 = vmatpush3.bf16.msra.mxu1 %v8844_v25 }
 0x842   : > { %8225 = vmatprep.subr.bf16.mxu1 %v8845_v27 }
 0x845   : > { %8226 = vmatpush3.bf16.msra.mxu1 %v8845_v27 }
 0x848   : > { %8228 = vmatmul.mubr.bf16.vlgmr.msra.gmra.mrb[60].mxu1 %v4309_v35 }
 0x849   : > { %8231 = vmatprep.mubr.bf16.mxu1 %v4310_v33 }
 0x850   : > { %8232 = vmatmul.mubr.bf16.gmra.mrb[64].mxu1 %v4311_v39 }
 0x851   : > { %8235 = vmatprep.mubr.bf16.mxu1 %v4312_v42 }
 0x858   : > { %8236 = vmatmul.mubr.bf16.gmra.mrb[76].mxu1 %v4313_v52 }
 0x8ed   : > { %v8181_v60 = vpop.f32.mrb[68].mxu1 }
 0x8ee   : > { %v4468_v61 = vpop.f32.mrb[69].mxu1 }
 0x8ef   : > { %v8182_v62 = vpop.f32.mrb[70].mxu1 }
 0x8f0   : > { %v4471_v0 = vpop.f32.mrb[71].mxu1 }
 0x90b   : > { %v8209_v63 = vpop.f32.mrb[72].mxu1 }
 0x90c   : > { %v4605_v1 = vadd.f32 %v8209_v63, %v8181_v60  ;;  %v4596_v2 = vpop.f32.mrb[73].mxu1  ;;  %v8857_v63 = vld [vmem:[%s10200_s2 + $0x618] sm:$0xff]  }
 0x90d   : > { %v4597_v7 = vadd.f32 %v4596_v2, %v4468_v61  ;;  %v8210_v4 = vpop.f32.mrb[74].mxu1 }
 0x90e   : > { %v4599_v11 = vpop.f32.mrb[75].mxu1 }
 0x90f   : > { %v9892_v5 = vadd.f32 %v4599_v11, %v4471_v0 }
 0x91b   : > { %v8229_v12 = vpop.f32.mrb[60].mxu1 }
 0x91c   : > { %v4776_v8 = vadd.f32 %v8229_v12, %v9897_v6  ;;  %v4709_v10 = vpop.f32.mrb[61].mxu1 }
 0x91d   : > { %v4774_v14 = vadd.f32 %v9897_v6, %v4709_v10  ;;  %v8230_v15 = vpop.f32.mrb[62].mxu1 }
 0x91e   : > { %v4787_v13 = vmax.f32 %v4776_v8, 0.0  ;;  %v4777_v16 = vadd.f32 %v8230_v15, %v9897_v6  ;;  %v4712_v17 = vpop.f32.mrb[63].mxu1  ;;  %v8858_v8 = vld [vmem:[%s10200_s2 + $0x620] sm:$0xff]  }
 0x91f   : > { %v4785_v18 = vmax.f32 %v4774_v14, 0.0  ;;  %v4775_v20 = vadd.f32 %v9897_v6, %v4712_v17 }
 0x920   : > { %v4798_v19 = vmul.f32 %v4787_v13, %v9158_v47  ;;  %v4788_v22 = vmax.f32 %v4777_v16, 0.0 }
 0x921   : > { %v4796_v23 = vmul.f32 %v4785_v18, %v9156_v46  ;;  %v4786_v28 = vmax.f32 %v4775_v20, 0.0  ;;  %v8860_v20 = vld [vmem:[%s10200_s2 + $0x630] sm:$0xff]  }
 0x922   : > { %4809 = vst [vmem:[#allocation2 + $0x18] sm:$0xff] %v4798_v19  ;;  %v4799_v24 = vmul.f32 %v4788_v22, %v9168_v53  ;;  %v8862_v22 = vld [vmem:[%s10200_s2 + $0x680] sm:$0xff]  }
 0x923   : > { %4807 = vst [vmem:[#allocation2 + $0x8] sm:$0xff] %v4796_v23  ;;  %v4797_v31 = vmul.f32 %v4786_v28, %v9160_v48  ;;  %v8233_v25 = vpop.f32.mrb[64].mxu1 }
 0x924   : > { %v4870_v27 = vpack.c.bf16 %v4799_v24, %v4798_v19  ;;  %4810 = vst [vmem:[#allocation2 + $0x20] sm:$0xff] %v4799_v24  ;;  %v4780_v32 = vadd.f32 %v8233_v25, %v9897_v6  ;;  %v4725_v29 = vpop.f32.mrb[65].mxu1  ;;  %v8861_v19 = vld [vmem:[%s10200_s2 + $0x638] sm:$0xff]  }
 0x925   : > { %4808 = vst [vmem:[#allocation2 + $0x10] sm:$0xff] %v4797_v31  ;;  %v4778_v30 = vadd.f32 %v9897_v6, %v4725_v29  ;;  %v8234_v34 = vpop.f32.mrb[66].mxu1  ;;  %v4869_v35 = vpack.c.bf16 %v4797_v31, %v4796_v23  ;;  %v8864_v29 = vld [vmem:[%s10200_s2 + $0x690] sm:$0xff]  }
 0x926   : > { %v4791_v33 = vmax.f32 %v4780_v32, 0.0  ;;  %v4781_v36 = vadd.f32 %v8234_v34, %v9897_v6  ;;  %v4728_v37 = vpop.f32.mrb[67].mxu1 }
 0x927   : > { %v4789_v40 = vmax.f32 %v4778_v30, 0.0  ;;  %v4779_v39 = vadd.f32 %v9897_v6, %v4728_v37  ;;  %8255 = vmatprep.mubr.bf16.mxu0 %v4869_v35  ;;  %v8865_v37 = vld [vmem:[%s10200_s2 + $0x698] sm:$0xff]  }
 0x928   : > { %v4802_v42 = vmul.f32 %v4791_v33, %v9182_v9  ;;  %v4792_v43 = vmax.f32 %v4781_v36, 0.0  ;;  %8256 = vmatmul.mubr.bf16.vlgmr.msra.gmra.mrb[80].mxu0 %v4870_v27  ;;  %v8863_v27 = vld [vmem:[%s10200_s2 + $0x688] sm:$0xff]  }
 0x929   : > { %v4800_v52 = vmul.f32 %v4789_v40, %v9172_v59  ;;  %v4790_v44 = vmax.f32 %v4779_v39, 0.0  ;;  %8268 = vmatpush3.bf16.msra.mxu0 %v8854_v56  ;;  %v8866_v40 = vld [vmem:[%s10200_s2 + $0x6a0] sm:$0xff]  }
 0x92a   : > { %4813 = vst [vmem:[#allocation2 + $0x38] sm:$0xff] %v4802_v42  ;;  %v4803_v49 = vmul.f32 %v4792_v43, %v9191_v21  ;;  %8269 = vmatprep.subr.bf16.mxu0 %v8855_v38  ;;  %v4818_v17 = vld [vmem:[#allocation2 + $0x7] sm:$0xff] }
 0x92b   : > { %4811 = vst [vmem:[#allocation2 + $0x28] sm:$0xff] %v4800_v52  ;;  %v4801_v51 = vmul.f32 %v4790_v44, %v9178_v3  ;;  %v8237_v57 = vpop.f32.mrb[76].mxu1  ;;  %v4821_v28 = vld [vmem:[#allocation2 + $0x1f] sm:$0xff]  ;;  %v8867_v44 = vld [vmem:[%s10200_s2 + $0x6a8] sm:$0xff]  }
 0x92c   : > { %4814 = vst [vmem:[#allocation2 + $0x40] sm:$0xff] %v4803_v49  ;;  %v4765_v54 = vadd.f32 %v8237_v57, %v4605_v1  ;;  %v4741_v55 = vpop.f32.mrb[77].mxu1  ;;  %v4872_v58 = vpack.c.bf16 %v4803_v49, %v4802_v42  ;;  %v4819_v15 = vld [vmem:[#allocation2 + $0xf] sm:$0xff]  ;;  %v4820_v23 = vld [vmem:[#allocation2 + $0x17] sm:$0xff] }
 0x92d   : > { %4812 = vst [vmem:[#allocation2 + $0x30] sm:$0xff] %v4801_v51  ;;  %v4763_v60 = vadd.f32 %v4741_v55, %v4597_v7  ;;  %8270 = vmatpush3.bf16.msra.mxu0 %v8855_v38  ;;  %v8238_v56 = vpop.f32.mrb[78].mxu1  ;;  %v4871_v61 = vpack.c.bf16 %v4801_v51, %v4800_v52  ;;  %v4829_v18 = vpack.c.bf16 %v4819_v15, %v4818_v17  ;;  %v4835_v42 = vld [vmem:[#allocation2 + $0x9] sm:$0xff]  ;;  %v4836_v43 = vld [vmem:[#allocation2 + $0x11] sm:$0xff] }
 0x92e   : > { %v4784_v62 = vadd.f32 %v9897_v6, %v4765_v54  ;;  %v4744_v0 = vpop.f32.mrb[79].mxu1  ;;  %8271 = vmatprep.subr.bf16.mxu0 %v8856_v50  ;;  %v4830_v31 = vpack.c.bf16 %v4821_v28, %v4820_v23  ;;  %v4846_v49 = vpack.c.bf16 %v4836_v43, %v4835_v42  ;;  %v8869_v51 = vld [vmem:[%s10200_s2 + $0x6b8] sm:$0xff]  }
 0x92f   : > { %v4782_v2 = vadd.f32 %v9897_v6, %v4763_v60  ;;  %v4764_v4 = vadd.f32 %v4744_v0, %v9892_v5  ;;  %8259 = vmatprep.mubr.bf16.mxu0 %v4871_v61  ;;  %v8877_v15 = vld [vmem:[%s10200_s2 + $0x738] sm:$0xff]  }
 0x930   : > { %v4795_v1 = vmax.f32 %v4784_v62, 0.0  ;;  %8260 = vmatmul.mubr.bf16.gmra.mrb[84].mxu0 %v4872_v58  ;;  %v4837_v58 = vld [vmem:[#allocation2 + $0x19] sm:$0xff] }
 0x931   : > { %v4793_v11 = vmax.f32 %v4782_v2, 0.0  ;;  %v4783_v7 = vadd.f32 %v9897_v6, %v4764_v4  ;;  %8272 = vmatpush3.bf16.msra.mxu0 %v8856_v50  ;;  %v8859_v6 = vld [vmem:[%s10200_s2 + $0x628] sm:$0xff]   ;;  %v8868_v50 = vld [vmem:[%s10200_s2 + $0x6b0] sm:$0xff]  }
 0x932   : > { %v4806_v12 = vmul.f32 %v4795_v1, %v9209_v41  ;;  %8273 = vmatprep.subr.bf16.mxu0 %v8857_v63  ;;  %v4822_v25 = vld [vmem:[#allocation2 + $0x27] sm:$0xff] }
 0x933   : > { %v4804_v10 = vmul.f32 %v4793_v11, %v9198_v26  ;;  %v4794_v14 = vmax.f32 %v4783_v7, 0.0  ;;  %v4825_v34 = vld [vmem:[#allocation2 + $0x3f] sm:$0xff] }
 0x934   : > { %4817 = vst [vmem:[#allocation2 + $0x58] sm:$0xff] %v4806_v12  ;;  %v4874_v16 = vpack.c.bf16 %v4806_v12, %v4806_v12  ;;  %v4823_v24 = vld [vmem:[#allocation2 + $0x2f] sm:$0xff]  ;;  %v4824_v30 = vld [vmem:[#allocation2 + $0x37] sm:$0xff]  ;;  %v4838_v57 = vld [vmem:[#allocation2 + $0x21] sm:$0xff] }
 0x935   : > { %4815 = vst [vmem:[#allocation2 + $0x48] sm:$0xff] %v4804_v10  ;;  %v4805_v5 = vmul.f32 %v4794_v14, %v9217_v45  ;;  %8274 = vmatpush3.bf16.msra.mxu0 %v8857_v63  ;;  %v4831_v32 = vpack.c.bf16 %v4823_v24, %v4822_v25  ;;  %v4832_v33 = vpack.c.bf16 %v4825_v34, %v4824_v30  ;;  %v4839_v54 = vld [vmem:[#allocation2 + $0x29] sm:$0xff]  ;;  %v4840_v55 = vld [vmem:[#allocation2 + $0x31] sm:$0xff]  ;;  %v4841_v63 = vld [vmem:[#allocation2 + $0x39] sm:$0xff] }
 0x936   : > { %8275 = vmatprep.subr.bf16.mxu0 %v8858_v8  ;;  %v4847_v60 = vpack.c.bf16 %v4838_v57, %v4837_v58  ;;  %v4848_v56 = vpack.c.bf16 %v4840_v55, %v4839_v54  ;;  %v8870_v7 = vld [vmem:[%s10200_s2 + $0x700] sm:$0xff]   ;;  %v8871_v12 = vld [vmem:[%s10200_s2 + $0x708] sm:$0xff]  }
 0x937   : > { %4816 = vst [vmem:[#allocation2 + $0x50] sm:$0xff] %v4805_v5  ;;  %v4873_v13 = vpack.c.bf16 %v4805_v5, %v4804_v10  ;;  %8323 = vmatprep.subr.bf16.mxu1 %v8870_v7  ;;  %v8873_v10 = vld [vmem:[%s10200_s2 + $0x718] sm:$0xff]   ;;  %v8874_v14 = vld [vmem:[%s10200_s2 + $0x720] sm:$0xff]   ;;  %v8875_v5 = vld [vmem:[%s10200_s2 + $0x728] sm:$0xff]  }
 0x938   : > { %8324 = vmatpush3.bf16.msra.mxu1 %v8870_v7 }
 0x939   : > { %8276 = vmatpush3.bf16.msra.mxu0 %v8858_v8  ;;  %8263 = vmatprep.mubr.bf16.mxu0 %v4873_v13  ;;  %v8872_v8 = vld [vmem:[%s10200_s2 + $0x710] sm:$0xff]   ;;  %v8878_v13 = vld [vmem:[%s10200_s2 + $0x6c0] sm:$0xff]  }
 0x93a   : > { %8264 = vmatmul.mubr.bf16.gmra.mrb[88].mxu0 %v4874_v16  ;;  %8277 = vmatprep.subr.bf16.mxu0 %v8859_v6 }
 0x93b   : > { %8283 = vmatprep.mubr.bf16.mxu0 %v4829_v18  ;;  %v4845_v1 = vld [vmem:[#allocation2 + $0x59] sm:$0xff]  ;;  %8325 = vmatprep.subr.bf16.mxu1 %v8871_v12 }
 0x93c   : > { %v4826_v36 = vld [vmem:[#allocation2 + $0x47] sm:$0xff]  ;;  %v4851_v11 = vpack.c.bf16 %v4845_v1, %v4845_v1  ;;  %8326 = vmatpush3.bf16.msra.mxu1 %v8871_v12 }
 0x93d   : > { %8278 = vmatpush3.bf16.msra.mxu0 %v8859_v6  ;;  %v4842_v61 = vld [vmem:[#allocation2 + $0x41] sm:$0xff]  ;;  %8327 = vmatprep.subr.bf16.mxu1 %v8872_v8  ;;  %v8876_v6 = vld [vmem:[%s10200_s2 + $0x730] sm:$0xff]  }
 0x93e   : > { %8279 = vmatprep.subr.bf16.mxu0 %v8860_v20  ;;  %v4827_v35 = vld [vmem:[#allocation2 + $0x4f] sm:$0xff]  ;;  %v4828_v39 = vld [vmem:[#allocation2 + $0x57] sm:$0xff]  ;;  %v4849_v2 = vpack.c.bf16 %v4842_v61, %v4841_v63 }
 0x93f   : > { %v4833_v38 = vpack.c.bf16 %v4827_v35, %v4826_v36  ;;  %v4834_v52 = vpack.c.bf16 %v4828_v39, %v4828_v39  ;;  %v4843_v62 = vld [vmem:[#allocation2 + $0x49] sm:$0xff]  ;;  %v4844_v0 = vld [vmem:[#allocation2 + $0x51] sm:$0xff] }
 0x940   : > { %v4850_v4 = vpack.c.bf16 %v4844_v0, %v4843_v62  ;;  %8328 = vmatpush3.bf16.msra.mxu1 %v8872_v8  ;;  %v8879_v0 = vld [vmem:[%s10200_s2 + $0x6c8] sm:$0xff]   ;;  %v8880_v8 = vld [vmem:[%s10200_s2 + $0x6d0] sm:$0xff]  }
 0x941   : > { %8280 = vmatpush3.bf16.msra.mxu0 %v8860_v20  ;;  %8329 = vmatprep.subr.bf16.mxu1 %v8873_v10 }
 0x942   : > { %8281 = vmatprep.subr.bf16.mxu0 %v8861_v19 }
 0x944   : > { %8330 = vmatpush3.bf16.msra.mxu1 %v8873_v10 }
 0x945   : > { %8282 = vmatpush3.bf16.msra.mxu0 %v8861_v19  ;;  %8331 = vmatprep.subr.bf16.mxu1 %v8874_v14 }
 0x946   : > { %8295 = vmatprep.subr.bf16.mxu0 %v8862_v22 }
 0x948   : > { %8284 = vmatmul.mubr.bf16.vlgmr.msra.gmra.mrb[80].mxu0 %v4830_v31  ;;  %8332 = vmatpush3.bf16.msra.mxu1 %v8874_v14 }
 0x949   : > { %8287 = vmatprep.mubr.bf16.mxu0 %v4831_v32  ;;  %8296 = vmatpush3.bf16.msra.mxu0 %v8862_v22 }
 0x94a   : > { %8297 = vmatprep.subr.bf16.mxu0 %v8863_v27  ;;  %8333 = vmatprep.subr.bf16.mxu1 %v8875_v5 }
 0x94c   : > { %8334 = vmatpush3.bf16.msra.mxu1 %v8875_v5 }
 0x94d   : > { %8298 = vmatpush3.bf16.msra.mxu0 %v8863_v27  ;;  %8335 = vmatprep.subr.bf16.mxu1 %v8876_v6  ;;  %v9999_v27 = vld [vmem:[%s10201_s3 + $0x8] ss:$0 sm:$0xff] }
 0x94e   : > { %8299 = vmatprep.subr.bf16.mxu0 %v8864_v29 }
 0x950   : > { %8288 = vmatmul.mubr.bf16.gmra.mrb[84].mxu0 %v4832_v33  ;;  %8336 = vmatpush3.bf16.msra.mxu1 %v8876_v6 }
 0x951   : > { %8291 = vmatprep.mubr.bf16.mxu0 %v4833_v38  ;;  %8300 = vmatpush3.bf16.msra.mxu0 %v8864_v29 }
 0x952   : > { %8301 = vmatprep.subr.bf16.mxu0 %v8865_v37  ;;  %8337 = vmatprep.subr.bf16.mxu1 %v8877_v15 }
 0x954   : > { %8338 = vmatpush3.bf16.msra.mxu1 %v8877_v15 }
 0x955   : > { %8302 = vmatpush3.bf16.msra.mxu0 %v8865_v37  ;;  %8351 = vmatprep.subr.bf16.mxu1 %v8878_v13 }
 0x956   : > { %8303 = vmatprep.subr.bf16.mxu0 %v8866_v40 }
 0x958   : > { %8292 = vmatmul.mubr.bf16.gmra.mrb[92].mxu0 %v4834_v52 }
 0x959   : > { %8304 = vmatpush3.bf16.msra.mxu0 %v8866_v40  ;;  %8311 = vmatprep.mubr.bf16.mxu0 %v4846_v49 }
 0x95a   : > { %8305 = vmatprep.subr.bf16.mxu0 %v8867_v44 }
 0x95d   : > { %8306 = vmatpush3.bf16.msra.mxu0 %v8867_v44 }
 0x95e   : > { %8307 = vmatprep.subr.bf16.mxu0 %v8868_v50 }
 0x961   : > { %8308 = vmatpush3.bf16.msra.mxu0 %v8868_v50 }
 0x962   : > { %8309 = vmatprep.subr.bf16.mxu0 %v8869_v51 }
 0x965   : > { %8310 = vmatpush3.bf16.msra.mxu0 %v8869_v51 }
 0x968   : > { %8312 = vmatmul.mubr.bf16.vlgmr.msra.gmra.mrb[80].mxu0 %v4847_v60 }
 0x969   : > { %8315 = vmatprep.mubr.bf16.mxu0 %v4848_v56 }
 0x970   : > { %8316 = vmatmul.mubr.bf16.gmra.mrb[84].mxu0 %v4849_v2 }
 0x971   : > { %8319 = vmatprep.mubr.bf16.mxu0 %v4850_v4 }
 0x978   : > { %8320 = vmatmul.mubr.bf16.gmra.mrb[96].mxu0 %v4851_v11 }
 0xa0d   : > { %v8265_v16 = vpop.f32.mrb[88].mxu0 }
 0xa0e   : > { %v5006_v17 = vpop.f32.mrb[89].mxu0 }
 0xa0f   : > { %v8266_v18 = vpop.f32.mrb[90].mxu0 }
 0xa10   : > { %v5009_v20 = vpop.f32.mrb[91].mxu0 }
 0xa2b   : > { %v8293_v19 = vpop.f32.mrb[92].mxu0 }
 0xa2c   : > { %v5143_v22 = vadd.f32 %v8293_v19, %v8265_v16  ;;  %v5134_v23 = vpop.f32.mrb[93].mxu0  ;;  %v8881_v19 = vld [vmem:[%s10200_s2 + $0x6d8] sm:$0xff]  }
 0xa2d   : > { %v5135_v28 = vadd.f32 %v5134_v23, %v5006_v17  ;;  %v8294_v24 = vpop.f32.mrb[94].mxu0 }
 0xa2e   : > { %v5137_v31 = vpop.f32.mrb[95].mxu0 }
 0xa2f   : > { %v9994_v25 = vadd.f32 %v5137_v31, %v5009_v20 }
 0xa3b   : > { %v8313_v32 = vpop.f32.mrb[80].mxu0 }
 0xa3c   : > { %v5314_v29 = vadd.f32 %v8313_v32, %v9999_v27  ;;  %v5247_v30 = vpop.f32.mrb[81].mxu0 }
 0xa3d   : > { %v5312_v34 = vadd.f32 %v9999_v27, %v5247_v30  ;;  %v8314_v35 = vpop.f32.mrb[82].mxu0 }
 0xa3e   : > { %v5325_v33 = vmax.f32 %v5314_v29, 0.0  ;;  %v5315_v36 = vadd.f32 %v8314_v35, %v9999_v27  ;;  %v5250_v37 = vpop.f32.mrb[83].mxu0  ;;  %v8882_v29 = vld [vmem:[%s10200_s2 + $0x6e0] sm:$0xff]  }
 0xa3f   : > { %v5323_v38 = vmax.f32 %v5312_v34, 0.0  ;;  %v5313_v40 = vadd.f32 %v9999_v27, %v5250_v37 }
 0xa40   : > { %v5336_v39 = vmul.f32 %v5325_v33, %v9158_v47  ;;  %v5326_v42 = vmax.f32 %v5315_v36, 0.0 }
 0xa41   : > { %v5334_v43 = vmul.f32 %v5323_v38, %v9156_v46  ;;  %v5324_v52 = vmax.f32 %v5313_v40, 0.0  ;;  %v8884_v40 = vld [vmem:[%s10200_s2 + $0x6f0] sm:$0xff]  }
 0xa42   : > { %5347 = vst [vmem:[#allocation2 + $0x18] sm:$0xff] %v5336_v39  ;;  %v5337_v44 = vmul.f32 %v5326_v42, %v9168_v53  ;;  %v8886_v42 = vld [vmem:[%s10200_s2 + $0x740] sm:$0xff]  }
 0xa43   : > { %5345 = vst [vmem:[#allocation2 + $0x8] sm:$0xff] %v5334_v43  ;;  %v5335_v49 = vmul.f32 %v5324_v52, %v9160_v48  ;;  %v8317_v50 = vpop.f32.mrb[84].mxu0 }
 0xa44   : > { %v5408_v51 = vpack.c.bf16 %v5337_v44, %v5336_v39  ;;  %5348 = vst [vmem:[#allocation2 + $0x20] sm:$0xff] %v5337_v44  ;;  %v5318_v57 = vadd.f32 %v8317_v50, %v9999_v27  ;;  %v5263_v54 = vpop.f32.mrb[85].mxu0  ;;  %v8885_v39 = vld [vmem:[%s10200_s2 + $0x6f8] sm:$0xff]  }
 0xa45   : > { %5346 = vst [vmem:[#allocation2 + $0x10] sm:$0xff] %v5335_v49  ;;  %v5316_v55 = vadd.f32 %v9999_v27, %v5263_v54  ;;  %v8318_v58 = vpop.f32.mrb[86].mxu0  ;;  %v5407_v60 = vpack.c.bf16 %v5335_v49, %v5334_v43  ;;  %v8888_v54 = vld [vmem:[%s10200_s2 + $0x750] sm:$0xff]  }
 0xa46   : > { %v5329_v56 = vmax.f32 %v5318_v57, 0.0  ;;  %v5319_v61 = vadd.f32 %v8318_v58, %v9999_v27  ;;  %v5266_v62 = vpop.f32.mrb[87].mxu0 }
 0xa47   : > { %v5327_v63 = vmax.f32 %v5316_v55, 0.0  ;;  %v5317_v2 = vadd.f32 %v9999_v27, %v5266_v62  ;;  %8339 = vmatprep.mubr.bf16.mxu1 %v5407_v60  ;;  %v8889_v62 = vld [vmem:[%s10200_s2 + $0x758] sm:$0xff]  }
 0xa48   : > { %v5340_v4 = vmul.f32 %v5329_v56, %v9182_v9  ;;  %v5330_v1 = vmax.f32 %v5319_v61, 0.0  ;;  %8340 = vmatmul.mubr.bf16.vlgmr.msra.gmra.mrb[80].mxu1 %v5408_v51  ;;  %v8887_v51 = vld [vmem:[%s10200_s2 + $0x748] sm:$0xff]  }
 0xa49   : > { %v5338_v11 = vmul.f32 %v5327_v63, %v9172_v59  ;;  %v5328_v7 = vmax.f32 %v5317_v2, 0.0  ;;  %8352 = vmatpush3.bf16.msra.mxu1 %v8878_v13  ;;  %v8890_v63 = vld [vmem:[%s10200_s2 + $0x760] sm:$0xff]  }
 0xa4a   : > { %5351 = vst [vmem:[#allocation2 + $0x38] sm:$0xff] %v5340_v4  ;;  %v5341_v12 = vmul.f32 %v5330_v1, %v9191_v21  ;;  %8353 = vmatprep.subr.bf16.mxu1 %v8879_v0  ;;  %v5356_v37 = vld [vmem:[#allocation2 + $0x7] sm:$0xff] }
 0xa4b   : > { %5349 = vst [vmem:[#allocation2 + $0x28] sm:$0xff] %v5338_v11  ;;  %v5339_v10 = vmul.f32 %v5328_v7, %v9178_v3  ;;  %v8321_v14 = vpop.f32.mrb[96].mxu0  ;;  %v5359_v52 = vld [vmem:[#allocation2 + $0x1f] sm:$0xff]  ;;  %v8891_v7 = vld [vmem:[%s10200_s2 + $0x768] sm:$0xff]  }
 0xa4c   : > { %5352 = vst [vmem:[#allocation2 + $0x40] sm:$0xff] %v5341_v12  ;;  %v5303_v5 = vadd.f32 %v8321_v14, %v5143_v22  ;;  %v5279_v6 = vpop.f32.mrb[97].mxu0  ;;  %v5410_v15 = vpack.c.bf16 %v5341_v12, %v5340_v4  ;;  %v5357_v35 = vld [vmem:[#allocation2 + $0xf] sm:$0xff]  ;;  %v5358_v43 = vld [vmem:[#allocation2 + $0x17] sm:$0xff] }
 0xa4d   : > { %5350 = vst [vmem:[#allocation2 + $0x30] sm:$0xff] %v5339_v10  ;;  %v5301_v16 = vadd.f32 %v5279_v6, %v5135_v28  ;;  %8354 = vmatpush3.bf16.msra.mxu1 %v8879_v0  ;;  %v8322_v13 = vpop.f32.mrb[98].mxu0  ;;  %v5409_v17 = vpack.c.bf16 %v5339_v10, %v5338_v11  ;;  %v5367_v38 = vpack.c.bf16 %v5357_v35, %v5356_v37  ;;  %v5373_v4 = vld [vmem:[#allocation2 + $0x9] sm:$0xff]  ;;  %v5374_v1 = vld [vmem:[#allocation2 + $0x11] sm:$0xff] }
 0xa4e   : > { %v5322_v18 = vadd.f32 %v9999_v27, %v5303_v5  ;;  %v5282_v20 = vpop.f32.mrb[99].mxu0  ;;  %8355 = vmatprep.subr.bf16.mxu1 %v8880_v8  ;;  %v5368_v49 = vpack.c.bf16 %v5359_v52, %v5358_v43  ;;  %v5384_v12 = vpack.c.bf16 %v5374_v1, %v5373_v4  ;;  %v8893_v10 = vld [vmem:[%s10200_s2 + $0x778] sm:$0xff]  }
 0xa4f   : > { %v5320_v23 = vadd.f32 %v9999_v27, %v5301_v16  ;;  %v5302_v24 = vadd.f32 %v5282_v20, %v9994_v25  ;;  %8343 = vmatprep.mubr.bf16.mxu1 %v5409_v17  ;;  %v8901_v35 = vld [vmem:[%s10202_s4 + $0x38] sm:$0xff]  }
 0xa50   : > { %v5333_v22 = vmax.f32 %v5322_v18, 0.0  ;;  %8344 = vmatmul.mubr.bf16.gmra.mrb[84].mxu1 %v5410_v15  ;;  %v5375_v15 = vld [vmem:[#allocation2 + $0x19] sm:$0xff] }
 0xa51   : > { %v5331_v31 = vmax.f32 %v5320_v23, 0.0  ;;  %v5321_v28 = vadd.f32 %v9999_v27, %v5302_v24  ;;  %8356 = vmatpush3.bf16.msra.mxu1 %v8880_v8  ;;  %v8883_v27 = vld [vmem:[%s10200_s2 + $0x6e8] sm:$0xff]   ;;  %v8892_v8 = vld [vmem:[%s10200_s2 + $0x770] sm:$0xff]  }
 0xa52   : > { %v5344_v32 = vmul.f32 %v5333_v22, %v9209_v41  ;;  %8357 = vmatprep.subr.bf16.mxu1 %v8881_v19  ;;  %v5360_v50 = vld [vmem:[#allocation2 + $0x27] sm:$0xff] }
 0xa53   : > { %v5342_v30 = vmul.f32 %v5331_v31, %v9198_v26  ;;  %v5332_v34 = vmax.f32 %v5321_v28, 0.0  ;;  %v5363_v58 = vld [vmem:[#allocation2 + $0x3f] sm:$0xff] }
 0xa54   : > { %5355 = vst [vmem:[#allocation2 + $0x58] sm:$0xff] %v5344_v32  ;;  %v5412_v36 = vpack.c.bf16 %v5344_v32, %v5344_v32  ;;  %v5361_v44 = vld [vmem:[#allocation2 + $0x2f] sm:$0xff]  ;;  %v5362_v55 = vld [vmem:[#allocation2 + $0x37] sm:$0xff]  ;;  %v5376_v14 = vld [vmem:[#allocation2 + $0x21] sm:$0xff] }
 0xa55   : > { %5353 = vst [vmem:[#allocation2 + $0x48] sm:$0xff] %v5342_v30  ;;  %v5343_v25 = vmul.f32 %v5332_v34, %v9217_v45  ;;  %8358 = vmatpush3.bf16.msra.mxu1 %v8881_v19  ;;  %v5369_v57 = vpack.c.bf16 %v5361_v44, %v5360_v50  ;;  %v5370_v56 = vpack.c.bf16 %v5363_v58, %v5362_v55  ;;  %v5377_v5 = vld [vmem:[#allocation2 + $0x29] sm:$0xff]  ;;  %v5378_v6 = vld [vmem:[#allocation2 + $0x31] sm:$0xff]  ;;  %v5379_v19 = vld [vmem:[#allocation2 + $0x39] sm:$0xff] }
 0xa56   : > { %8359 = vmatprep.subr.bf16.mxu1 %v8882_v29  ;;  %v5385_v16 = vpack.c.bf16 %v5376_v14, %v5375_v15  ;;  %v5386_v13 = vpack.c.bf16 %v5378_v6, %v5377_v5  ;;  %v8894_v28 = vld [vmem:[%s10202_s4] sm:$0xff]   ;;  %v8895_v32 = vld [vmem:[%s10202_s4 + $0x8] sm:$0xff]  }
 0xa57   : > { %5354 = vst [vmem:[#allocation2 + $0x50] sm:$0xff] %v5343_v25  ;;  %v5411_v33 = vpack.c.bf16 %v5343_v25, %v5342_v30  ;;  %8407 = vmatprep.subr.bf16.mxu0 %v8894_v28  ;;  %v8897_v30 = vld [vmem:[%s10202_s4 + $0x18] sm:$0xff]   ;;  %v8898_v34 = vld [vmem:[%s10202_s4 + $0x20] sm:$0xff]   ;;  %v8899_v25 = vld [vmem:[%s10202_s4 + $0x28] sm:$0xff]  }
 0xa58   : > { %8408 = vmatpush3.bf16.msra.mxu0 %v8894_v28  ;;  %v7093_v50 = vld [vmem:[%s10201_s3 + $0x9] ss:$0 sm:$0xff] }
 0xa59   : > { %8360 = vmatpush3.bf16.msra.mxu1 %v8882_v29  ;;  %8347 = vmatprep.mubr.bf16.mxu1 %v5411_v33  ;;  %v8896_v29 = vld [vmem:[%s10202_s4 + $0x10] sm:$0xff]  }
 0xa5a   : > { %8348 = vmatmul.mubr.bf16.gmra.mrb[88].mxu1 %v5412_v36  ;;  %8361 = vmatprep.subr.bf16.mxu1 %v8883_v27 }
 0xa5b   : > { %8367 = vmatprep.mubr.bf16.mxu1 %v5367_v38  ;;  %v5383_v22 = vld [vmem:[#allocation2 + $0x59] sm:$0xff]  ;;  %8409 = vmatprep.subr.bf16.mxu0 %v8895_v32 }
 0xa5c   : > { %v5364_v61 = vld [vmem:[#allocation2 + $0x47] sm:$0xff]  ;;  %v5389_v31 = vpack.c.bf16 %v5383_v22, %v5383_v22  ;;  %8410 = vmatpush3.bf16.msra.mxu0 %v8895_v32 }
 0xa5d   : > { %8362 = vmatpush3.bf16.msra.mxu1 %v8883_v27  ;;  %v5380_v17 = vld [vmem:[#allocation2 + $0x41] sm:$0xff]  ;;  %8411 = vmatprep.subr.bf16.mxu0 %v8896_v29  ;;  %v8900_v27 = vld [vmem:[%s10202_s4 + $0x30] sm:$0xff]  }
 0xa5e   : > { %8363 = vmatprep.subr.bf16.mxu1 %v8884_v40  ;;  %v5365_v60 = vld [vmem:[#allocation2 + $0x4f] sm:$0xff]  ;;  %v5366_v2 = vld [vmem:[#allocation2 + $0x57] sm:$0xff]  ;;  %v5387_v23 = vpack.c.bf16 %v5380_v17, %v5379_v19 }
 0xa5f   : > { %v5371_v0 = vpack.c.bf16 %v5365_v60, %v5364_v61  ;;  %v5372_v11 = vpack.c.bf16 %v5366_v2, %v5366_v2  ;;  %v5381_v18 = vld [vmem:[#allocation2 + $0x49] sm:$0xff]  ;;  %v5382_v20 = vld [vmem:[#allocation2 + $0x51] sm:$0xff] }
 0xa60   : > { %v5388_v24 = vpack.c.bf16 %v5382_v20, %v5381_v18  ;;  %8412 = vmatpush3.bf16.msra.mxu0 %v8896_v29 }
 0xa61   : > { %8364 = vmatpush3.bf16.msra.mxu1 %v8884_v40  ;;  %8413 = vmatprep.subr.bf16.mxu0 %v8897_v30 }
 0xa62   : > { %8365 = vmatprep.subr.bf16.mxu1 %v8885_v39 }
 0xa64   : > { %8414 = vmatpush3.bf16.msra.mxu0 %v8897_v30 }
 0xa65   : > { %8366 = vmatpush3.bf16.msra.mxu1 %v8885_v39  ;;  %8415 = vmatprep.subr.bf16.mxu0 %v8898_v34 }
 0xa66   : > { %8379 = vmatprep.subr.bf16.mxu1 %v8886_v42 }
 0xa68   : > { %8368 = vmatmul.mubr.bf16.vlgmr.msra.gmra.mrb[80].mxu1 %v5368_v49  ;;  %8416 = vmatpush3.bf16.msra.mxu0 %v8898_v34 }
 0xa69   : > { %8371 = vmatprep.mubr.bf16.mxu1 %v5369_v57  ;;  %8380 = vmatpush3.bf16.msra.mxu1 %v8886_v42 }
 0xa6a   : > { %8381 = vmatprep.subr.bf16.mxu1 %v8887_v51  ;;  %8417 = vmatprep.subr.bf16.mxu0 %v8899_v25 }
 0xa6c   : > { %8418 = vmatpush3.bf16.msra.mxu0 %v8899_v25 }
 0xa6d   : > { %8382 = vmatpush3.bf16.msra.mxu1 %v8887_v51  ;;  %8419 = vmatprep.subr.bf16.mxu0 %v8900_v27 }
 0xa6e   : > { %8383 = vmatprep.subr.bf16.mxu1 %v8888_v54 }
 0xa70   : > { %8372 = vmatmul.mubr.bf16.gmra.mrb[84].mxu1 %v5370_v56  ;;  %8420 = vmatpush3.bf16.msra.mxu0 %v8900_v27 }
 0xa71   : > { %8375 = vmatprep.mubr.bf16.mxu1 %v5371_v0  ;;  %8384 = vmatpush3.bf16.msra.mxu1 %v8888_v54 }
 0xa72   : > { %8385 = vmatprep.subr.bf16.mxu1 %v8889_v62  ;;  %8421 = vmatprep.subr.bf16.mxu0 %v8901_v35 }
 0xa74   : > { %8422 = vmatpush3.bf16.msra.mxu0 %v8901_v35 }
 0xa75   : > { %8386 = vmatpush3.bf16.msra.mxu1 %v8889_v62 }
 0xa76   : > { %8387 = vmatprep.subr.bf16.mxu1 %v8890_v63 }
 0xa78   : > { %8376 = vmatmul.mubr.bf16.gmra.mrb[92].mxu1 %v5372_v11 }
 0xa79   : > { %8388 = vmatpush3.bf16.msra.mxu1 %v8890_v63  ;;  %8395 = vmatprep.mubr.bf16.mxu1 %v5384_v12 }
 0xa7a   : > { %8389 = vmatprep.subr.bf16.mxu1 %v8891_v7 }
 0xa7d   : > { %8390 = vmatpush3.bf16.msra.mxu1 %v8891_v7 }
 0xa7e   : > { %8391 = vmatprep.subr.bf16.mxu1 %v8892_v8 }
 0xa81   : > { %8392 = vmatpush3.bf16.msra.mxu1 %v8892_v8 }
 0xa82   : > { %8393 = vmatprep.subr.bf16.mxu1 %v8893_v10 }
 0xa85   : > { %8394 = vmatpush3.bf16.msra.mxu1 %v8893_v10 }
 0xa88   : > { %8396 = vmatmul.mubr.bf16.vlgmr.msra.gmra.mrb[80].mxu1 %v5385_v16 }
 0xa89   : > { %8399 = vmatprep.mubr.bf16.mxu1 %v5386_v13 }
 0xa90   : > { %8400 = vmatmul.mubr.bf16.gmra.mrb[84].mxu1 %v5387_v23 }
 0xa91   : > { %8403 = vmatprep.mubr.bf16.mxu1 %v5388_v24 }
 0xa98   : > { %8404 = vmatmul.mubr.bf16.gmra.mrb[96].mxu1 %v5389_v31 }
 0xb2d   : > { %v8349_v33 = vpop.f32.mrb[88].mxu1 }
 0xb2e   : > { %v5544_v36 = vpop.f32.mrb[89].mxu1 }
 0xb2f   : > { %v8350_v37 = vpop.f32.mrb[90].mxu1 }
 0xb30   : > { %v5547_v38 = vpop.f32.mrb[91].mxu1 }
 0xb4b   : > { %v8377_v40 = vpop.f32.mrb[92].mxu1 }
 0xb4c   : > { %v5681_v39 = vadd.f32 %v8377_v40, %v8349_v33  ;;  %v5672_v42 = vpop.f32.mrb[93].mxu1 }
 0xb4d   : > { %v5673_v43 = vadd.f32 %v5672_v42, %v5544_v36  ;;  %v8378_v52 = vpop.f32.mrb[94].mxu1 }
 0xb4e   : > { %v5675_v44 = vpop.f32.mrb[95].mxu1  ;;  %v6034_v52 = vld [vmem:[%s10203_s5 + $0x8] sm:$0xff] }
 0xb4f   : > { %v5676_v49 = vadd.f32 %v5675_v44, %v5547_v38 }
 0xb5b   : > { %v8397_v51 = vpop.f32.mrb[80].mxu1 }
 0xb5c   : > { %v5852_v57 = vadd.f32 %v8397_v51, %v7093_v50  ;;  %v5785_v54 = vpop.f32.mrb[81].mxu1 }
 0xb5d   : > { %v5850_v55 = vadd.f32 %v7093_v50, %v5785_v54  ;;  %v8398_v58 = vpop.f32.mrb[82].mxu1 }
 0xb5e   : > { %v5863_v60 = vmax.f32 %v5852_v57, 0.0  ;;  %v5853_v56 = vadd.f32 %v8398_v58, %v7093_v50  ;;  %v5788_v61 = vpop.f32.mrb[83].mxu1 }
 0xb5f   : > { %v5861_v62 = vmax.f32 %v5850_v55, 0.0  ;;  %v5851_v0 = vadd.f32 %v7093_v50, %v5788_v61  ;;  %v6040_v61 = vld [vmem:[%s10203_s5 + $0x38] sm:$0xff] }
 0xb60   : > { %v5864_v63 = vmax.f32 %v5853_v56, 0.0  ;;  %v5874_v4 = vmul.f32 %v5863_v60, %v9158_v47  ;;  %v6039_v56 = vld [vmem:[%s10203_s5 + $0x30] sm:$0xff] }
 0xb61   : > { %v5862_v2 = vmax.f32 %v5851_v0, 0.0  ;;  %v5872_v11 = vmul.f32 %v5861_v62, %v9156_v46  ;;  %v6037_v0 = vld [vmem:[%s10203_s5 + $0x20] sm:$0xff] }
 0xb62   : > { %v5875_v1 = vmul.f32 %v5864_v63, %v9168_v53  ;;  %v6038_v63 = vld [vmem:[%s10203_s5 + $0x28] sm:$0xff] }
 0xb63   : > { %v5873_v7 = vmul.f32 %v5862_v2, %v9160_v48  ;;  %v8401_v12 = vpop.f32.mrb[84].mxu1 }
 0xb64   : > { %v5884_v8 = vpack.c.bf16 %v5875_v1, %v5874_v4  ;;  %v5856_v10 = vadd.f32 %v8401_v12, %v7093_v50  ;;  %v5801_v14 = vpop.f32.mrb[85].mxu1 }
 0xb65   : > { %v5854_v5 = vadd.f32 %v7093_v50, %v5801_v14  ;;  %v8402_v6 = vpop.f32.mrb[86].mxu1  ;;  %v5883_v15 = vpack.c.bf16 %v5873_v7, %v5872_v11 }
 0xb66   : > { %v5867_v16 = vmax.f32 %v5856_v10, 0.0  ;;  %v5857_v13 = vadd.f32 %v8402_v6, %v7093_v50  ;;  %v5804_v17 = vpop.f32.mrb[87].mxu1 }
 0xb67   : > { %v5865_v18 = vmax.f32 %v5854_v5, 0.0  ;;  %v5855_v20 = vadd.f32 %v7093_v50, %v5804_v17  ;;  %8423 = vmatprep.mubr.bf16.mxu0 %v5883_v15  ;;  %v6043_v5 = vld [vmem:[%s10203_s5 + $0x50] sm:$0xff]  ;;  %v6041_v15 = vld [vmem:[%s10203_s5 + $0x40] sm:$0xff] }
 0xb68   : > { %v5868_v47 = vmax.f32 %v5857_v13, 0.0  ;;  %8424 = vmatmul.mubr.bf16.vlgmr.msra.gmra.mrb[100].mxu0 %v5884_v8  ;;  %v5878_v46 = vmul.f32 %v5867_v16, %v9182_v9  ;;  %v6042_v16 = vld [vmem:[%s10203_s5 + $0x48] sm:$0xff] }
 0xb69   : > { %v5866_v53 = vmax.f32 %v5855_v20, 0.0  ;;  %v5876_v19 = vmul.f32 %v5865_v18, %v9172_v59 }
 0xb6a   : > { %v5879_v48 = vmul.f32 %v5868_v47, %v9191_v21 }
 0xb6b   : > { %v5877_v23 = vmul.f32 %v5866_v53, %v9178_v3  ;;  %v8405_v24 = vpop.f32.mrb[96].mxu1 }
 0xb6c   : > { %v5841_v22 = vadd.f32 %v8405_v24, %v5681_v39  ;;  %v5817_v31 = vpop.f32.mrb[97].mxu1  ;;  %v5886_v28 = vpack.c.bf16 %v5879_v48, %v5878_v46  ;;  %v8917_v39 = vmov 0.0   ;;  %v8903_v24 = vld [vmem:[%s10205_s7 + $0x8] sm:$0xff]  }
 0xb6d   : > { %v5839_v32 = vadd.f32 %v5817_v31, %v5673_v43  ;;  %v8406_v29 = vpop.f32.mrb[98].mxu1  ;;  %v5885_v30 = vpack.c.bf16 %v5877_v23, %v5876_v19  ;;  %8435 = vmatprep.subr.bf16.mxu1 %v8917_v39  ;;  %8447 = vmatprep.mubr.msk.bf16.mxu1 %vm8918_vm0, %v8917_v39  ;;  %v6033_v43 = vld [vmem:[%s10203_s5] sm:$0xff]  ;;  %v8905_v31 = vld [vmem:[%s10205_s7 + $0x18] sm:$0xff]  }
 0xb6e   : > { %v5860_v34 = vadd.f32 %v7093_v50, %v5841_v22  ;;  %v5820_v25 = vpop.f32.mrb[99].mxu1  ;;  %v6061_v19 = vld [vmem:[%s10204_s6] sm:$0xf]  ;;  %v8904_v22 = vld [vmem:[%s10205_s7 + $0x10] sm:$0xff]  }
 0xb6f   : > { %v5858_v27 = vadd.f32 %v7093_v50, %v5839_v32  ;;  %v5840_v35 = vadd.f32 %v5820_v25, %v5676_v49  ;;  %8427 = vmatprep.mubr.bf16.mxu0 %v5885_v30  ;;  %v8902_v23 = vld [vmem:[%s10205_s7] sm:$0xff]   ;;  %v8907_v32 = vld [vmem:[%s10205_s7 + $0x28] sm:$0x1f]   ;;  %v8919_v25 = vmov 0.0|0.0  }
 0xb70   : > { %v5871_v33 = vmax.f32 %v5860_v34, 0.0  ;;  %8428 = vmatmul.mubr.bf16.gmra.mrb[104].mxu0 %v5886_v28  ;;  %v8906_v28 = vld [vmem:[%s10205_s7 + $0x20] sm:$0xff]   ;;  %v6171_v29 = vsel %vm6169_vm3, %v8907_v32, 0  ;;  %v6215_v34 = vld [vmem:[%s10207_s9 + $0x8] sm:$0x3]  ;;  %8474 = vmatprep.subr.bf16.mxu0 %v8919_v25 }
 0xb71   : > { %v5869_v9 = vmax.f32 %v5858_v27, 0.0  ;;  %v5859_v21 = vadd.f32 %v7093_v50, %v5840_v35  ;;  %v6214_v30 = vld [vmem:[%s10207_s9] sm:$0xff] }
 0xb72   : > { %v5882_v59 = vmul.f32 %v5871_v33, %v9209_v41  ;;  %v6036_v41 = vld [vmem:[%s10203_s5 + $0x18] sm:$0xff]  ;;  %v8475_v27 = vpack.c.bf16 %v6215_v34, %v6214_v30 }
 0xb73   : > { %v5870_v36 = vmax.f32 %v5859_v21, 0.0  ;;  %v5880_v3 = vmul.f32 %v5869_v9, %v9198_v26  ;;  %v6035_v26 = vld [vmem:[%s10203_s5 + $0x10] sm:$0xff] }
 0xb74   : > { %v5888_v40 = vpack.c.bf16 %v5882_v59, %v5882_v59  ;;  %8477 = vmatpush3.bf16.msk.msra.mxu0 %vm8476_vm6, %v8475_v27  ;;  %v7103_v59 = vld [vmem:[%s10206_s8] ss:$0 sm:$0xff] }
 0xb75   : > { %v5881_v37 = vmul.f32 %v5870_v36, %v9217_v45 }
 0xb77   : > { %v5887_v38 = vpack.c.bf16 %v5881_v37, %v5880_v3 }
 0xb79   : > { %8431 = vmatprep.mubr.bf16.mxu0 %v5887_v38 }
 0xb7a   : > { %8432 = vmatmul.mubr.bf16.gmra.mrb[108].mxu0 %v5888_v40 }
 0xb7b   : > { %8471 = vmatprep.mubr.msk.f32.mxu0 %vm8918_vm0, %v8917_v39 }
 0xc3b   : > { %v8425_v42 = vpop.f32.mrb[100].mxu0 }
 0xc3c   : > { %v5987_v45 = vpop.f32.mrb[101].mxu0  ;;  %v6046_v49 = vmul.f32 %v8425_v42, %v6035_v26  ;;  %v7111_v26 = vld [vmem:[#allocation3] ss:$0 sm:$0xff] }
 0xc3d   : > { %v8426_v44 = vpop.f32.mrb[102].mxu0  ;;  %v6044_v57 = vmul.f32 %v6033_v43, %v5987_v45 }
 0xc3e   : > { %v6047_v50 = vmul.f32 %v8426_v44, %v6036_v41  ;;  %v5990_v51 = vpop.f32.mrb[103].mxu0 }
 0xc3f   : > { %v6045_v54 = vmul.f32 %v6034_v52, %v5990_v51  ;;  %v6301_v52 = vld [vmem:[%s10209_s11] sm:$0xff] }
 0xc40   : > { %v6056_v55 = vpack.c.bf16 %v6047_v50, %v6046_v49 }
 0xc41   : > { %v6055_v58 = vpack.c.bf16 %v6045_v54, %v6044_v57 }
 0xc43   : > { %v8429_v60 = vpop.f32.mrb[104].mxu0  ;;  %8436 = vmatpush3.bf16.msra.mxu1 %v6055_v58 }
 0xc44   : > { %v6003_v62 = vpop.f32.mrb[105].mxu0  ;;  %8437 = vmatprep.subr.bf16.mxu1 %v8917_v39  ;;  %v6050_v4 = vmul.f32 %v8429_v60, %v6039_v56 }
 0xc45   : > { %v8430_v2 = vpop.f32.mrb[106].mxu0  ;;  %v6048_v7 = vmul.f32 %v6037_v0, %v6003_v62 }
 0xc46   : > { %v6051_v1 = vmul.f32 %v8430_v2, %v6040_v61  ;;  %v6006_v11 = vpop.f32.mrb[107].mxu0 }
 0xc47   : > { %v6049_v12 = vmul.f32 %v6038_v63, %v6006_v11  ;;  %8438 = vmatpush3.bf16.msra.mxu1 %v6056_v55 }
 0xc48   : > { %v6058_v8 = vpack.c.bf16 %v6051_v1, %v6050_v4  ;;  %8439 = vmatprep.subr.bf16.mxu1 %v8917_v39 }
 0xc49   : > { %v6057_v10 = vpack.c.bf16 %v6049_v12, %v6048_v7 }
 0xc4b   : > { %8440 = vmatpush3.bf16.msra.mxu1 %v6057_v10 }
 0xc4c   : > { %8441 = vmatprep.subr.bf16.mxu1 %v8917_v39 }
 0xc4d   : > { %v8433_v14 = vpop.f32.mrb[108].mxu0 }
 0xc4e   : > { %v6019_v6 = vpop.f32.mrb[109].mxu0  ;;  %v6054_v17 = vmul.f32 %v8433_v14, %v6043_v5 }
 0xc4f   : > { %v8434_v13 = vpop.f32.mrb[110].mxu0  ;;  %8442 = vmatpush3.bf16.msra.mxu1 %v6058_v8  ;;  %v6052_v20 = vmul.f32 %v6041_v15, %v6019_v6 }
 0xc50   : > { %v6022_v18 = vpop.f32.mrb[111].mxu0  ;;  %8443 = vmatprep.subr.bf16.mxu1 %v8917_v39  ;;  %v6060_v46 = vpack.c.bf16 %v6054_v17, %v6054_v17 }
 0xc51   : > { %v6053_v47 = vmul.f32 %v6042_v16, %v6022_v18 }
 0xc52   : > { %v6068_v48 = vsel %vm6066_vm1, %v6060_v46, 0 }
 0xc53   : > { %v6059_v53 = vpack.c.bf16 %v6053_v47, %v6052_v20 }
 0xc55   : > { %8444 = vmatpush3.bf16.msra.mxu1 %v6059_v53 }
 0xc56   : > { %8445 = vmatprep.subr.bf16.mxu1 %v8917_v39 }
 0xc59   : > { %8446 = vmatpush3.bf16.msra.mxu1 %v6068_v48 }
 0xc5a   : > { %8451 = vmatprep.subr.bf16.mxu1 %v8917_v39 }
 0xc5c   : > { %8448 = vmatmul.mubr.msk.bf16.vlgmr.msra.gmra.mrb[100].mxu1 %vm6062_vm2, %v6061_v19 }
 0xc5d   : > { %8452 = vmatpush3.bf16.msra.mxu1 %v8902_v23  ;;  %8463 = vmatprep.mubr.msk.bf16.mxu1 %vm8918_vm0, %v8917_v39 }
 0xc5e   : > { %8453 = vmatprep.subr.bf16.mxu1 %v8917_v39 }
 0xc61   : > { %8454 = vmatpush3.bf16.msra.mxu1 %v8903_v24 }
 0xc62   : > { %8455 = vmatprep.subr.bf16.mxu1 %v8917_v39 }
 0xc65   : > { %8456 = vmatpush3.bf16.msra.mxu1 %v8904_v22 }
 0xc66   : > { %8457 = vmatprep.subr.bf16.mxu1 %v8917_v39 }
 0xc69   : > { %8458 = vmatpush3.bf16.msra.mxu1 %v8905_v31 }
 0xc6a   : > { %8459 = vmatprep.subr.bf16.mxu1 %v8917_v39 }
 0xc6d   : > { %8460 = vmatpush3.bf16.msra.mxu1 %v8906_v28 }
 0xc6e   : > { %8461 = vmatprep.subr.bf16.mxu1 %v8917_v39 }
 0xc71   : > { %8462 = vmatpush3.bf16.msra.mxu1 %v6171_v29 }
 0xd2f   : > { %v6104_v35 = vpop.f32.mrb[100].mxu1 }
 0xd30   : > { %v6110_v33 = vpack.c.bf16 %v6104_v35, %v6104_v35  ;;  %v8449_v9 = vpop.f32.mrb[101].mxu1 }
 0xd31   : > { %v6107_v21 = vpop.f32.mrb[102].mxu1 }
 0xd32   : > { %v8450_v36 = vpop.f32.mrb[103].mxu1  ;;  %8464 = vmatmul.mubr.msk.bf16.vlgmr.msra.gmra.mrb[104].mxu1 %vm6165_vm7, %v6110_v33 }
 0xe05   : > { %v6207_v3 = vpop.f32.mrb[104].mxu1 }
 0xe06   : > { %v6208_v37 = vadd.f32 %v7103_v59, %v6207_v3  ;;  %v8465_v38 = vpop.f32.mrb[105].mxu1 }
 0xe07   : > { %v6210_v40 = vpop.f32.mrb[106].mxu1 }
 0xe08   : > { %v6213_v39 = vmax.f32 %v6208_v37, 0.0  ;;  %v8466_v42 = vpop.f32.mrb[107].mxu1 }
 0xe0a   : > { %8472 = vmatmul.mubr.msk.f32.vlgmr.msra.gmra.mrb[112].mxu0 %vm6223_vm8, %v6213_v39 }
 0xedd   : > { %v6297_v41 = vpop.f32.mrb[112].mxu0 }
 0xede   : > { %v6298_v45 = vadd.f32 %v7111_v26, %v6297_v41  ;;  %v8473_v43 = vpop.f32.mrb[113].mxu0 }
 0xee0   : > { %6304 = vperm.xlu1 %8653, %v6298_v45  }
 0xf5f   : > { %v6305_v44 = vpop.permute.xlu1 %6304 }
 0xf60   : > { %v6307_v49 = vmul.f32 %v6305_v44, %v6301_v52 }
 0xf62   : > { %v6309_v50 = vsel %vm6308_vm9, %v6307_v49, 0.0 }
 0xf63   : > { %v6310_v51 = vrot.slane %v6309_v50, 4 }
 0xf65   : > { %v6311_v57 = vadd.f32 %v6310_v51, %v6309_v50 }
 0xf67   : > { %v6312_v54 = vrot.slane %v6311_v57, 2 }
 0xf69   : > { %v6313_v55 = vadd.f32 %v6312_v54, %v6311_v57 }
 0xf6b   : > { %v6314_v58 = vrot.slane %v6313_v55, 1 }
 0xf6d   : > { %v6315_v60 = vadd.f32 %v6314_v58, %v6313_v55 }
 0xf6f   : > { %6317 = vst.msk [vmem:[%s411_s17] sm:$0x1] %vm6316_vm10, %v6315_v60 }
 0xf70 PF: > { %s24_s23 = sadd.s32 1, %s8914_s23  }
 0xf71   : > { %p21_p4 = scmp.ge.s32.totalorder %s24_s23, 4  }
 0xf73   :  { %23 = sbr.rel (!%p21_p4) target bundleno = 3 (0x3), region = 136 }

</bundles_post_ra>
